<compile_context>
chip_gen: v7x
topology: tpu7x:2x2x1
jax: 0.10.0
libtpu: 0.0.40
codegen_flags: <defaults>
</compile_context>

<pallas_src>
import functools

import jax
import jax.numpy as jnp
from jax.experimental import pallas as pl
from jax.experimental.pallas import tpu as pltpu


def _round_up(x, m):
    return (x + m - 1) // m * m


def _vmem_capacity_bytes():
    try:
        return int(pltpu.get_tpu_info().vmem_capacity_bytes)
    except Exception:
        return 64 << 20           # conservative default (v7x per-core VMEM)


def _plan(M, K, Cout, want_fused, a_budget=16 << 20):
    """Pick M tile, padded M, fused-BN feasibility and the scoped-VMEM limit."""
    cap = _vmem_capacity_bytes()
    tm = min(1024, _round_up(M, 8))
    while tm > 8 and 2 * tm * K * 2 > a_budget:        # A bf16 double-buffer
        tm = max(8, _round_up(tm // 2, 8))
    Mp = _round_up(M, tm)
    resident = Mp * Cout * (4 + 2)                     # f32 y scratch + bf16 out block
    streaming = 2 * tm * K * 2 + 2 * K * Cout * 2 + 8 * Cout * 4
    fused = bool(want_fused) and (resident + streaming) <= int(0.7 * cap)
    vmem_limit = int(0.85 * cap)
    return tm, Mp, fused, vmem_limit


# ----------------------------------------------------------------------------
# Kernel 1: matmul (weight VMEM-resident) with fused activation epilogue
# ----------------------------------------------------------------------------
def _conv_act_kernel(activation, a_ref, b_ref, o_ref):
    y = jnp.dot(a_ref[...], b_ref[...], preferred_element_type=jnp.float32)
    if activation == "leaky":
        y = jnp.where(y >= 0, y, 0.2 * y)
    elif activation == "sigmoid":
        y = jax.nn.sigmoid(y)
    o_ref[...] = y.astype(o_ref.dtype)


# ----------------------------------------------------------------------------
# Kernel 2 (fused BN path): matmul + BN-stat accumulation, conv output kept in
# a resident VMEM scratch; the finalize applies scale/shift + LeakyReLU into a
# VMEM-resident bf16 output block (written back to HBM once, after the grid).
# ----------------------------------------------------------------------------
def _conv_bn_leaky_fused_kernel(count, eps, slope, nt,
                                a_ref, b_ref, g_ref, bt_ref,
                                o_ref, y_ref, s_ref, q_ref):
    i = pl.program_id(0)
    tm = a_ref.shape[0]

    @pl.when(i == 0)
    def _():
        s_ref[...] = jnp.zeros_like(s_ref)
        q_ref[...] = jnp.zeros_like(q_ref)

    y = jnp.dot(a_ref[...], b_ref[...], preferred_element_type=jnp.float32)
    s_ref[...] += jnp.sum(y, axis=0, keepdims=True)
    q_ref[...] += jnp.sum(y * y, axis=0, keepdims=True)
    y_ref[pl.ds(pl.multiple_of(i * tm, 8), tm), :] = y

    @pl.when(i == nt - 1)
    def _():
        inv_n = jnp.float32(1.0 / count)                 # true (unpadded) count
        mean = s_ref[...] * inv_n
        var = q_ref[...] * inv_n - mean * mean           # biased variance
        scale = g_ref[...] * jax.lax.rsqrt(var + jnp.float32(eps))
        shift = bt_ref[...] - mean * scale

        def body(t, carry):
            off = pl.multiple_of(t * tm, 8)
            yh = y_ref[pl.ds(off, tm), :] * scale + shift
            o_ref[pl.ds(off, tm), :] = jnp.where(
                yh >= 0, yh, slope * yh).astype(o_ref.dtype)
            return carry

        jax.lax.fori_loop(0, nt, body, 0)


# ----------------------------------------------------------------------------
# Kernels 3/4 (fallback for very large M): per-tile partial stats (parallel)
# then BN apply + LeakyReLU.
# ----------------------------------------------------------------------------
def _conv_bn_stats_tile_kernel(a_ref, b_ref, y_ref, p_ref):
    y = jnp.dot(a_ref[...], b_ref[...], preferred_element_type=jnp.float32)
    y_ref[...] = y.astype(y_ref.dtype)
    s = jnp.sum(y, axis=0, keepdims=True)
    q = jnp.sum(y * y, axis=0, keepdims=True)
    p_ref[...] = jnp.concatenate([s, q], axis=0)[None, :, :]


def _bn_apply_leaky_kernel(slope, y_ref, ss_ref, o_ref):
    yh = y_ref[...].astype(jnp.float32) * ss_ref[0:1, :] + ss_ref[1:2, :]
    o_ref[...] = jnp.where(yh >= 0, yh, slope * yh).astype(o_ref.dtype)


# ----------------------------------------------------------------------------
# im2col glue (plain JAX, NHWC bf16 in -> (M, kh*kw*Cp) patches, channels-last)
# ----------------------------------------------------------------------------
def _im2col_nhwc(x, kh, kw, stride, pad):
    N, H, W, C = x.shape
    Ho = (H + 2 * pad - kh) // stride + 1
    Wo = (W + 2 * pad - kw) // stride + 1
    xp = jnp.pad(x, ((0, 0), (pad, pad), (pad, pad), (0, 0)))
    cols = []
    for i in range(kh):
        for j in range(kw):
            cols.append(xp[:, i:i + stride * Ho:stride, j:j + stride * Wo:stride, :])
    p = jnp.stack(cols, axis=3)                          # (N, Ho, Wo, kh*kw, C)
    return p.reshape(N * Ho * Wo, kh * kw * C), N, Ho, Wo


def _prep_operands(x_nhwc, w, stride, pad):
    """bf16 im2col patch matrix (M, kh*kw*Cp) + matching (K, Cout) weight."""
    Cout, Cin, kh, kw = w.shape
    Cp = _round_up(Cin, 8)      # pad the (small) input channels, not the big A
    if Cp > Cin:
        x_nhwc = jnp.pad(x_nhwc, ((0, 0), (0, 0), (0, 0), (0, Cp - Cin)))
        w = jnp.pad(w, ((0, 0), (0, Cp - Cin), (0, 0), (0, 0)))
    patches, N, Ho, Wo = _im2col_nhwc(x_nhwc, kh, kw, stride, pad)
    M, K = patches.shape                                 # K ordering: (kh, kw, Cp)
    wm = w.transpose(2, 3, 1, 0).reshape(K, Cout).astype(jnp.bfloat16)
    return patches, wm, M, K, Cout, N, Ho, Wo


# ----------------------------------------------------------------------------
# Layer wrappers
# ----------------------------------------------------------------------------
def conv2d_act(x_nhwc, w, stride, pad, activation, out_dtype):
    a, b, M, K, Cout, N, Ho, Wo = _prep_operands(x_nhwc, w, stride, pad)
    tm, Mp, _, vmem_limit = _plan(M, K, Cout, want_fused=False)
    if Mp > M:
        a = jnp.pad(a, ((0, Mp - M), (0, 0)))
    out = pl.pallas_call(
        functools.partial(_conv_act_kernel, activation),
        out_shape=jax.ShapeDtypeStruct((Mp, Cout), out_dtype),
        grid_spec=pltpu.PrefetchScalarGridSpec(
            num_scalar_prefetch=0,
            grid=(Mp // tm,),
            in_specs=[
                pl.BlockSpec((tm, K), lambda i: (i, 0)),
                pl.BlockSpec((K, Cout), lambda i: (0, 0)),   # weight VMEM-resident
            ],
            out_specs=pl.BlockSpec((tm, Cout), lambda i: (i, 0)),
        ),
        compiler_params=pltpu.CompilerParams(
            dimension_semantics=("parallel",), vmem_limit_bytes=vmem_limit),
    )(a, b)
    return out[:M], N, Ho, Wo


def conv2d_bn_leaky(x_nhwc, w, gamma, beta, stride, pad,
                    eps=1e-5, slope=0.2, fuse=True):
    a, b, M, K, Cout, N, Ho, Wo = _prep_operands(x_nhwc, w, stride, pad)
    tm, Mp, fused, vmem_limit = _plan(M, K, Cout, want_fused=fuse)
    if Mp > M:
        a = jnp.pad(a, ((0, Mp - M), (0, 0)))
    nt = Mp // tm
    g = gamma.reshape(1, Cout).astype(jnp.float32)
    bt = beta.reshape(1, Cout).astype(jnp.float32)

    if fused:
        # single pass: matmul + BN stats + resident scale/shift/LeakyReLU apply
        out = pl.pallas_call(
            functools.partial(_conv_bn_leaky_fused_kernel,
                              float(M), eps, slope, nt),
            out_shape=jax.ShapeDtypeStruct((Mp, Cout), jnp.bfloat16),
            grid_spec=pltpu.PrefetchScalarGridSpec(
                num_scalar_prefetch=0,
                grid=(nt,),
                in_specs=[
                    pl.BlockSpec((tm, K), lambda i: (i, 0)),
                    pl.BlockSpec((K, Cout), lambda i: (0, 0)),
                    pl.BlockSpec((1, Cout), lambda i: (0, 0)),
                    pl.BlockSpec((1, Cout), lambda i: (0, 0)),
                ],
                out_specs=pl.BlockSpec((Mp, Cout), lambda i: (0, 0)),  # resident
                scratch_shapes=[
                    pltpu.VMEM((Mp, Cout), jnp.float32),   # resident f32 conv out
                    pltpu.VMEM((1, Cout), jnp.float32),    # per-channel sum
                    pltpu.VMEM((1, Cout), jnp.float32),    # per-channel sum of squares
                ],
            ),
            compiler_params=pltpu.CompilerParams(
                dimension_semantics=("arbitrary",), vmem_limit_bytes=vmem_limit),
        )(a, b, g, bt)
        return out[:M], N, Ho, Wo

    # Fallback (resident y would not fit VMEM): pass 1 writes y (bf16) plus
    # per-tile partial stats so the matmul axis is "parallel"; tiny reduction
    # + scale/shift in plain JAX; pass 2 applies BN + LeakyReLU.
    y, part = pl.pallas_call(
        _conv_bn_stats_tile_kernel,
        out_shape=(jax.ShapeDtypeStruct((Mp, Cout), jnp.bfloat16),
                   jax.ShapeDtypeStruct((nt, 2, Cout), jnp.float32)),
        grid_spec=pltpu.PrefetchScalarGridSpec(
            num_scalar_prefetch=0,
            grid=(nt,),
            in_specs=[
                pl.BlockSpec((tm, K), lambda i: (i, 0)),
                pl.BlockSpec((K, Cout), lambda i: (0, 0)),
            ],
            out_specs=(pl.BlockSpec((tm, Cout), lambda i: (i, 0)),
                       pl.BlockSpec((1, 2, Cout), lambda i: (i, 0, 0))),
        ),
        compiler_params=pltpu.CompilerParams(
            dimension_semantics=("parallel",), vmem_limit_bytes=vmem_limit),
    )(a, b)
    tot = jnp.sum(part, axis=0)                      # (2, Cout)
    mean = tot[0] / M                                # true (unpadded) count
    var = tot[1] / M - mean * mean                   # biased variance
    scale = g[0] * jax.lax.rsqrt(var + eps)
    shift = bt[0] - mean * scale
    ss = jnp.stack([scale, shift], axis=0)           # (2, Cout) f32

    out = pl.pallas_call(
        functools.partial(_bn_apply_leaky_kernel, slope),
        out_shape=jax.ShapeDtypeStruct((Mp, Cout), jnp.bfloat16),
        grid_spec=pltpu.PrefetchScalarGridSpec(
            num_scalar_prefetch=0,
            grid=(nt,),
            in_specs=[
                pl.BlockSpec((tm, Cout), lambda i: (i, 0)),
                pl.BlockSpec((2, Cout), lambda i: (0, 0)),
            ],
            out_specs=pl.BlockSpec((tm, Cout), lambda i: (i, 0)),
        ),
        compiler_params=pltpu.CompilerParams(
            dimension_semantics=("parallel",), vmem_limit_bytes=vmem_limit),
    )(y, ss)
    return out[:M], N, Ho, Wo


# ----------------------------------------------------------------------------
# Full Discriminator forward (DCGAN, 64x64 input), NHWC bf16 internally
# ----------------------------------------------------------------------------
@functools.partial(jax.jit, static_argnames=("fuse_bn",))
def discriminator_forward(x, params, fuse_bn=True):
    # single NCHW -> NHWC transpose + bf16 cast at the boundary
    h = jnp.transpose(x, (0, 2, 3, 1)).astype(jnp.bfloat16)
    # layer 1: conv(nc->ndf, 4,2,1) + LeakyReLU(0.2) fused in the matmul epilogue
    y, N, Ho, Wo = conv2d_act(h, params["w1"], 2, 1, "leaky", jnp.bfloat16)
    h = y.reshape(N, Ho, Wo, -1)
    # layers 2-4: conv(4,2,1) + BatchNorm2d (batch stats) + LeakyReLU(0.2)
    for idx in (2, 3, 4):
        y, N, Ho, Wo = conv2d_bn_leaky(
            h, params[f"w{idx}"], params[f"g{idx}"], params[f"b{idx}"], 2, 1,
            fuse=fuse_bn)
        h = y.reshape(N, Ho, Wo, -1)
    # layer 5: conv(ndf*8 -> 1, 4,1,0) + Sigmoid
    y, N, Ho, Wo = conv2d_act(h, params["w5"], 1, 0, "sigmoid", jnp.float32)
    return y.reshape(N, 1, Ho, Wo)                   # (N, 1, 1, 1)


def init_params(key, ndf, nc):
    ks = jax.random.split(key, 5)
    shapes = [
        (ndf, nc, 4, 4),
        (ndf * 2, ndf, 4, 4),
        (ndf * 4, ndf * 2, 4, 4),
        (ndf * 8, ndf * 4, 4, 4),
        (1, ndf * 8, 4, 4),
    ]
    params = {}
    for i, (k, s) in enumerate(zip(ks, shapes), start=1):
        params[f"w{i}"] = 0.02 * jax.random.normal(k, s, dtype=jnp.float32)
    for i, c in zip((2, 3, 4), (ndf * 2, ndf * 4, ndf * 8)):
        params[f"g{i}"] = jnp.ones((c,), jnp.float32)    # BatchNorm weight default
        params[f"b{i}"] = jnp.zeros((c,), jnp.float32)   # BatchNorm bias default
    return params


def _reference_forward(x, params, eps=1e-5, slope=0.2):
    """Pure-JAX f32 reference matching the PyTorch module (training-mode BN)."""
    def conv(h, w, stride, pad):
        return jax.lax.conv_general_dilated(
            h, w, (stride, stride), ((pad, pad), (pad, pad)),
            dimension_numbers=("NCHW", "OIHW", "NCHW"))
    h = conv(x, params["w1"], 2, 1)
    h = jnp.where(h >= 0, h, slope * h)
    for idx in (2, 3, 4):
        h = conv(h, params[f"w{idx}"], 2, 1)
        mean = jnp.mean(h, axis=(0, 2, 3), keepdims=True)
        var = jnp.var(h, axis=(0, 2, 3), keepdims=True)        # biased
        h = (h - mean) * jax.lax.rsqrt(var + eps)
        h = h * params[f"g{idx}"].reshape(1, -1, 1, 1) \
            + params[f"b{idx}"].reshape(1, -1, 1, 1)
        h = jnp.where(h >= 0, h, slope * h)
    h = conv(h, params["w5"], 1, 0)
    return jax.nn.sigmoid(h)


if __name__ == "__main__":
    ndf, nc, batch = 8, 3, 2               # 64x64 spatial is required by the 5-layer stack
    key = jax.random.PRNGKey(0)
    k_x, k_p = jax.random.split(key)
    x = jax.random.normal(k_x, (batch, nc, 64, 64), dtype=jnp.float32)
    params = init_params(k_p, ndf, nc)

    ref = jax.block_until_ready(_reference_forward(x, params))
    out_fused = jax.block_until_ready(discriminator_forward(x, params, fuse_bn=True))
    out_split = jax.block_until_ready(discriminator_forward(x, params, fuse_bn=False))

    assert out_fused.shape == (batch, 1, 1, 1), out_fused.shape
    assert out_split.shape == (batch, 1, 1, 1), out_split.shape
    for out in (out_fused, out_split):
        assert bool(jnp.all(jnp.isfinite(out)))
        assert bool(jnp.all((out >= 0.0) & (out <= 1.0)))
        err = float(jnp.max(jnp.abs(out - ref)))
        assert err < 1e-1, f"mismatch vs f32 reference: {err}"
    path_diff = float(jnp.max(jnp.abs(out_fused - out_split)))
    assert path_diff < 3e-2, f"fused vs two-pass BN mismatch: {path_diff}"
    print("KERNEL_OK")
</pallas_src>

<mosaic_0001>
module attributes {stable_mosaic.version = 11 : i64} {
  func.func @_conv_act_kernel(%arg0: i32, %arg1: memref<1024x128xbf16, #tpu.memory_space<vmem>>, %arg2: memref<128x8xbf16, #tpu.memory_space<vmem>>, %arg3: memref<1024x8xbf16, #tpu.memory_space<vmem>>) attributes {dimension_semantics = [#tpu.dimension_semantics<parallel>], iteration_bounds = array<i64: 2>, scalar_prefetch = 0 : i64, scratch_operands = 0 : i64, tpu.core_type = #tpu.core_type<tc>, window_params = [{transform_indices = @transform_0, window_bounds = array<i64: 1024, 128>}, {pipeline_mode = #tpu.pipeline_mode<synchronous>, transform_indices = @transform_1, window_bounds = array<i64: 128, 8>}, {transform_indices = @transform_2, window_bounds = array<i64: 1024, 8>}]} {
    %c0 = arith.constant 0 : index
    %c0_0 = arith.constant 0 : index
    %0 = vector.load %arg1[%c0, %c0_0] : memref<1024x128xbf16, #tpu.memory_space<vmem>>, vector<1024x128xbf16>
    %c0_1 = arith.constant 0 : index
    %c0_2 = arith.constant 0 : index
    %1 = vector.load %arg2[%c0_1, %c0_2] : memref<128x8xbf16, #tpu.memory_space<vmem>>, vector<128x8xbf16>
    %cst = arith.constant dense<0.000000e+00> : vector<1024x8xf32>
    %2 = tpu.matmul %0, %1, %cst {dimension_numbers = #tpu.dot_dimension_numbers<[1], [0], [0], [1], [0, 0, 1, 1], [], []>} : vector<1024x128xbf16>, vector<128x8xbf16>, vector<1024x8xf32> -> vector<1024x8xf32>
    %cst_3 = arith.constant 0.000000e+00 : f32
    %3 = vector.broadcast %cst_3 : f32 to vector<1024x8xf32>
    %4 = arith.cmpf oge, %2, %3 : vector<1024x8xf32>
    %cst_4 = arith.constant 2.000000e-01 : f32
    %5 = vector.broadcast %cst_4 : f32 to vector<1024x8xf32>
    %6 = arith.mulf %5, %2 : vector<1024x8xf32>
    %7 = arith.select %4, %2, %6 : vector<1024x8xi1>, vector<1024x8xf32>
    %8 = arith.truncf %7 : vector<1024x8xf32> to vector<1024x8xbf16>
    %c0_5 = arith.constant 0 : index
    %c0_6 = arith.constant 0 : index
    %9 = vector.load %arg3[%c0_5, %c0_6] : memref<1024x8xbf16, #tpu.memory_space<vmem>>, vector<1024x8xbf16>
    tpu.vector_store %arg3[%c0_5, %c0_6], %8 {strides = array<i32>} : memref<1024x8xbf16, #tpu.memory_space<vmem>>, vector<1024x8xbf16>,
    return
  }
  func.func @transform_0(%arg0: i32) -> (i32, i32) {
    %c0_i32 = arith.constant 0 : i32
    %c0_i32_0 = arith.constant 0 : i32
    return %arg0, %c0_i32 : i32, i32
  }
  func.func @transform_1(%arg0: i32) -> (i32, i32) {
    %c0_i32 = arith.constant 0 : i32
    %c0_i32_0 = arith.constant 0 : i32
    %c0_i32_1 = arith.constant 0 : i32
    return %c0_i32, %c0_i32_0 : i32, i32
  }
  func.func @transform_2(%arg0: i32) -> (i32, i32) {
    %c0_i32 = arith.constant 0 : i32
    %c0_i32_0 = arith.constant 0 : i32
    return %arg0, %c0_i32 : i32, i32
  }
}

module attributes {stable_mosaic.version = 11 : i64} {
  func.func @_conv_bn_leaky_fused_kernel(%arg0: i32, %arg1: memref<512x128xbf16, #tpu.memory_space<vmem>>, %arg2: memref<128x16xbf16, #tpu.memory_space<vmem>>, %arg3: memref<1x16xf32, #tpu.memory_space<vmem>>, %arg4: memref<1x16xf32, #tpu.memory_space<vmem>>, %arg5: memref<512x16xbf16, #tpu.memory_space<vmem>>, %arg6: memref<512x16xf32, #tpu.memory_space<vmem>>, %arg7: memref<1x16xf32, #tpu.memory_space<vmem>>, %arg8: memref<1x16xf32, #tpu.memory_space<vmem>>) attributes {dimension_semantics = [#tpu.dimension_semantics<arbitrary>], iteration_bounds = array<i64: 1>, scalar_prefetch = 0 : i64, scratch_operands = 3 : i64, tpu.core_type = #tpu.core_type<tc>, window_params = [{transform_indices = @transform_0, window_bounds = array<i64: 512, 128>}, {pipeline_mode = #tpu.pipeline_mode<synchronous>, transform_indices = @transform_1, window_bounds = array<i64: 128, 16>}, {pipeline_mode = #tpu.pipeline_mode<synchronous>, transform_indices = @transform_2, window_bounds = array<i64: 1, 16>}, {pipeline_mode = #tpu.pipeline_mode<synchronous>, transform_indices = @transform_3, window_bounds = array<i64: 1, 16>}, {pipeline_mode = #tpu.pipeline_mode<synchronous>, transform_indices = @transform_4, window_bounds = array<i64: 512, 16>}]} {
    %c0_i32 = arith.constant 0 : i32
    %0 = arith.cmpi eq, %arg0, %c0_i32 : i32
    %1 = arith.extui %0 : i1 to i32
    %c0_i32_0 = arith.constant 0 : i32
    %2 = arith.cmpi ne, %1, %c0_i32_0 : i32
    scf.if %2 {
      %cst_17 = arith.constant 0.000000e+00 : f32
      %24 = vector.broadcast %cst_17 : f32 to vector<1x16xf32>
      %c0_18 = arith.constant 0 : index
      %c0_19 = arith.constant 0 : index
      %25 = vector.load %arg7[%c0_18, %c0_19] : memref<1x16xf32, #tpu.memory_space<vmem>>, vector<1x16xf32>
      tpu.vector_store %arg7[%c0_18, %c0_19], %24 {strides = array<i32>} : memref<1x16xf32, #tpu.memory_space<vmem>>, vector<1x16xf32>,
      %cst_20 = arith.constant 0.000000e+00 : f32
      %26 = vector.broadcast %cst_20 : f32 to vector<1x16xf32>
      %c0_21 = arith.constant 0 : index
      %c0_22 = arith.constant 0 : index
      %27 = vector.load %arg8[%c0_21, %c0_22] : memref<1x16xf32, #tpu.memory_space<vmem>>, vector<1x16xf32>
      tpu.vector_store %arg8[%c0_21, %c0_22], %26 {strides = array<i32>} : memref<1x16xf32, #tpu.memory_space<vmem>>, vector<1x16xf32>,
    } else {
    }
    %c0 = arith.constant 0 : index
    %c0_1 = arith.constant 0 : index
    %3 = vector.load %arg1[%c0, %c0_1] : memref<512x128xbf16, #tpu.memory_space<vmem>>, vector<512x128xbf16>
    %c0_2 = arith.constant 0 : index
    %c0_3 = arith.constant 0 : index
    %4 = vector.load %arg2[%c0_2, %c0_3] : memref<128x16xbf16, #tpu.memory_space<vmem>>, vector<128x16xbf16>
    %cst = arith.constant dense<0.000000e+00> : vector<512x16xf32>
    %5 = tpu.matmul %3, %4, %cst {dimension_numbers = #tpu.dot_dimension_numbers<[1], [0], [0], [1], [0, 0, 1, 1], [], []>} : vector<512x128xbf16>, vector<128x16xbf16>, vector<512x16xf32> -> vector<512x16xf32>
    %c0_4 = arith.constant 0 : index
    %c0_5 = arith.constant 0 : index
    %6 = vector.load %arg7[%c0_4, %c0_5] : memref<1x16xf32, #tpu.memory_space<vmem>>, vector<1x16xf32>
    %cst_6 = arith.constant dense<0.000000e+00> : vector<16xf32>
    %7 = vector.multi_reduction <add>, %5, %cst_6 [0] : vector<512x16xf32> to vector<16xf32>
    %8 = vector.shape_cast %7 : vector<16xf32> to vector<1x16xf32>
    %9 = arith.addf %6, %8 : vector<1x16xf32>
    %c0_7 = arith.constant 0 : index
    %c0_8 = arith.constant 0 : index
    %10 = vector.load %arg7[%c0_7, %c0_8] : memref<1x16xf32, #tpu.memory_space<vmem>>, vector<1x16xf32>
    tpu.vector_store %arg7[%c0_7, %c0_8], %9 {strides = array<i32>} : memref<1x16xf32, #tpu.memory_space<vmem>>, vector<1x16xf32>,
    %c0_9 = arith.constant 0 : index
    %c0_10 = arith.constant 0 : index
    %11 = vector.load %arg8[%c0_9, %c0_10] : memref<1x16xf32, #tpu.memory_space<vmem>>, vector<1x16xf32>
    %12 = arith.mulf %5, %5 : vector<512x16xf32>
    %cst_11 = arith.constant dense<0.000000e+00> : vector<16xf32>
    %13 = vector.multi_reduction <add>, %12, %cst_11 [0] : vector<512x16xf32> to vector<16xf32>
    %14 = vector.shape_cast %13 : vector<16xf32> to vector<1x16xf32>
    %15 = arith.addf %11, %14 : vector<1x16xf32>
    %c0_12 = arith.constant 0 : index
    %c0_13 = arith.constant 0 : index
    %16 = vector.load %arg8[%c0_12, %c0_13] : memref<1x16xf32, #tpu.memory_space<vmem>>, vector<1x16xf32>
    tpu.vector_store %arg8[%c0_12, %c0_13], %15 {strides = array<i32>} : memref<1x16xf32, #tpu.memory_space<vmem>>, vector<1x16xf32>,
    %c512_i32 = arith.constant 512 : i32
    %17 = arith.muli %arg0, %c512_i32 : i32
    %18 = tpu.assume_multiple %17, 8 : i32
    %19 = arith.index_cast %18 : i32 to index
    %c0_14 = arith.constant 0 : index
    %20 = vector.load %arg6[%19, %c0_14] : memref<512x16xf32, #tpu.memory_space<vmem>>, vector<512x16xf32>
    tpu.vector_store %arg6[%19, %c0_14], %5 {strides = array<i32>} : memref<512x16xf32, #tpu.memory_space<vmem>>, vector<512x16xf32>,
    %c0_i32_15 = arith.constant 0 : i32
    %21 = arith.cmpi eq, %arg0, %c0_i32_15 : i32
    %22 = arith.extui %21 : i1 to i32
    %c0_i32_16 = arith.constant 0 : i32
    %23 = arith.cmpi ne, %22, %c0_i32_16 : i32
    scf.if %23 {
      %c0_17 = arith.constant 0 : index
      %c0_18 = arith.constant 0 : index
      %24 = vector.load %arg7[%c0_17, %c0_18] : memref<1x16xf32, #tpu.memory_space<vmem>>, vector<1x16xf32>
      %cst_19 = arith.constant 0.001953125 : f32
      %25 = vector.broadcast %cst_19 : f32 to vector<1x16xf32>
      %26 = arith.mulf %24, %25 : vector<1x16xf32>
      %c0_20 = arith.constant 0 : index
      %c0_21 = arith.constant 0 : index
      %27 = vector.load %arg8[%c0_20, %c0_21] : memref<1x16xf32, #tpu.memory_space<vmem>>, vector<1x16xf32>
      %cst_22 = arith.constant 0.001953125 : f32
      %28 = vector.broadcast %cst_22 : f32 to vector<1x16xf32>
      %29 = arith.mulf %27, %28 : vector<1x16xf32>
      %30 = arith.mulf %26, %26 : vector<1x16xf32>
      %31 = arith.subf %29, %30 : vector<1x16xf32>
      %c0_23 = arith.constant 0 : index
      %c0_24 = arith.constant 0 : index
      %32 = vector.load %arg3[%c0_23, %c0_24] : memref<1x16xf32, #tpu.memory_space<vmem>>, vector<1x16xf32>
      %cst_25 = arith.constant 9.99999974E-6 : f32
      %33 = vector.broadcast %cst_25 : f32 to vector<1x16xf32>
      %34 = arith.addf %31, %33 : vector<1x16xf32>
      %35 = math.rsqrt %34 : vector<1x16xf32>
      %36 = arith.mulf %32, %35 : vector<1x16xf32>
      %c0_26 = arith.constant 0 : index
      %c0_27 = arith.constant 0 : index
      %37 = vector.load %arg4[%c0_26, %c0_27] : memref<1x16xf32, #tpu.memory_space<vmem>>, vector<1x16xf32>
      %38 = arith.mulf %26, %36 : vector<1x16xf32>
      %39 = arith.subf %37, %38 : vector<1x16xf32>
      %c0_i32_28 = arith.constant 0 : i32
      %c512_i32_29 = arith.constant 512 : i32
      %40 = arith.muli %c0_i32_28, %c512_i32_29 : i32
      %41 = tpu.assume_multiple %40, 8 : i32
      %42 = arith.index_cast %41 : i32 to index
      %c0_30 = arith.constant 0 : index
      %43 = vector.load %arg6[%42, %c0_30] : memref<512x16xf32, #tpu.memory_space<vmem>>, vector<512x16xf32>
      %44 = vector.broadcast %36 : vector<1x16xf32> to vector<512x16xf32>
      %45 = arith.mulf %43, %44 : vector<512x16xf32>
      %46 = vector.broadcast %39 : vector<1x16xf32> to vector<512x16xf32>
      %47 = arith.addf %45, %46 : vector<512x16xf32>
      %cst_31 = arith.constant 0.000000e+00 : f32
      %48 = vector.broadcast %cst_31 : f32 to vector<512x16xf32>
      %49 = arith.cmpf oge, %47, %48 : vector<512x16xf32>
      %cst_32 = arith.constant 2.000000e-01 : f32
      %50 = vector.broadcast %cst_32 : f32 to vector<512x16xf32>
      %51 = arith.mulf %50, %47 : vector<512x16xf32>
      %52 = arith.select %49, %47, %51 : vector<512x16xi1>, vector<512x16xf32>
      %53 = arith.truncf %52 : vector<512x16xf32> to vector<512x16xbf16>
      %54 = arith.index_cast %41 : i32 to index
      %c0_33 = arith.constant 0 : index
      %55 = vector.load %arg5[%54, %c0_33] : memref<512x16xbf16, #tpu.memory_space<vmem>>, vector<512x16xbf16>
      tpu.vector_store %arg5[%54, %c0_33], %53 {strides = array<i32>} : memref<512x16xbf16, #tpu.memory_space<vmem>>, vector<512x16xbf16>,
      %c1_i32 = arith.constant 1 : i32
    } else {
    }
    return
  }
  func.func @transform_0(%arg0: i32) -> (i32, i32) {
    %c0_i32 = arith.constant 0 : i32
    %c0_i32_0 = arith.constant 0 : i32
    return %arg0, %c0_i32 : i32, i32
  }
  func.func @transform_1(%arg0: i32) -> (i32, i32) {
    %c0_i32 = arith.constant 0 : i32
    %c0_i32_0 = arith.constant 0 : i32
    %c0_i32_1 = arith.constant 0 : i32
    return %c0_i32, %c0_i32_0 : i32, i32
  }
  func.func @transform_2(%arg0: i32) -> (i32, i32) {
    %c0_i32 = arith.constant 0 : i32
    %c0_i32_0 = arith.constant 0 : i32
    %c0_i32_1 = arith.constant 0 : i32
    return %c0_i32, %c0_i32_0 : i32, i32
  }
  func.func @transform_3(%arg0: i32) -> (i32, i32) {
    %c0_i32 = arith.constant 0 : i32
    %c0_i32_0 = arith.constant 0 : i32
    %c0_i32_1 = arith.constant 0 : i32
    return %c0_i32, %c0_i32_0 : i32, i32
  }
  func.func @transform_4(%arg0: i32) -> (i32, i32) {
    %c0_i32 = arith.constant 0 : i32
    %c0_i32_0 = arith.constant 0 : i32
    %c0_i32_1 = arith.constant 0 : i32
    return %c0_i32, %c0_i32_0 : i32, i32
  }
}

module attributes {stable_mosaic.version = 11 : i64} {
  func.func @_conv_bn_leaky_fused_kernel(%arg0: i32, %arg1: memref<128x256xbf16, #tpu.memory_space<vmem>>, %arg2: memref<256x32xbf16, #tpu.memory_space<vmem>>, %arg3: memref<1x32xf32, #tpu.memory_space<vmem>>, %arg4: memref<1x32xf32, #tpu.memory_space<vmem>>, %arg5: memref<128x32xbf16, #tpu.memory_space<vmem>>, %arg6: memref<128x32xf32, #tpu.memory_space<vmem>>, %arg7: memref<1x32xf32, #tpu.memory_space<vmem>>, %arg8: memref<1x32xf32, #tpu.memory_space<vmem>>) attributes {dimension_semantics = [#tpu.dimension_semantics<arbitrary>], iteration_bounds = array<i64: 1>, scalar_prefetch = 0 : i64, scratch_operands = 3 : i64, tpu.core_type = #tpu.core_type<tc>, window_params = [{transform_indices = @transform_0, window_bounds = array<i64: 128, 256>}, {pipeline_mode = #tpu.pipeline_mode<synchronous>, transform_indices = @transform_1, window_bounds = array<i64: 256, 32>}, {pipeline_mode = #tpu.pipeline_mode<synchronous>, transform_indices = @transform_2, window_bounds = array<i64: 1, 32>}, {pipeline_mode = #tpu.pipeline_mode<synchronous>, transform_indices = @transform_3, window_bounds = array<i64: 1, 32>}, {pipeline_mode = #tpu.pipeline_mode<synchronous>, transform_indices = @transform_4, window_bounds = array<i64: 128, 32>}]} {
    %c0_i32 = arith.constant 0 : i32
    %0 = arith.cmpi eq, %arg0, %c0_i32 : i32
    %1 = arith.extui %0 : i1 to i32
    %c0_i32_0 = arith.constant 0 : i32
    %2 = arith.cmpi ne, %1, %c0_i32_0 : i32
    scf.if %2 {
      %cst_17 = arith.constant 0.000000e+00 : f32
      %24 = vector.broadcast %cst_17 : f32 to vector<1x32xf32>
      %c0_18 = arith.constant 0 : index
      %c0_19 = arith.constant 0 : index
      %25 = vector.load %arg7[%c0_18, %c0_19] : memref<1x32xf32, #tpu.memory_space<vmem>>, vector<1x32xf32>
      tpu.vector_store %arg7[%c0_18, %c0_19], %24 {strides = array<i32>} : memref<1x32xf32, #tpu.memory_space<vmem>>, vector<1x32xf32>,
      %cst_20 = arith.constant 0.000000e+00 : f32
      %26 = vector.broadcast %cst_20 : f32 to vector<1x32xf32>
      %c0_21 = arith.constant 0 : index
      %c0_22 = arith.constant 0 : index
      %27 = vector.load %arg8[%c0_21, %c0_22] : memref<1x32xf32, #tpu.memory_space<vmem>>, vector<1x32xf32>
      tpu.vector_store %arg8[%c0_21, %c0_22], %26 {strides = array<i32>} : memref<1x32xf32, #tpu.memory_space<vmem>>, vector<1x32xf32>,
    } else {
    }
    %c0 = arith.constant 0 : index
    %c0_1 = arith.constant 0 : index
    %3 = vector.load %arg1[%c0, %c0_1] : memref<128x256xbf16, #tpu.memory_space<vmem>>, vector<128x256xbf16>
    %c0_2 = arith.constant 0 : index
    %c0_3 = arith.constant 0 : index
    %4 = vector.load %arg2[%c0_2, %c0_3] : memref<256x32xbf16, #tpu.memory_space<vmem>>, vector<256x32xbf16>
    %cst = arith.constant dense<0.000000e+00> : vector<128x32xf32>
    %5 = tpu.matmul %3, %4, %cst {dimension_numbers = #tpu.dot_dimension_numbers<[1], [0], [0], [1], [0, 0, 1, 1], [], []>} : vector<128x256xbf16>, vector<256x32xbf16>, vector<128x32xf32> -> vector<128x32xf32>
    %c0_4 = arith.constant 0 : index
    %c0_5 = arith.constant 0 : index
    %6 = vector.load %arg7[%c0_4, %c0_5] : memref<1x32xf32, #tpu.memory_space<vmem>>, vector<1x32xf32>
    %cst_6 = arith.constant dense<0.000000e+00> : vector<32xf32>
    %7 = vector.multi_reduction <add>, %5, %cst_6 [0] : vector<128x32xf32> to vector<32xf32>
    %8 = vector.shape_cast %7 : vector<32xf32> to vector<1x32xf32>
    %9 = arith.addf %6, %8 : vector<1x32xf32>
    %c0_7 = arith.constant 0 : index
    %c0_8 = arith.constant 0 : index
    %10 = vector.load %arg7[%c0_7, %c0_8] : memref<1x32xf32, #tpu.memory_space<vmem>>, vector<1x32xf32>
    tpu.vector_store %arg7[%c0_7, %c0_8], %9 {strides = array<i32>} : memref<1x32xf32, #tpu.memory_space<vmem>>, vector<1x32xf32>,
    %c0_9 = arith.constant 0 : index
    %c0_10 = arith.constant 0 : index
    %11 = vector.load %arg8[%c0_9, %c0_10] : memref<1x32xf32, #tpu.memory_space<vmem>>, vector<1x32xf32>
    %12 = arith.mulf %5, %5 : vector<128x32xf32>
    %cst_11 = arith.constant dense<0.000000e+00> : vector<32xf32>
    %13 = vector.multi_reduction <add>, %12, %cst_11 [0] : vector<128x32xf32> to vector<32xf32>
    %14 = vector.shape_cast %13 : vector<32xf32> to vector<1x32xf32>
    %15 = arith.addf %11, %14 : vector<1x32xf32>
    %c0_12 = arith.constant 0 : index
    %c0_13 = arith.constant 0 : index
    %16 = vector.load %arg8[%c0_12, %c0_13] : memref<1x32xf32, #tpu.memory_space<vmem>>, vector<1x32xf32>
    tpu.vector_store %arg8[%c0_12, %c0_13], %15 {strides = array<i32>} : memref<1x32xf32, #tpu.memory_space<vmem>>, vector<1x32xf32>,
    %c128_i32 = arith.constant 128 : i32
    %17 = arith.muli %arg0, %c128_i32 : i32
    %18 = tpu.assume_multiple %17, 8 : i32
    %19 = arith.index_cast %18 : i32 to index
    %c0_14 = arith.constant 0 : index
    %20 = vector.load %arg6[%19, %c0_14] : memref<128x32xf32, #tpu.memory_space<vmem>>, vector<128x32xf32>
    tpu.vector_store %arg6[%19, %c0_14], %5 {strides = array<i32>} : memref<128x32xf32, #tpu.memory_space<vmem>>, vector<128x32xf32>,
    %c0_i32_15 = arith.constant 0 : i32
    %21 = arith.cmpi eq, %arg0, %c0_i32_15 : i32
    %22 = arith.extui %21 : i1 to i32
    %c0_i32_16 = arith.constant 0 : i32
    %23 = arith.cmpi ne, %22, %c0_i32_16 : i32
    scf.if %23 {
      %c0_17 = arith.constant 0 : index
      %c0_18 = arith.constant 0 : index
      %24 = vector.load %arg7[%c0_17, %c0_18] : memref<1x32xf32, #tpu.memory_space<vmem>>, vector<1x32xf32>
      %cst_19 = arith.constant 7.812500e-03 : f32
      %25 = vector.broadcast %cst_19 : f32 to vector<1x32xf32>
      %26 = arith.mulf %24, %25 : vector<1x32xf32>
      %c0_20 = arith.constant 0 : index
      %c0_21 = arith.constant 0 : index
      %27 = vector.load %arg8[%c0_20, %c0_21] : memref<1x32xf32, #tpu.memory_space<vmem>>, vector<1x32xf32>
      %cst_22 = arith.constant 7.812500e-03 : f32
      %28 = vector.broadcast %cst_22 : f32 to vector<1x32xf32>
      %29 = arith.mulf %27, %28 : vector<1x32xf32>
      %30 = arith.mulf %26, %26 : vector<1x32xf32>
      %31 = arith.subf %29, %30 : vector<1x32xf32>
      %c0_23 = arith.constant 0 : index
      %c0_24 = arith.constant 0 : index
      %32 = vector.load %arg3[%c0_23, %c0_24] : memref<1x32xf32, #tpu.memory_space<vmem>>, vector<1x32xf32>
      %cst_25 = arith.constant 9.99999974E-6 : f32
      %33 = vector.broadcast %cst_25 : f32 to vector<1x32xf32>
      %34 = arith.addf %31, %33 : vector<1x32xf32>
      %35 = math.rsqrt %34 : vector<1x32xf32>
      %36 = arith.mulf %32, %35 : vector<1x32xf32>
      %c0_26 = arith.constant 0 : index
      %c0_27 = arith.constant 0 : index
      %37 = vector.load %arg4[%c0_26, %c0_27] : memref<1x32xf32, #tpu.memory_space<vmem>>, vector<1x32xf32>
      %38 = arith.mulf %26, %36 : vector<1x32xf32>
      %39 = arith.subf %37, %38 : vector<1x32xf32>
      %c0_i32_28 = arith.constant 0 : i32
      %c128_i32_29 = arith.constant 128 : i32
      %40 = arith.muli %c0_i32_28, %c128_i32_29 : i32
      %41 = tpu.assume_multiple %40, 8 : i32
      %42 = arith.index_cast %41 : i32 to index
      %c0_30 = arith.constant 0 : index
      %43 = vector.load %arg6[%42, %c0_30] : memref<128x32xf32, #tpu.memory_space<vmem>>, vector<128x32xf32>
      %44 = vector.broadcast %36 : vector<1x32xf32> to vector<128x32xf32>
      %45 = arith.mulf %43, %44 : vector<128x32xf32>
      %46 = vector.broadcast %39 : vector<1x32xf32> to vector<128x32xf32>
      %47 = arith.addf %45, %46 : vector<128x32xf32>
      %cst_31 = arith.constant 0.000000e+00 : f32
      %48 = vector.broadcast %cst_31 : f32 to vector<128x32xf32>
      %49 = arith.cmpf oge, %47, %48 : vector<128x32xf32>
      %cst_32 = arith.constant 2.000000e-01 : f32
      %50 = vector.broadcast %cst_32 : f32 to vector<128x32xf32>
      %51 = arith.mulf %50, %47 : vector<128x32xf32>
      %52 = arith.select %49, %47, %51 : vector<128x32xi1>, vector<128x32xf32>
      %53 = arith.truncf %52 : vector<128x32xf32> to vector<128x32xbf16>
      %54 = arith.index_cast %41 : i32 to index
      %c0_33 = arith.constant 0 : index
      %55 = vector.load %arg5[%54, %c0_33] : memref<128x32xbf16, #tpu.memory_space<vmem>>, vector<128x32xbf16>
      tpu.vector_store %arg5[%54, %c0_33], %53 {strides = array<i32>} : memref<128x32xbf16, #tpu.memory_space<vmem>>, vector<128x32xbf16>,
      %c1_i32 = arith.constant 1 : i32
    } else {
    }
    return
  }
  func.func @transform_0(%arg0: i32) -> (i32, i32) {
    %c0_i32 = arith.constant 0 : i32
    %c0_i32_0 = arith.constant 0 : i32
    return %arg0, %c0_i32 : i32, i32
  }
  func.func @transform_1(%arg0: i32) -> (i32, i32) {
    %c0_i32 = arith.constant 0 : i32
    %c0_i32_0 = arith.constant 0 : i32
    %c0_i32_1 = arith.constant 0 : i32
    return %c0_i32, %c0_i32_0 : i32, i32
  }
  func.func @transform_2(%arg0: i32) -> (i32, i32) {
    %c0_i32 = arith.constant 0 : i32
    %c0_i32_0 = arith.constant 0 : i32
    %c0_i32_1 = arith.constant 0 : i32
    return %c0_i32, %c0_i32_0 : i32, i32
  }
  func.func @transform_3(%arg0: i32) -> (i32, i32) {
    %c0_i32 = arith.constant 0 : i32
    %c0_i32_0 = arith.constant 0 : i32
    %c0_i32_1 = arith.constant 0 : i32
    return %c0_i32, %c0_i32_0 : i32, i32
  }
  func.func @transform_4(%arg0: i32) -> (i32, i32) {
    %c0_i32 = arith.constant 0 : i32
    %c0_i32_0 = arith.constant 0 : i32
    %c0_i32_1 = arith.constant 0 : i32
    return %c0_i32, %c0_i32_0 : i32, i32
  }
}

module attributes {stable_mosaic.version = 11 : i64} {
  func.func @_conv_bn_leaky_fused_kernel(%arg0: i32, %arg1: memref<32x512xbf16, #tpu.memory_space<vmem>>, %arg2: memref<512x64xbf16, #tpu.memory_space<vmem>>, %arg3: memref<1x64xf32, #tpu.memory_space<vmem>>, %arg4: memref<1x64xf32, #tpu.memory_space<vmem>>, %arg5: memref<32x64xbf16, #tpu.memory_space<vmem>>, %arg6: memref<32x64xf32, #tpu.memory_space<vmem>>, %arg7: memref<1x64xf32, #tpu.memory_space<vmem>>, %arg8: memref<1x64xf32, #tpu.memory_space<vmem>>) attributes {dimension_semantics = [#tpu.dimension_semantics<arbitrary>], iteration_bounds = array<i64: 1>, scalar_prefetch = 0 : i64, scratch_operands = 3 : i64, tpu.core_type = #tpu.core_type<tc>, window_params = [{transform_indices = @transform_0, window_bounds = array<i64: 32, 512>}, {pipeline_mode = #tpu.pipeline_mode<synchronous>, transform_indices = @transform_1, window_bounds = array<i64: 512, 64>}, {pipeline_mode = #tpu.pipeline_mode<synchronous>, transform_indices = @transform_2, window_bounds = array<i64: 1, 64>}, {pipeline_mode = #tpu.pipeline_mode<synchronous>, transform_indices = @transform_3, window_bounds = array<i64: 1, 64>}, {pipeline_mode = #tpu.pipeline_mode<synchronous>, transform_indices = @transform_4, window_bounds = array<i64: 32, 64>}]} {
    %c0_i32 = arith.constant 0 : i32
    %0 = arith.cmpi eq, %arg0, %c0_i32 : i32
    %1 = arith.extui %0 : i1 to i32
    %c0_i32_0 = arith.constant 0 : i32
    %2 = arith.cmpi ne, %1, %c0_i32_0 : i32
    scf.if %2 {
      %cst_17 = arith.constant 0.000000e+00 : f32
      %24 = vector.broadcast %cst_17 : f32 to vector<1x64xf32>
      %c0_18 = arith.constant 0 : index
      %c0_19 = arith.constant 0 : index
      %25 = vector.load %arg7[%c0_18, %c0_19] : memref<1x64xf32, #tpu.memory_space<vmem>>, vector<1x64xf32>
      tpu.vector_store %arg7[%c0_18, %c0_19], %24 {strides = array<i32>} : memref<1x64xf32, #tpu.memory_space<vmem>>, vector<1x64xf32>,
      %cst_20 = arith.constant 0.000000e+00 : f32
      %26 = vector.broadcast %cst_20 : f32 to vector<1x64xf32>
      %c0_21 = arith.constant 0 : index
      %c0_22 = arith.constant 0 : index
      %27 = vector.load %arg8[%c0_21, %c0_22] : memref<1x64xf32, #tpu.memory_space<vmem>>, vector<1x64xf32>
      tpu.vector_store %arg8[%c0_21, %c0_22], %26 {strides = array<i32>} : memref<1x64xf32, #tpu.memory_space<vmem>>, vector<1x64xf32>,
    } else {
    }
    %c0 = arith.constant 0 : index
    %c0_1 = arith.constant 0 : index
    %3 = vector.load %arg1[%c0, %c0_1] : memref<32x512xbf16, #tpu.memory_space<vmem>>, vector<32x512xbf16>
    %c0_2 = arith.constant 0 : index
    %c0_3 = arith.constant 0 : index
    %4 = vector.load %arg2[%c0_2, %c0_3] : memref<512x64xbf16, #tpu.memory_space<vmem>>, vector<512x64xbf16>
    %cst = arith.constant dense<0.000000e+00> : vector<32x64xf32>
    %5 = tpu.matmul %3, %4, %cst {dimension_numbers = #tpu.dot_dimension_numbers<[1], [0], [0], [1], [0, 0, 1, 1], [], []>} : vector<32x512xbf16>, vector<512x64xbf16>, vector<32x64xf32> -> vector<32x64xf32>
    %c0_4 = arith.constant 0 : index
    %c0_5 = arith.constant 0 : index
    %6 = vector.load %arg7[%c0_4, %c0_5] : memref<1x64xf32, #tpu.memory_space<vmem>>, vector<1x64xf32>
    %cst_6 = arith.constant dense<0.000000e+00> : vector<64xf32>
    %7 = vector.multi_reduction <add>, %5, %cst_6 [0] : vector<32x64xf32> to vector<64xf32>
    %8 = vector.shape_cast %7 : vector<64xf32> to vector<1x64xf32>
    %9 = arith.addf %6, %8 : vector<1x64xf32>
    %c0_7 = arith.constant 0 : index
    %c0_8 = arith.constant 0 : index
    %10 = vector.load %arg7[%c0_7, %c0_8] : memref<1x64xf32, #tpu.memory_space<vmem>>, vector<1x64xf32>
    tpu.vector_store %arg7[%c0_7, %c0_8], %9 {strides = array<i32>} : memref<1x64xf32, #tpu.memory_space<vmem>>, vector<1x64xf32>,
    %c0_9 = arith.constant 0 : index
    %c0_10 = arith.constant 0 : index
    %11 = vector.load %arg8[%c0_9, %c0_10] : memref<1x64xf32, #tpu.memory_space<vmem>>, vector<1x64xf32>
    %12 = arith.mulf %5, %5 : vector<32x64xf32>
    %cst_11 = arith.constant dense<0.000000e+00> : vector<64xf32>
    %13 = vector.multi_reduction <add>, %12, %cst_11 [0] : vector<32x64xf32> to vector<64xf32>
    %14 = vector.shape_cast %13 : vector<64xf32> to vector<1x64xf32>
    %15 = arith.addf %11, %14 : vector<1x64xf32>
    %c0_12 = arith.constant 0 : index
    %c0_13 = arith.constant 0 : index
    %16 = vector.load %arg8[%c0_12, %c0_13] : memref<1x64xf32, #tpu.memory_space<vmem>>, vector<1x64xf32>
    tpu.vector_store %arg8[%c0_12, %c0_13], %15 {strides = array<i32>} : memref<1x64xf32, #tpu.memory_space<vmem>>, vector<1x64xf32>,
    %c32_i32 = arith.constant 32 : i32
    %17 = arith.muli %arg0, %c32_i32 : i32
    %18 = tpu.assume_multiple %17, 8 : i32
    %19 = arith.index_cast %18 : i32 to index
    %c0_14 = arith.constant 0 : index
    %20 = vector.load %arg6[%19, %c0_14] : memref<32x64xf32, #tpu.memory_space<vmem>>, vector<32x64xf32>
    tpu.vector_store %arg6[%19, %c0_14], %5 {strides = array<i32>} : memref<32x64xf32, #tpu.memory_space<vmem>>, vector<32x64xf32>,
    %c0_i32_15 = arith.constant 0 : i32
    %21 = arith.cmpi eq, %arg0, %c0_i32_15 : i32
    %22 = arith.extui %21 : i1 to i32
    %c0_i32_16 = arith.constant 0 : i32
    %23 = arith.cmpi ne, %22, %c0_i32_16 : i32
    scf.if %23 {
      %c0_17 = arith.constant 0 : index
      %c0_18 = arith.constant 0 : index
      %24 = vector.load %arg7[%c0_17, %c0_18] : memref<1x64xf32, #tpu.memory_space<vmem>>, vector<1x64xf32>
      %cst_19 = arith.constant 3.125000e-02 : f32
      %25 = vector.broadcast %cst_19 : f32 to vector<1x64xf32>
      %26 = arith.mulf %24, %25 : vector<1x64xf32>
      %c0_20 = arith.constant 0 : index
      %c0_21 = arith.constant 0 : index
      %27 = vector.load %arg8[%c0_20, %c0_21] : memref<1x64xf32, #tpu.memory_space<vmem>>, vector<1x64xf32>
      %cst_22 = arith.constant 3.125000e-02 : f32
      %28 = vector.broadcast %cst_22 : f32 to vector<1x64xf32>
      %29 = arith.mulf %27, %28 : vector<1x64xf32>
      %30 = arith.mulf %26, %26 : vector<1x64xf32>
      %31 = arith.subf %29, %30 : vector<1x64xf32>
      %c0_23 = arith.constant 0 : index
      %c0_24 = arith.constant 0 : index
      %32 = vector.load %arg3[%c0_23, %c0_24] : memref<1x64xf32, #tpu.memory_space<vmem>>, vector<1x64xf32>
      %cst_25 = arith.constant 9.99999974E-6 : f32
      %33 = vector.broadcast %cst_25 : f32 to vector<1x64xf32>
      %34 = arith.addf %31, %33 : vector<1x64xf32>
      %35 = math.rsqrt %34 : vector<1x64xf32>
      %36 = arith.mulf %32, %35 : vector<1x64xf32>
      %c0_26 = arith.constant 0 : index
      %c0_27 = arith.constant 0 : index
      %37 = vector.load %arg4[%c0_26, %c0_27] : memref<1x64xf32, #tpu.memory_space<vmem>>, vector<1x64xf32>
      %38 = arith.mulf %26, %36 : vector<1x64xf32>
      %39 = arith.subf %37, %38 : vector<1x64xf32>
      %c0_i32_28 = arith.constant 0 : i32
      %c32_i32_29 = arith.constant 32 : i32
      %40 = arith.muli %c0_i32_28, %c32_i32_29 : i32
      %41 = tpu.assume_multiple %40, 8 : i32
      %42 = arith.index_cast %41 : i32 to index
      %c0_30 = arith.constant 0 : index
      %43 = vector.load %arg6[%42, %c0_30] : memref<32x64xf32, #tpu.memory_space<vmem>>, vector<32x64xf32>
      %44 = vector.broadcast %36 : vector<1x64xf32> to vector<32x64xf32>
      %45 = arith.mulf %43, %44 : vector<32x64xf32>
      %46 = vector.broadcast %39 : vector<1x64xf32> to vector<32x64xf32>
      %47 = arith.addf %45, %46 : vector<32x64xf32>
      %cst_31 = arith.constant 0.000000e+00 : f32
      %48 = vector.broadcast %cst_31 : f32 to vector<32x64xf32>
      %49 = arith.cmpf oge, %47, %48 : vector<32x64xf32>
      %cst_32 = arith.constant 2.000000e-01 : f32
      %50 = vector.broadcast %cst_32 : f32 to vector<32x64xf32>
      %51 = arith.mulf %50, %47 : vector<32x64xf32>
      %52 = arith.select %49, %47, %51 : vector<32x64xi1>, vector<32x64xf32>
      %53 = arith.truncf %52 : vector<32x64xf32> to vector<32x64xbf16>
      %54 = arith.index_cast %41 : i32 to index
      %c0_33 = arith.constant 0 : index
      %55 = vector.load %arg5[%54, %c0_33] : memref<32x64xbf16, #tpu.memory_space<vmem>>, vector<32x64xbf16>
      tpu.vector_store %arg5[%54, %c0_33], %53 {strides = array<i32>} : memref<32x64xbf16, #tpu.memory_space<vmem>>, vector<32x64xbf16>,
      %c1_i32 = arith.constant 1 : i32
    } else {
    }
    return
  }
  func.func @transform_0(%arg0: i32) -> (i32, i32) {
    %c0_i32 = arith.constant 0 : i32
    %c0_i32_0 = arith.constant 0 : i32
    return %arg0, %c0_i32 : i32, i32
  }
  func.func @transform_1(%arg0: i32) -> (i32, i32) {
    %c0_i32 = arith.constant 0 : i32
    %c0_i32_0 = arith.constant 0 : i32
    %c0_i32_1 = arith.constant 0 : i32
    return %c0_i32, %c0_i32_0 : i32, i32
  }
  func.func @transform_2(%arg0: i32) -> (i32, i32) {
    %c0_i32 = arith.constant 0 : i32
    %c0_i32_0 = arith.constant 0 : i32
    %c0_i32_1 = arith.constant 0 : i32
    return %c0_i32, %c0_i32_0 : i32, i32
  }
  func.func @transform_3(%arg0: i32) -> (i32, i32) {
    %c0_i32 = arith.constant 0 : i32
    %c0_i32_0 = arith.constant 0 : i32
    %c0_i32_1 = arith.constant 0 : i32
    return %c0_i32, %c0_i32_0 : i32, i32
  }
  func.func @transform_4(%arg0: i32) -> (i32, i32) {
    %c0_i32 = arith.constant 0 : i32
    %c0_i32_0 = arith.constant 0 : i32
    %c0_i32_1 = arith.constant 0 : i32
    return %c0_i32, %c0_i32_0 : i32, i32
  }
}

module attributes {stable_mosaic.version = 11 : i64} {
  func.func @_conv_act_kernel(%arg0: i32, %arg1: memref<8x1024xbf16, #tpu.memory_space<vmem>>, %arg2: memref<1024x1xbf16, #tpu.memory_space<vmem>>, %arg3: memref<8x1xf32, #tpu.memory_space<vmem>>) attributes {dimension_semantics = [#tpu.dimension_semantics<parallel>], iteration_bounds = array<i64: 1>, scalar_prefetch = 0 : i64, scratch_operands = 0 : i64, tpu.core_type = #tpu.core_type<tc>, window_params = [{transform_indices = @transform_0, window_bounds = array<i64: 8, 1024>}, {pipeline_mode = #tpu.pipeline_mode<synchronous>, transform_indices = @transform_1, window_bounds = array<i64: 1024, 1>}, {transform_indices = @transform_2, window_bounds = array<i64: 8, 1>}]} {
    %c0 = arith.constant 0 : index
    %c0_0 = arith.constant 0 : index
    %0 = vector.load %arg1[%c0, %c0_0] : memref<8x1024xbf16, #tpu.memory_space<vmem>>, vector<8x1024xbf16>
    %c0_1 = arith.constant 0 : index
    %c0_2 = arith.constant 0 : index
    %1 = vector.load %arg2[%c0_1, %c0_2] : memref<1024x1xbf16, #tpu.memory_space<vmem>>, vector<1024x1xbf16>
    %cst = arith.constant dense<0.000000e+00> : vector<8x1xf32>
    %2 = tpu.matmul %0, %1, %cst {dimension_numbers = #tpu.dot_dimension_numbers<[1], [0], [0], [1], [0, 0, 1, 1], [], []>} : vector<8x1024xbf16>, vector<1024x1xbf16>, vector<8x1xf32> -> vector<8x1xf32>
    %3 = arith.negf %2 : vector<8x1xf32>
    %4 = math.exp %3 : vector<8x1xf32>
    %cst_3 = arith.constant 1.000000e+00 : f32
    %5 = vector.broadcast %cst_3 : f32 to vector<8x1xf32>
    %6 = arith.addf %5, %4 : vector<8x1xf32>
    %7 = arith.divf %5, %6 : vector<8x1xf32>
    %c0_4 = arith.constant 0 : index
    %c0_5 = arith.constant 0 : index
    %8 = vector.load %arg3[%c0_4, %c0_5] : memref<8x1xf32, #tpu.memory_space<vmem>>, vector<8x1xf32>
    tpu.vector_store %arg3[%c0_4, %c0_5], %7 {strides = array<i32>} : memref<8x1xf32, #tpu.memory_space<vmem>>, vector<8x1xf32>,
    return
  }
  func.func @transform_0(%arg0: i32) -> (i32, i32) {
    %c0_i32 = arith.constant 0 : i32
    %c0_i32_0 = arith.constant 0 : i32
    return %arg0, %c0_i32 : i32, i32
  }
  func.func @transform_1(%arg0: i32) -> (i32, i32) {
    %c0_i32 = arith.constant 0 : i32
    %c0_i32_0 = arith.constant 0 : i32
    %c0_i32_1 = arith.constant 0 : i32
    return %c0_i32, %c0_i32_0 : i32, i32
  }
  func.func @transform_2(%arg0: i32) -> (i32, i32) {
    %c0_i32 = arith.constant 0 : i32
    %c0_i32_0 = arith.constant 0 : i32
    return %arg0, %c0_i32 : i32, i32
  }
}

</mosaic_0001>

<bundles_post_ra>
// kernel: discriminator_forward.5
= control target key start
LH: loop header
LB: loop body
LE: loop exit
PB: predicated region body
PF: predicated region fallthrough
CT: control target
= control target key end

     0   :  { %s3024_s9 = smov 0   ;;  %s3397_s0 = inlined_call_operand.vmem [shape: bf16[2048,128], index: 0, kind: input, shape index: {}]   ;;  %s3398_s1 = inlined_call_operand.vmem [shape: bf16[128,8], index: 1, kind: input, shape index: {}]   ;;  %s3399_s2 = inlined_call_operand.vmem [shape: bf16[2048,8], index: 2, kind: output, shape index: {}]  }
   0x1 LB: > { %s2350_s10 = sadd.s32 4294967295, %s3007_s9   ;;  %p2354_p0 = scmp.ge.s32.totalorder %s3007_s9, 1  ;;  %s3007_s9 = sphi %s3024_s9, %s12_s9  }
   0x2   : > { %p113_p1 = scmp.lt.s32.totalorder %s3007_s9, 3 }
   0x4   : > { %p114_p2 = pnand %p2354_p0, %p113_p1 }
   0x5   : > { %v2929_v0 = vld [vmem:[%s3398_s1] sm:$0xff] (!%p114_p2)   ;;  %s2355_s13 = sshll.u32 (!%p114_p2), %s2350_s10, 7  ;;  %v2930_v1 = vld [vmem:[%s3398_s1 + $0x8] sm:$0xff] (!%p114_p2)   ;;  %v2931_v2 = vld [vmem:[%s3398_s1 + $0x10] sm:$0xff] (!%p114_p2)   ;;  %vm2165_vm2 = vcmask (!%p114_p2), 60416  }
   0x6   : > { %117 = sbr.rel (%p114_p2) target bundleno = 386 (0x182), region = 28  ;;  %p136_p3 = scmp.lt.s32.totalorder (!%p114_p2), %s2355_s13, 255  ;;  %2761 = vmatprep.subr.bf16.mxu0 (!%p114_p2), %v2929_v0  ;;  %2905 = vmatprep.subr.bf16.mxu1 (!%p114_p2), %v2929_v0  ;;  %v2932_v3 = vld [vmem:[%s3398_s1 + $0x18] sm:$0xff] (!%p114_p2)   ;;  %v2933_v6 = vld [vmem:[%s3398_s1 + $0x20] sm:$0xff] (!%p114_p2)   ;;  %v2934_v7 = vld [vmem:[%s3398_s1 + $0x28] sm:$0xff] (!%p114_p2)  }
   0x7   : > { %2762 = vmatpush3.bf16.msra.mxu0 (!%p114_p2), %v2929_v0  ;;  %2913 = vmatpush3.bf16.msra.mxu1 (!%p114_p2), %v2929_v0  ;;  %v2935_v8 = vld [vmem:[%s3398_s1 + $0x30] sm:$0xff] (!%p114_p2)   ;;  %v2936_v9 = vld [vmem:[%s3398_s1 + $0x38] sm:$0xff] (!%p114_p2)  }
   0x8   : > { %2763 = vmatprep.subr.bf16.mxu0 (!%p114_p2), %v2930_v1  ;;  %2906 = vmatprep.subr.bf16.mxu1 (!%p114_p2), %v2930_v1 }
   0xb   : > { %2764 = vmatpush3.bf16.msra.mxu0 (!%p114_p2), %v2930_v1  ;;  %2914 = vmatpush3.bf16.msra.mxu1 (!%p114_p2), %v2930_v1 }
   0xc   : > { %2765 = vmatprep.subr.bf16.mxu0 (!%p114_p2), %v2931_v2  ;;  %2907 = vmatprep.subr.bf16.mxu1 (!%p114_p2), %v2931_v2 }
   0xd   : > { %s3401_s13 = smov (!%p136_p3, %s2355_s13), 255 }
   0xe   : > { %s2356_s18 = sshll.u32 %s3401_s13, 2 }
   0xf   : > { %s3049_s21 = scalar_lea.vmem %s3397_s0, %s2356_s18  ;;  %2766 = vmatpush3.bf16.msra.mxu0 %v2931_v2  ;;  %2915 = vmatpush3.bf16.msra.mxu1 %v2931_v2  ;;  %s3135_s6 = scalar_lea.vmem %s3399_s2, %s2356_s18 }
  0x10   : > { %v2937_v4 = vld [vmem:[%s3049_s21] sm:$0xff]   ;;  %2767 = vmatprep.subr.bf16.mxu0 %v2932_v3  ;;  %2908 = vmatprep.subr.bf16.mxu1 %v2932_v3  ;;  %v2939_v10 = vld [vmem:[%s3049_s21 + $0x8] sm:$0xff]   ;;  %v2941_v12 = vld [vmem:[%s3049_s21 + $0x10] sm:$0xff]  }
  0x11   : > { %v2938_v5 = vld [vmem:[%s3049_s21 + $0x100] sm:$0xff]   ;;  %2777 = vmatprep.mubr.bf16.mxu0 %v2937_v4  ;;  %v2940_v11 = vld [vmem:[%s3049_s21 + $0x108] sm:$0xff]   ;;  %v2942_v13 = vld [vmem:[%s3049_s21 + $0x110] sm:$0xff]  }
  0x12   : > { %2841 = vmatprep.mubr.bf16.mxu1 %v2938_v5  ;;  %v2943_v14 = vld [vmem:[%s3049_s21 + $0x18] sm:$0xff]   ;;  %v2945_v16 = vld [vmem:[%s3049_s21 + $0x20] sm:$0xff]   ;;  %v2947_v18 = vld [vmem:[%s3049_s21 + $0x28] sm:$0xff]  }
  0x13   : > { %2768 = vmatpush3.bf16.msra.mxu0 %v2932_v3  ;;  %2916 = vmatpush3.bf16.msra.mxu1 %v2932_v3  ;;  %v2944_v15 = vld [vmem:[%s3049_s21 + $0x118] sm:$0xff]   ;;  %v2946_v17 = vld [vmem:[%s3049_s21 + $0x120] sm:$0xff]   ;;  %v2948_v19 = vld [vmem:[%s3049_s21 + $0x128] sm:$0xff]  }
  0x14   : > { %2769 = vmatprep.subr.bf16.mxu0 %v2933_v6  ;;  %2909 = vmatprep.subr.bf16.mxu1 %v2933_v6  ;;  %v2949_v20 = vld [vmem:[%s3049_s21 + $0x30] sm:$0xff]   ;;  %v2951_v22 = vld [vmem:[%s3049_s21 + $0x38] sm:$0xff]   ;;  %v2953_v24 = vld [vmem:[%s3049_s21 + $0x40] sm:$0xff]  }
  0x15   : > { %v2950_v21 = vld [vmem:[%s3049_s21 + $0x130] sm:$0xff]   ;;  %v2952_v23 = vld [vmem:[%s3049_s21 + $0x138] sm:$0xff]   ;;  %v2954_v25 = vld [vmem:[%s3049_s21 + $0x140] sm:$0xff]  }
  0x16   : > { %v2955_v26 = vld [vmem:[%s3049_s21 + $0x48] sm:$0xff]   ;;  %v2957_v28 = vld [vmem:[%s3049_s21 + $0x50] sm:$0xff]   ;;  %v2959_v30 = vld [vmem:[%s3049_s21 + $0x58] sm:$0xff]  }
  0x17   : > { %2770 = vmatpush3.bf16.msra.mxu0 %v2933_v6  ;;  %2917 = vmatpush3.bf16.msra.mxu1 %v2933_v6  ;;  %v2956_v27 = vld [vmem:[%s3049_s21 + $0x148] sm:$0xff]   ;;  %v2958_v29 = vld [vmem:[%s3049_s21 + $0x150] sm:$0xff]   ;;  %v2960_v31 = vld [vmem:[%s3049_s21 + $0x158] sm:$0xff]  }
  0x18   : > { %2771 = vmatprep.subr.bf16.mxu0 %v2934_v7  ;;  %2910 = vmatprep.subr.bf16.mxu1 %v2934_v7  ;;  %v2961_v32 = vld [vmem:[%s3049_s21 + $0x60] sm:$0xff]   ;;  %v2963_v34 = vld [vmem:[%s3049_s21 + $0x68] sm:$0xff]   ;;  %v2965_v36 = vld [vmem:[%s3049_s21 + $0x70] sm:$0xff]  }
  0x19   : > { %v2962_v33 = vld [vmem:[%s3049_s21 + $0x160] sm:$0xff]   ;;  %v2964_v35 = vld [vmem:[%s3049_s21 + $0x168] sm:$0xff]   ;;  %v2966_v37 = vld [vmem:[%s3049_s21 + $0x170] sm:$0xff]  }
  0x1a   : > { %v2967_v38 = vld [vmem:[%s3049_s21 + $0x78] sm:$0xff]   ;;  %v2969_v40 = vld [vmem:[%s3049_s21 + $0x80] sm:$0xff]   ;;  %v2971_v42 = vld [vmem:[%s3049_s21 + $0x88] sm:$0xff]  }
  0x1b   : > { %2772 = vmatpush3.bf16.msra.mxu0 %v2934_v7  ;;  %2918 = vmatpush3.bf16.msra.mxu1 %v2934_v7  ;;  %v2968_v39 = vld [vmem:[%s3049_s21 + $0x178] sm:$0xff]   ;;  %v2970_v41 = vld [vmem:[%s3049_s21 + $0x180] sm:$0xff]   ;;  %v2972_v43 = vld [vmem:[%s3049_s21 + $0x188] sm:$0xff]  }
  0x1c   : > { %2773 = vmatprep.subr.bf16.mxu0 %v2935_v8  ;;  %2911 = vmatprep.subr.bf16.mxu1 %v2935_v8  ;;  %v2973_v44 = vld [vmem:[%s3049_s21 + $0x90] sm:$0xff]   ;;  %v2975_v46 = vld [vmem:[%s3049_s21 + $0x98] sm:$0xff]   ;;  %v2977_v48 = vld [vmem:[%s3049_s21 + $0xa0] sm:$0xff]  }
  0x1d   : > { %v2974_v45 = vld [vmem:[%s3049_s21 + $0x190] sm:$0xff]   ;;  %v2976_v47 = vld [vmem:[%s3049_s21 + $0x198] sm:$0xff]   ;;  %v2978_v49 = vld [vmem:[%s3049_s21 + $0x1a0] sm:$0xff]  }
  0x1e   : > { %v2979_v50 = vld [vmem:[%s3049_s21 + $0xa8] sm:$0xff]   ;;  %v2981_v52 = vld [vmem:[%s3049_s21 + $0xb0] sm:$0xff]   ;;  %v2983_v54 = vld [vmem:[%s3049_s21 + $0xb8] sm:$0xff]  }
  0x1f   : > { %2774 = vmatpush3.bf16.msra.mxu0 %v2935_v8  ;;  %2919 = vmatpush3.bf16.msra.mxu1 %v2935_v8  ;;  %v2980_v51 = vld [vmem:[%s3049_s21 + $0x1a8] sm:$0xff]   ;;  %v2982_v53 = vld [vmem:[%s3049_s21 + $0x1b0] sm:$0xff]   ;;  %v2984_v55 = vld [vmem:[%s3049_s21 + $0x1b8] sm:$0xff]  }
  0x20   : > { %2775 = vmatprep.subr.bf16.mxu0 %v2936_v9  ;;  %2912 = vmatprep.subr.bf16.mxu1 %v2936_v9  ;;  %v2985_v56 = vld [vmem:[%s3049_s21 + $0xc0] sm:$0xff]   ;;  %v2987_v58 = vld [vmem:[%s3049_s21 + $0xc8] sm:$0xff]   ;;  %v2989_v60 = vld [vmem:[%s3049_s21 + $0xd0] sm:$0xff]  }
  0x21   : > { %v2986_v57 = vld [vmem:[%s3049_s21 + $0x1c0] sm:$0xff]   ;;  %v2988_v59 = vld [vmem:[%s3049_s21 + $0x1c8] sm:$0xff]   ;;  %v2990_v61 = vld [vmem:[%s3049_s21 + $0x1d0] sm:$0xff]  }
  0x22   : > { %v2991_v62 = vld [vmem:[%s3049_s21 + $0xd8] sm:$0xff]   ;;  %v2993_v0 = vld [vmem:[%s3049_s21 + $0xe0] sm:$0xff]   ;;  %v2995_v2 = vld [vmem:[%s3049_s21 + $0xe8] sm:$0xff]  }
  0x23   : > { %2776 = vmatpush3.bf16.msra.mxu0 %v2936_v9  ;;  %2920 = vmatpush3.bf16.msra.mxu1 %v2936_v9  ;;  %v2992_v63 = vld [vmem:[%s3049_s21 + $0x1d8] sm:$0xff]   ;;  %v2994_v1 = vld [vmem:[%s3049_s21 + $0x1e0] sm:$0xff]   ;;  %v2996_v3 = vld [vmem:[%s3049_s21 + $0x1e8] sm:$0xff]  }
  0x24   : > { %v2997_v4 = vld [vmem:[%s3049_s21 + $0xf0] sm:$0xff]   ;;  %v2999_v6 = vld [vmem:[%s3049_s21 + $0xf8] sm:$0xff]  }
  0x25   : > { %v2998_v5 = vld [vmem:[%s3049_s21 + $0x1f0] sm:$0xff]   ;;  %v3000_v7 = vld [vmem:[%s3049_s21 + $0x1f8] sm:$0xff]  }
  0x26   : > { %2778 = vmatmul.mubr.bf16.vlgmr.msra.gmra.mrb[0].mxu0 %v2939_v10  ;;  %2842 = vmatmul.mubr.bf16.vlgmr.msra.gmra.mrb[0].mxu1 %v2940_v11 }
  0x27   : > { %2781 = vmatprep.mubr.bf16.mxu0 %v2941_v12  ;;  %2845 = vmatprep.mubr.bf16.mxu1 %v2942_v13 }
  0x2e   : > { %2782 = vmatmul.mubr.bf16.gmra.mrb[4].mxu0 %v2943_v14  ;;  %2846 = vmatmul.mubr.bf16.gmra.mrb[4].mxu1 %v2944_v15 }
  0x2f   : > { %2785 = vmatprep.mubr.bf16.mxu0 %v2945_v16  ;;  %2849 = vmatprep.mubr.bf16.mxu1 %v2946_v17 }
  0x36   : > { %2786 = vmatmul.mubr.bf16.gmra.mrb[8].mxu0 %v2947_v18  ;;  %2850 = vmatmul.mubr.bf16.gmra.mrb[8].mxu1 %v2948_v19 }
  0x37   : > { %2789 = vmatprep.mubr.bf16.mxu0 %v2949_v20  ;;  %2853 = vmatprep.mubr.bf16.mxu1 %v2950_v21 }
  0x3e   : > { %2790 = vmatmul.mubr.bf16.gmra.mrb[12].mxu0 %v2951_v22  ;;  %2854 = vmatmul.mubr.bf16.gmra.mrb[12].mxu1 %v2952_v23 }
  0x3f   : > { %2793 = vmatprep.mubr.bf16.mxu0 %v2953_v24  ;;  %2857 = vmatprep.mubr.bf16.mxu1 %v2954_v25 }
  0x46   : > { %2794 = vmatmul.mubr.bf16.gmra.mrb[16].mxu0 %v2955_v26  ;;  %2858 = vmatmul.mubr.bf16.gmra.mrb[16].mxu1 %v2956_v27 }
  0x47   : > { %2797 = vmatprep.mubr.bf16.mxu0 %v2957_v28  ;;  %2861 = vmatprep.mubr.bf16.mxu1 %v2958_v29 }
  0x4e   : > { %2798 = vmatmul.mubr.bf16.gmra.mrb[20].mxu0 %v2959_v30  ;;  %2862 = vmatmul.mubr.bf16.gmra.mrb[20].mxu1 %v2960_v31 }
  0x4f   : > { %2801 = vmatprep.mubr.bf16.mxu0 %v2961_v32  ;;  %2865 = vmatprep.mubr.bf16.mxu1 %v2962_v33 }
  0x56   : > { %2802 = vmatmul.mubr.bf16.gmra.mrb[24].mxu0 %v2963_v34  ;;  %2866 = vmatmul.mubr.bf16.gmra.mrb[24].mxu1 %v2964_v35 }
  0x57   : > { %2805 = vmatprep.mubr.bf16.mxu0 %v2965_v36  ;;  %2869 = vmatprep.mubr.bf16.mxu1 %v2966_v37 }
  0x5e   : > { %2806 = vmatmul.mubr.bf16.gmra.mrb[28].mxu0 %v2967_v38  ;;  %2870 = vmatmul.mubr.bf16.gmra.mrb[28].mxu1 %v2968_v39 }
  0x5f   : > { %2809 = vmatprep.mubr.bf16.mxu0 %v2969_v40  ;;  %2873 = vmatprep.mubr.bf16.mxu1 %v2970_v41 }
  0x66   : > { %2810 = vmatmul.mubr.bf16.gmra.mrb[32].mxu0 %v2971_v42  ;;  %2874 = vmatmul.mubr.bf16.gmra.mrb[32].mxu1 %v2972_v43 }
  0x67   : > { %2813 = vmatprep.mubr.bf16.mxu0 %v2973_v44  ;;  %2877 = vmatprep.mubr.bf16.mxu1 %v2974_v45 }
  0x6e   : > { %2814 = vmatmul.mubr.bf16.gmra.mrb[36].mxu0 %v2975_v46  ;;  %2878 = vmatmul.mubr.bf16.gmra.mrb[36].mxu1 %v2976_v47 }
  0x6f   : > { %2817 = vmatprep.mubr.bf16.mxu0 %v2977_v48  ;;  %2881 = vmatprep.mubr.bf16.mxu1 %v2978_v49 }
  0x76   : > { %2818 = vmatmul.mubr.bf16.gmra.mrb[40].mxu0 %v2979_v50  ;;  %2882 = vmatmul.mubr.bf16.gmra.mrb[40].mxu1 %v2980_v51 }
  0x77   : > { %2821 = vmatprep.mubr.bf16.mxu0 %v2981_v52  ;;  %2885 = vmatprep.mubr.bf16.mxu1 %v2982_v53 }
  0x7e   : > { %2822 = vmatmul.mubr.bf16.gmra.mrb[44].mxu0 %v2983_v54  ;;  %2886 = vmatmul.mubr.bf16.gmra.mrb[44].mxu1 %v2984_v55 }
  0x7f   : > { %2825 = vmatprep.mubr.bf16.mxu0 %v2985_v56  ;;  %2889 = vmatprep.mubr.bf16.mxu1 %v2986_v57 }
  0x86   : > { %2826 = vmatmul.mubr.bf16.gmra.mrb[48].mxu0 %v2987_v58  ;;  %2890 = vmatmul.mubr.bf16.gmra.mrb[48].mxu1 %v2988_v59 }
  0x87   : > { %2829 = vmatprep.mubr.bf16.mxu0 %v2989_v60  ;;  %2893 = vmatprep.mubr.bf16.mxu1 %v2990_v61 }
  0x8e   : > { %2830 = vmatmul.mubr.bf16.gmra.mrb[52].mxu0 %v2991_v62  ;;  %2894 = vmatmul.mubr.bf16.gmra.mrb[52].mxu1 %v2992_v63 }
  0x8f   : > { %2833 = vmatprep.mubr.bf16.mxu0 %v2993_v0  ;;  %2897 = vmatprep.mubr.bf16.mxu1 %v2994_v1 }
  0x96   : > { %2834 = vmatmul.mubr.bf16.gmra.mrb[56].mxu0 %v2995_v2  ;;  %2898 = vmatmul.mubr.bf16.gmra.mrb[56].mxu1 %v2996_v3 }
  0x97   : > { %2837 = vmatprep.mubr.bf16.mxu0 %v2997_v4  ;;  %2901 = vmatprep.mubr.bf16.mxu1 %v2998_v5 }
  0x9e   : > { %2838 = vmatmul.mubr.bf16.gmra.mrb[60].mxu0 %v2999_v6  ;;  %2902 = vmatmul.mubr.bf16.gmra.mrb[60].mxu1 %v3000_v7 }
  0xf9   : > { %v2779_v8 = vpop.f32.mrb[0].mxu0  ;;  %v2843_v9 = vpop.f32.mrb[0].mxu1 }
  0xfa   : > { %vm1271_vm0 = vcmp.ge.f32.partialorder %v2779_v8, 0.0  ;;  %v1399_v10 = vmul.f32 0.2, %v2779_v8  ;;  %vm1335_vm1 = vcmp.ge.f32.partialorder %v2843_v9, 0.0  ;;  %v1463_v11 = vmul.f32 0.2, %v2843_v9 }
  0xfb   : > { %v758_v12 = vpop.f32.mrb[1].mxu0  ;;  %v1014_v13 = vpop.f32.mrb[1].mxu1 }
  0xfc   : > { %v1527_v14 = vsel %vm1271_vm0, %v2779_v8, %v1399_v10  ;;  %v1591_v15 = vsel %vm1335_vm1, %v2843_v9, %v1463_v11  ;;  %vm1269_vm3 = vcmp.ge.f32.partialorder %v758_v12, 0.0  ;;  %v1397_v16 = vmul.f32 0.2, %v758_v12  ;;  %v2780_v17 = vpop.f32.mrb[2].mxu0  ;;  %v2844_v18 = vpop.f32.mrb[2].mxu1 }
  0xfd   : > { %v2563_v19 = vpack.c.bf16 %v1527_v14, %v1527_v14  ;;  %v2627_v20 = vpack.c.bf16 %v1591_v15, %v1591_v15  ;;  %vm1333_vm4 = vcmp.ge.f32.partialorder %v1014_v13, 0.0  ;;  %v1461_v21 = vmul.f32 0.2, %v1014_v13  ;;  %v761_v22 = vpop.f32.mrb[3].mxu0  ;;  %v1017_v23 = vpop.f32.mrb[3].mxu1 }
  0xfe   : > { %v1525_v24 = vsel %vm1269_vm3, %v758_v12, %v1397_v16  ;;  %vm1272_vm5 = vcmp.ge.f32.partialorder %v2780_v17, 0.0  ;;  %v1400_v25 = vmul.f32 0.2, %v2780_v17  ;;  %vm1336_vm6 = vcmp.ge.f32.partialorder %v2844_v18, 0.0 }
  0xff   : > { %2168 = vst.msk [vmem:[%s3135_s6 + $0x8] sm:$0xf] %vm2165_vm2, %v2563_v19  ;;  %2232 = vst.msk [vmem:[%s3135_s6 + $0x108] sm:$0xf] %vm2165_vm2, %v2627_v20  ;;  %v2561_v26 = vpack.c.bf16 %v1525_v24, %v1525_v24  ;;  %v1589_v27 = vsel %vm1333_vm4, %v1014_v13, %v1461_v21  ;;  %v1464_v28 = vmul.f32 0.2, %v2844_v18 }
 0x100   : > { %vm1270_vm7 = vcmp.ge.f32.partialorder %v761_v22, 0.0  ;;  %v2625_v29 = vpack.c.bf16 %v1589_v27, %v1589_v27  ;;  %v1528_v30 = vsel %vm1272_vm5, %v2780_v17, %v1400_v25  ;;  %v1398_v31 = vmul.f32 0.2, %v761_v22 }
 0x101   : > { %vm1334_vm8 = vcmp.ge.f32.partialorder %v1017_v23, 0.0  ;;  %2166 = vst.msk [vmem:[%s3135_s6] sm:$0xf] %vm2165_vm2, %v2561_v26  ;;  %v2564_v32 = vpack.c.bf16 %v1528_v30, %v1528_v30  ;;  %v1592_v33 = vsel %vm1336_vm6, %v2844_v18, %v1464_v28  ;;  %v1462_v34 = vmul.f32 0.2, %v1017_v23  ;;  %v2783_v35 = vpop.f32.mrb[4].mxu0 }
 0x102   : > { %v2847_v36 = vpop.f32.mrb[4].mxu1  ;;  %2230 = vst.msk [vmem:[%s3135_s6 + $0x100] sm:$0xf] %vm2165_vm2, %v2625_v29  ;;  %v2628_v37 = vpack.c.bf16 %v1592_v33, %v1592_v33  ;;  %v1526_v38 = vsel %vm1270_vm7, %v761_v22, %v1398_v31  ;;  %vm1275_vm9 = vcmp.ge.f32.partialorder %v2783_v35, 0.0  ;;  %v1403_v39 = vmul.f32 0.2, %v2783_v35 }
 0x103   : > { %v774_v40 = vpop.f32.mrb[5].mxu0  ;;  %v1030_v41 = vpop.f32.mrb[5].mxu1  ;;  %2169 = vst.msk [vmem:[%s3135_s6 + $0xc] sm:$0xf] %vm2165_vm2, %v2564_v32  ;;  %v2562_v42 = vpack.c.bf16 %v1526_v38, %v1526_v38  ;;  %v1590_v43 = vsel %vm1334_vm8, %v1017_v23, %v1462_v34  ;;  %vm1339_vm10 = vcmp.ge.f32.partialorder %v2847_v36, 0.0 }
 0x104   : > { %v1467_v44 = vmul.f32 0.2, %v2847_v36  ;;  %v2784_v45 = vpop.f32.mrb[6].mxu0  ;;  %v2848_v46 = vpop.f32.mrb[6].mxu1  ;;  %2233 = vst.msk [vmem:[%s3135_s6 + $0x10c] sm:$0xf] %vm2165_vm2, %v2628_v37  ;;  %v2626_v47 = vpack.c.bf16 %v1590_v43, %v1590_v43  ;;  %v1531_v48 = vsel %vm1275_vm9, %v2783_v35, %v1403_v39 }
 0x105   : > { %vm1273_vm11 = vcmp.ge.f32.partialorder %v774_v40, 0.0  ;;  %v1401_v49 = vmul.f32 0.2, %v774_v40  ;;  %v777_v50 = vpop.f32.mrb[7].mxu0  ;;  %v1033_v51 = vpop.f32.mrb[7].mxu1  ;;  %v2567_v52 = vpack.c.bf16 %v1531_v48, %v1531_v48  ;;  %vm1337_vm12 = vcmp.ge.f32.partialorder %v1030_v41, 0.0 }
 0x106   : > { %2167 = vst.msk [vmem:[%s3135_s6 + $0x4] sm:$0xf] %vm2165_vm2, %v2562_v42  ;;  %v1595_v53 = vsel %vm1339_vm10, %v2847_v36, %v1467_v44  ;;  %v1465_v54 = vmul.f32 0.2, %v1030_v41  ;;  %2231 = vst.msk [vmem:[%s3135_s6 + $0x104] sm:$0xf] %vm2165_vm2, %v2626_v47 }
 0x107   : > { %v2631_v55 = vpack.c.bf16 %v1595_v53, %v1595_v53  ;;  %v1529_v56 = vsel %vm1273_vm11, %v774_v40, %v1401_v49  ;;  %vm1276_vm13 = vcmp.ge.f32.partialorder %v2784_v45, 0.0  ;;  %v1404_v57 = vmul.f32 0.2, %v2784_v45  ;;  %2172 = vst.msk [vmem:[%s3135_s6 + $0x18] sm:$0xf] %vm2165_vm2, %v2567_v52 }
 0x108   : > { %v2565_v58 = vpack.c.bf16 %v1529_v56, %v1529_v56  ;;  %v1593_v59 = vsel %vm1337_vm12, %v1030_v41, %v1465_v54  ;;  %vm1340_vm14 = vcmp.ge.f32.partialorder %v2848_v46, 0.0  ;;  %v1468_v60 = vmul.f32 0.2, %v2848_v46 }
 0x109   : > { %2236 = vst.msk [vmem:[%s3135_s6 + $0x118] sm:$0xf] %vm2165_vm2, %v2631_v55  ;;  %v2629_v61 = vpack.c.bf16 %v1593_v59, %v1593_v59  ;;  %v1532_v62 = vsel %vm1276_vm13, %v2784_v45, %v1404_v57  ;;  %vm1274_vm15 = vcmp.ge.f32.partialorder %v777_v50, 0.0  ;;  %v1402_v63 = vmul.f32 0.2, %v777_v50  ;;  %v2787_v3 = vpop.f32.mrb[8].mxu0 }
 0x10a   : > { %2170 = vst.msk [vmem:[%s3135_s6 + $0x10] sm:$0xf] %vm2165_vm2, %v2565_v58  ;;  %v2568_v0 = vpack.c.bf16 %v1532_v62, %v1532_v62  ;;  %v1596_v1 = vsel %vm1340_vm14, %v2848_v46, %v1468_v60  ;;  %vm1338_vm0 = vcmp.ge.f32.partialorder %v1033_v51, 0.0  ;;  %v1466_v2 = vmul.f32 0.2, %v1033_v51  ;;  %v2851_v4 = vpop.f32.mrb[8].mxu1 }
 0x10b   : > { %2234 = vst.msk [vmem:[%s3135_s6 + $0x110] sm:$0xf] %vm2165_vm2, %v2629_v61  ;;  %v2632_v5 = vpack.c.bf16 %v1596_v1, %v1596_v1  ;;  %v1530_v6 = vsel %vm1274_vm15, %v777_v50, %v1402_v63  ;;  %vm1279_vm1 = vcmp.ge.f32.partialorder %v2787_v3, 0.0  ;;  %v1407_v7 = vmul.f32 0.2, %v2787_v3  ;;  %v790_v8 = vpop.f32.mrb[9].mxu0 }
 0x10c   : > { %v1046_v9 = vpop.f32.mrb[9].mxu1  ;;  %2173 = vst.msk [vmem:[%s3135_s6 + $0x1c] sm:$0xf] %vm2165_vm2, %v2568_v0  ;;  %v2566_v10 = vpack.c.bf16 %v1530_v6, %v1530_v6  ;;  %v1594_v11 = vsel %vm1338_vm0, %v1033_v51, %v1466_v2  ;;  %vm1343_vm3 = vcmp.ge.f32.partialorder %v2851_v4, 0.0  ;;  %v1471_v12 = vmul.f32 0.2, %v2851_v4 }
 0x10d   : > { %v2788_v13 = vpop.f32.mrb[10].mxu0  ;;  %v2852_v14 = vpop.f32.mrb[10].mxu1  ;;  %2237 = vst.msk [vmem:[%s3135_s6 + $0x11c] sm:$0xf] %vm2165_vm2, %v2632_v5  ;;  %v2630_v15 = vpack.c.bf16 %v1594_v11, %v1594_v11  ;;  %v1535_v16 = vsel %vm1279_vm1, %v2787_v3, %v1407_v7  ;;  %vm1277_vm4 = vcmp.ge.f32.partialorder %v790_v8, 0.0  ;;  %vm1341_vm5 = vcmp.ge.f32.partialorder %v1046_v9, 0.0 }
 0x10e   : > { %v1405_v17 = vmul.f32 0.2, %v790_v8  ;;  %v793_v18 = vpop.f32.mrb[11].mxu0  ;;  %v1049_v19 = vpop.f32.mrb[11].mxu1  ;;  %2171 = vst.msk [vmem:[%s3135_s6 + $0x14] sm:$0xf] %vm2165_vm2, %v2566_v10  ;;  %v2571_v20 = vpack.c.bf16 %v1535_v16, %v1535_v16  ;;  %v1599_v21 = vsel %vm1343_vm3, %v2851_v4, %v1471_v12 }
 0x10f   : > { %v1469_v22 = vmul.f32 0.2, %v1046_v9  ;;  %2235 = vst.msk [vmem:[%s3135_s6 + $0x114] sm:$0xf] %vm2165_vm2, %v2630_v15  ;;  %v2635_v23 = vpack.c.bf16 %v1599_v21, %v1599_v21  ;;  %vm1280_vm6 = vcmp.ge.f32.partialorder %v2788_v13, 0.0  ;;  %vm1344_vm7 = vcmp.ge.f32.partialorder %v2852_v14, 0.0 }
 0x110   : > { %v1533_v24 = vsel %vm1277_vm4, %v790_v8, %v1405_v17  ;;  %v1408_v25 = vmul.f32 0.2, %v2788_v13  ;;  %2176 = vst.msk [vmem:[%s3135_s6 + $0x28] sm:$0xf] %vm2165_vm2, %v2571_v20  ;;  %v1472_v28 = vmul.f32 0.2, %v2852_v14 }
 0x111   : > { %v2569_v26 = vpack.c.bf16 %v1533_v24, %v1533_v24  ;;  %v1597_v27 = vsel %vm1341_vm5, %v1046_v9, %v1469_v22  ;;  %2240 = vst.msk [vmem:[%s3135_s6 + $0x128] sm:$0xf] %vm2165_vm2, %v2635_v23  ;;  %vm1278_vm8 = vcmp.ge.f32.partialorder %v793_v18, 0.0  ;;  %v1406_v31 = vmul.f32 0.2, %v793_v18  ;;  %v2791_v35 = vpop.f32.mrb[12].mxu0 }
 0x112   : > { %v2633_v29 = vpack.c.bf16 %v1597_v27, %v1597_v27  ;;  %v1536_v30 = vsel %vm1280_vm6, %v2788_v13, %v1408_v25  ;;  %v1600_v33 = vsel %vm1344_vm7, %v2852_v14, %v1472_v28  ;;  %vm1342_vm9 = vcmp.ge.f32.partialorder %v1049_v19, 0.0  ;;  %v2855_v36 = vpop.f32.mrb[12].mxu1  ;;  %v806_v40 = vpop.f32.mrb[13].mxu0 }
 0x113   : > { %2174 = vst.msk [vmem:[%s3135_s6 + $0x20] sm:$0xf] %vm2165_vm2, %v2569_v26  ;;  %v2572_v32 = vpack.c.bf16 %v1536_v30, %v1536_v30  ;;  %v1470_v34 = vmul.f32 0.2, %v1049_v19  ;;  %v2636_v37 = vpack.c.bf16 %v1600_v33, %v1600_v33  ;;  %v1534_v38 = vsel %vm1278_vm8, %v793_v18, %v1406_v31  ;;  %v1062_v41 = vpop.f32.mrb[13].mxu1  ;;  %v2792_v45 = vpop.f32.mrb[14].mxu0 }
 0x114   : > { %2238 = vst.msk [vmem:[%s3135_s6 + $0x120] sm:$0xf] %vm2165_vm2, %v2633_v29  ;;  %vm1283_vm10 = vcmp.ge.f32.partialorder %v2791_v35, 0.0  ;;  %v1411_v39 = vmul.f32 0.2, %v2791_v35  ;;  %v2570_v42 = vpack.c.bf16 %v1534_v38, %v1534_v38  ;;  %vm1347_vm11 = vcmp.ge.f32.partialorder %v2855_v36, 0.0 }
 0x115   : > { %2177 = vst.msk [vmem:[%s3135_s6 + $0x2c] sm:$0xf] %vm2165_vm2, %v2572_v32  ;;  %v1598_v43 = vsel %vm1342_vm9, %v1049_v19, %v1470_v34  ;;  %v1475_v44 = vmul.f32 0.2, %v2855_v36  ;;  %v2856_v46 = vpop.f32.mrb[14].mxu1  ;;  %vm1281_vm12 = vcmp.ge.f32.partialorder %v806_v40, 0.0 }
 0x116   : > { %2241 = vst.msk [vmem:[%s3135_s6 + $0x12c] sm:$0xf] %vm2165_vm2, %v2636_v37  ;;  %v2634_v47 = vpack.c.bf16 %v1598_v43, %v1598_v43  ;;  %v1539_v48 = vsel %vm1283_vm10, %v2791_v35, %v1411_v39  ;;  %v1409_v49 = vmul.f32 0.2, %v806_v40  ;;  %v809_v50 = vpop.f32.mrb[15].mxu0  ;;  %v1065_v51 = vpop.f32.mrb[15].mxu1 }
 0x117   : > { %2175 = vst.msk [vmem:[%s3135_s6 + $0x24] sm:$0xf] %vm2165_vm2, %v2570_v42  ;;  %v2575_v52 = vpack.c.bf16 %v1539_v48, %v1539_v48  ;;  %v1603_v53 = vsel %vm1347_vm11, %v2855_v36, %v1475_v44  ;;  %vm1345_vm13 = vcmp.ge.f32.partialorder %v1062_v41, 0.0  ;;  %v1473_v54 = vmul.f32 0.2, %v1062_v41 }
 0x118   : > { %2239 = vst.msk [vmem:[%s3135_s6 + $0x124] sm:$0xf] %vm2165_vm2, %v2634_v47  ;;  %v2639_v55 = vpack.c.bf16 %v1603_v53, %v1603_v53  ;;  %v1537_v56 = vsel %vm1281_vm12, %v806_v40, %v1409_v49  ;;  %vm1284_vm14 = vcmp.ge.f32.partialorder %v2792_v45, 0.0  ;;  %v1412_v57 = vmul.f32 0.2, %v2792_v45 }
 0x119   : > { %2180 = vst.msk [vmem:[%s3135_s6 + $0x38] sm:$0xf] %vm2165_vm2, %v2575_v52  ;;  %v2573_v58 = vpack.c.bf16 %v1537_v56, %v1537_v56  ;;  %v1601_v59 = vsel %vm1345_vm13, %v1062_v41, %v1473_v54  ;;  %vm1348_vm15 = vcmp.ge.f32.partialorder %v2856_v46, 0.0  ;;  %v1476_v60 = vmul.f32 0.2, %v2856_v46  ;;  %v2795_v3 = vpop.f32.mrb[16].mxu0 }
 0x11a   : > { %2244 = vst.msk [vmem:[%s3135_s6 + $0x138] sm:$0xf] %vm2165_vm2, %v2639_v55  ;;  %v2637_v61 = vpack.c.bf16 %v1601_v59, %v1601_v59  ;;  %v1540_v62 = vsel %vm1284_vm14, %v2792_v45, %v1412_v57  ;;  %vm1282_vm0 = vcmp.ge.f32.partialorder %v809_v50, 0.0  ;;  %v1410_v63 = vmul.f32 0.2, %v809_v50  ;;  %v2859_v4 = vpop.f32.mrb[16].mxu1 }
 0x11b   : > { %2178 = vst.msk [vmem:[%s3135_s6 + $0x30] sm:$0xf] %vm2165_vm2, %v2573_v58  ;;  %v2576_v0 = vpack.c.bf16 %v1540_v62, %v1540_v62  ;;  %v1604_v1 = vsel %vm1348_vm15, %v2856_v46, %v1476_v60  ;;  %vm1346_vm1 = vcmp.ge.f32.partialorder %v1065_v51, 0.0  ;;  %v1474_v2 = vmul.f32 0.2, %v1065_v51  ;;  %v822_v8 = vpop.f32.mrb[17].mxu0 }
 0x11c   : > { %2242 = vst.msk [vmem:[%s3135_s6 + $0x130] sm:$0xf] %vm2165_vm2, %v2637_v61  ;;  %v2640_v5 = vpack.c.bf16 %v1604_v1, %v1604_v1  ;;  %v1538_v6 = vsel %vm1282_vm0, %v809_v50, %v1410_v63  ;;  %vm1287_vm3 = vcmp.ge.f32.partialorder %v2795_v3, 0.0  ;;  %v1415_v7 = vmul.f32 0.2, %v2795_v3  ;;  %v1078_v9 = vpop.f32.mrb[17].mxu1 }
 0x11d   : > { %2181 = vst.msk [vmem:[%s3135_s6 + $0x3c] sm:$0xf] %vm2165_vm2, %v2576_v0  ;;  %v2574_v10 = vpack.c.bf16 %v1538_v6, %v1538_v6  ;;  %v1602_v11 = vsel %vm1346_vm1, %v1065_v51, %v1474_v2  ;;  %vm1351_vm4 = vcmp.ge.f32.partialorder %v2859_v4, 0.0  ;;  %v1479_v12 = vmul.f32 0.2, %v2859_v4  ;;  %v2796_v13 = vpop.f32.mrb[18].mxu0 }
 0x11e   : > { %v2860_v14 = vpop.f32.mrb[18].mxu1  ;;  %2245 = vst.msk [vmem:[%s3135_s6 + $0x13c] sm:$0xf] %vm2165_vm2, %v2640_v5  ;;  %v2638_v15 = vpack.c.bf16 %v1602_v11, %v1602_v11  ;;  %v1543_v16 = vsel %vm1287_vm3, %v2795_v3, %v1415_v7  ;;  %vm1285_vm5 = vcmp.ge.f32.partialorder %v822_v8, 0.0  ;;  %v1413_v17 = vmul.f32 0.2, %v822_v8 }
 0x11f   : > { %v825_v18 = vpop.f32.mrb[19].mxu0  ;;  %v1081_v19 = vpop.f32.mrb[19].mxu1  ;;  %2179 = vst.msk [vmem:[%s3135_s6 + $0x34] sm:$0xf] %vm2165_vm2, %v2574_v10  ;;  %v2579_v20 = vpack.c.bf16 %v1543_v16, %v1543_v16  ;;  %v1607_v21 = vsel %vm1351_vm4, %v2859_v4, %v1479_v12  ;;  %vm1349_vm6 = vcmp.ge.f32.partialorder %v1078_v9, 0.0  ;;  %vm1288_vm7 = vcmp.ge.f32.partialorder %v2796_v13, 0.0 }
 0x120   : > { %v1477_v22 = vmul.f32 0.2, %v1078_v9  ;;  %2243 = vst.msk [vmem:[%s3135_s6 + $0x134] sm:$0xf] %vm2165_vm2, %v2638_v15  ;;  %v2643_v23 = vpack.c.bf16 %v1607_v21, %v1607_v21  ;;  %v1541_v24 = vsel %vm1285_vm5, %v822_v8, %v1413_v17  ;;  %v1416_v25 = vmul.f32 0.2, %v2796_v13 }
 0x121   : > { %2184 = vst.msk [vmem:[%s3135_s6 + $0x48] sm:$0xf] %vm2165_vm2, %v2579_v20  ;;  %v2577_v26 = vpack.c.bf16 %v1541_v24, %v1541_v24  ;;  %vm1352_vm8 = vcmp.ge.f32.partialorder %v2860_v14, 0.0  ;;  %v1480_v28 = vmul.f32 0.2, %v2860_v14  ;;  %vm1286_vm9 = vcmp.ge.f32.partialorder %v825_v18, 0.0 }
 0x122   : > { %v1605_v27 = vsel %vm1349_vm6, %v1078_v9, %v1477_v22  ;;  %2248 = vst.msk [vmem:[%s3135_s6 + $0x148] sm:$0xf] %vm2165_vm2, %v2643_v23  ;;  %v1544_v30 = vsel %vm1288_vm7, %v2796_v13, %v1416_v25  ;;  %v1414_v31 = vmul.f32 0.2, %v825_v18  ;;  %vm1350_vm10 = vcmp.ge.f32.partialorder %v1081_v19, 0.0  ;;  %v2799_v35 = vpop.f32.mrb[20].mxu0 }
 0x123   : > { %v2641_v29 = vpack.c.bf16 %v1605_v27, %v1605_v27  ;;  %2182 = vst.msk [vmem:[%s3135_s6 + $0x40] sm:$0xf] %vm2165_vm2, %v2577_v26  ;;  %v2580_v32 = vpack.c.bf16 %v1544_v30, %v1544_v30  ;;  %v1608_v33 = vsel %vm1352_vm8, %v2860_v14, %v1480_v28  ;;  %v1478_v34 = vmul.f32 0.2, %v1081_v19  ;;  %v2863_v36 = vpop.f32.mrb[20].mxu1  ;;  %v838_v40 = vpop.f32.mrb[21].mxu0 }
 0x124   : > { %v2644_v37 = vpack.c.bf16 %v1608_v33, %v1608_v33  ;;  %v1542_v38 = vsel %vm1286_vm9, %v825_v18, %v1414_v31  ;;  %vm1291_vm11 = vcmp.ge.f32.partialorder %v2799_v35, 0.0  ;;  %v1419_v39 = vmul.f32 0.2, %v2799_v35  ;;  %v1094_v41 = vpop.f32.mrb[21].mxu1  ;;  %v2800_v45 = vpop.f32.mrb[22].mxu0 }
 0x125   : > { %2246 = vst.msk [vmem:[%s3135_s6 + $0x140] sm:$0xf] %vm2165_vm2, %v2641_v29  ;;  %2185 = vst.msk [vmem:[%s3135_s6 + $0x4c] sm:$0xf] %vm2165_vm2, %v2580_v32  ;;  %v2578_v42 = vpack.c.bf16 %v1542_v38, %v1542_v38  ;;  %v1606_v43 = vsel %vm1350_vm10, %v1081_v19, %v1478_v34  ;;  %vm1355_vm12 = vcmp.ge.f32.partialorder %v2863_v36, 0.0  ;;  %v2864_v46 = vpop.f32.mrb[22].mxu1 }
 0x126   : > { %v1483_v44 = vmul.f32 0.2, %v2863_v36  ;;  %2249 = vst.msk [vmem:[%s3135_s6 + $0x14c] sm:$0xf] %vm2165_vm2, %v2644_v37  ;;  %v2642_v47 = vpack.c.bf16 %v1606_v43, %v1606_v43  ;;  %v1547_v48 = vsel %vm1291_vm11, %v2799_v35, %v1419_v39  ;;  %vm1289_vm13 = vcmp.ge.f32.partialorder %v838_v40, 0.0  ;;  %v841_v50 = vpop.f32.mrb[23].mxu0 }
 0x127   : > { %v1417_v49 = vmul.f32 0.2, %v838_v40  ;;  %v1097_v51 = vpop.f32.mrb[23].mxu1  ;;  %2183 = vst.msk [vmem:[%s3135_s6 + $0x44] sm:$0xf] %vm2165_vm2, %v2578_v42  ;;  %v2583_v52 = vpack.c.bf16 %v1547_v48, %v1547_v48  ;;  %vm1353_vm14 = vcmp.ge.f32.partialorder %v1094_v41, 0.0 }
 0x128   : > { %v1611_v53 = vsel %vm1355_vm12, %v2863_v36, %v1483_v44  ;;  %v1481_v54 = vmul.f32 0.2, %v1094_v41  ;;  %2247 = vst.msk [vmem:[%s3135_s6 + $0x144] sm:$0xf] %vm2165_vm2, %v2642_v47  ;;  %vm1292_vm15 = vcmp.ge.f32.partialorder %v2800_v45, 0.0  ;;  %vm1356_vm0 = vcmp.ge.f32.partialorder %v2864_v46, 0.0 }
 0x129   : > { %v2647_v55 = vpack.c.bf16 %v1611_v53, %v1611_v53  ;;  %v1545_v56 = vsel %vm1289_vm13, %v838_v40, %v1417_v49  ;;  %v1420_v57 = vmul.f32 0.2, %v2800_v45  ;;  %2188 = vst.msk [vmem:[%s3135_s6 + $0x58] sm:$0xf] %vm2165_vm2, %v2583_v52  ;;  %v1484_v60 = vmul.f32 0.2, %v2864_v46 }
 0x12a   : > { %v2581_v58 = vpack.c.bf16 %v1545_v56, %v1545_v56  ;;  %v1609_v59 = vsel %vm1353_vm14, %v1094_v41, %v1481_v54  ;;  %vm1290_vm1 = vcmp.ge.f32.partialorder %v841_v50, 0.0  ;;  %v1418_v63 = vmul.f32 0.2, %v841_v50  ;;  %v2803_v3 = vpop.f32.mrb[24].mxu0  ;;  %v2867_v4 = vpop.f32.mrb[24].mxu1 }
 0x12b   : > { %2252 = vst.msk [vmem:[%s3135_s6 + $0x158] sm:$0xf] %vm2165_vm2, %v2647_v55  ;;  %v2645_v61 = vpack.c.bf16 %v1609_v59, %v1609_v59  ;;  %v1548_v62 = vsel %vm1292_vm15, %v2800_v45, %v1420_v57  ;;  %v1612_v1 = vsel %vm1356_vm0, %v2864_v46, %v1484_v60  ;;  %vm1354_vm3 = vcmp.ge.f32.partialorder %v1097_v51, 0.0  ;;  %v854_v8 = vpop.f32.mrb[25].mxu0  ;;  %v1110_v9 = vpop.f32.mrb[25].mxu1 }
 0x12c   : > { %2186 = vst.msk [vmem:[%s3135_s6 + $0x50] sm:$0xf] %vm2165_vm2, %v2581_v58  ;;  %v2584_v0 = vpack.c.bf16 %v1548_v62, %v1548_v62  ;;  %v1482_v2 = vmul.f32 0.2, %v1097_v51  ;;  %v2648_v5 = vpack.c.bf16 %v1612_v1, %v1612_v1  ;;  %v1546_v6 = vsel %vm1290_vm1, %v841_v50, %v1418_v63  ;;  %v2804_v13 = vpop.f32.mrb[26].mxu0  ;;  %v2868_v14 = vpop.f32.mrb[26].mxu1 }
 0x12d   : > { %2250 = vst.msk [vmem:[%s3135_s6 + $0x150] sm:$0xf] %vm2165_vm2, %v2645_v61  ;;  %vm1295_vm4 = vcmp.ge.f32.partialorder %v2803_v3, 0.0  ;;  %v1423_v7 = vmul.f32 0.2, %v2803_v3  ;;  %v2582_v10 = vpack.c.bf16 %v1546_v6, %v1546_v6  ;;  %vm1359_vm5 = vcmp.ge.f32.partialorder %v2867_v4, 0.0 }
 0x12e   : > { %2189 = vst.msk [vmem:[%s3135_s6 + $0x5c] sm:$0xf] %vm2165_vm2, %v2584_v0  ;;  %v1610_v11 = vsel %vm1354_vm3, %v1097_v51, %v1482_v2  ;;  %v1487_v12 = vmul.f32 0.2, %v2867_v4  ;;  %2253 = vst.msk [vmem:[%s3135_s6 + $0x15c] sm:$0xf] %vm2165_vm2, %v2648_v5 }
 0x12f   : > { %v2646_v15 = vpack.c.bf16 %v1610_v11, %v1610_v11  ;;  %v1551_v16 = vsel %vm1295_vm4, %v2803_v3, %v1423_v7  ;;  %vm1293_vm6 = vcmp.ge.f32.partialorder %v854_v8, 0.0  ;;  %v1421_v17 = vmul.f32 0.2, %v854_v8  ;;  %v857_v18 = vpop.f32.mrb[27].mxu0  ;;  %v1113_v19 = vpop.f32.mrb[27].mxu1 }
 0x130   : > { %2187 = vst.msk [vmem:[%s3135_s6 + $0x54] sm:$0xf] %vm2165_vm2, %v2582_v10  ;;  %v2587_v20 = vpack.c.bf16 %v1551_v16, %v1551_v16  ;;  %v1615_v21 = vsel %vm1359_vm5, %v2867_v4, %v1487_v12  ;;  %vm1357_vm7 = vcmp.ge.f32.partialorder %v1110_v9, 0.0  ;;  %v1485_v22 = vmul.f32 0.2, %v1110_v9 }
 0x131   : > { %2251 = vst.msk [vmem:[%s3135_s6 + $0x154] sm:$0xf] %vm2165_vm2, %v2646_v15  ;;  %v2651_v23 = vpack.c.bf16 %v1615_v21, %v1615_v21  ;;  %v1549_v24 = vsel %vm1293_vm6, %v854_v8, %v1421_v17  ;;  %vm1296_vm8 = vcmp.ge.f32.partialorder %v2804_v13, 0.0  ;;  %v1424_v25 = vmul.f32 0.2, %v2804_v13  ;;  %v2807_v35 = vpop.f32.mrb[28].mxu0 }
 0x132   : > { %2192 = vst.msk [vmem:[%s3135_s6 + $0x68] sm:$0xf] %vm2165_vm2, %v2587_v20  ;;  %v2585_v26 = vpack.c.bf16 %v1549_v24, %v1549_v24  ;;  %v1613_v27 = vsel %vm1357_vm7, %v1110_v9, %v1485_v22  ;;  %vm1360_vm9 = vcmp.ge.f32.partialorder %v2868_v14, 0.0  ;;  %v1488_v28 = vmul.f32 0.2, %v2868_v14  ;;  %v2871_v36 = vpop.f32.mrb[28].mxu1 }
 0x133   : > { %2256 = vst.msk [vmem:[%s3135_s6 + $0x168] sm:$0xf] %vm2165_vm2, %v2651_v23  ;;  %v2649_v29 = vpack.c.bf16 %v1613_v27, %v1613_v27  ;;  %v1552_v30 = vsel %vm1296_vm8, %v2804_v13, %v1424_v25  ;;  %vm1294_vm10 = vcmp.ge.f32.partialorder %v857_v18, 0.0  ;;  %v1422_v31 = vmul.f32 0.2, %v857_v18  ;;  %v870_v40 = vpop.f32.mrb[29].mxu0 }
 0x134   : > { %2190 = vst.msk [vmem:[%s3135_s6 + $0x60] sm:$0xf] %vm2165_vm2, %v2585_v26  ;;  %v2588_v32 = vpack.c.bf16 %v1552_v30, %v1552_v30  ;;  %v1616_v33 = vsel %vm1360_vm9, %v2868_v14, %v1488_v28  ;;  %vm1358_vm11 = vcmp.ge.f32.partialorder %v1113_v19, 0.0  ;;  %v1486_v34 = vmul.f32 0.2, %v1113_v19  ;;  %v1126_v41 = vpop.f32.mrb[29].mxu1 }
 0x135   : > { %2254 = vst.msk [vmem:[%s3135_s6 + $0x160] sm:$0xf] %vm2165_vm2, %v2649_v29  ;;  %v2652_v37 = vpack.c.bf16 %v1616_v33, %v1616_v33  ;;  %v1550_v38 = vsel %vm1294_vm10, %v857_v18, %v1422_v31  ;;  %vm1299_vm12 = vcmp.ge.f32.partialorder %v2807_v35, 0.0  ;;  %v1427_v39 = vmul.f32 0.2, %v2807_v35  ;;  %v2808_v45 = vpop.f32.mrb[30].mxu0 }
 0x136   : > { %2193 = vst.msk [vmem:[%s3135_s6 + $0x6c] sm:$0xf] %vm2165_vm2, %v2588_v32  ;;  %v2586_v42 = vpack.c.bf16 %v1550_v38, %v1550_v38  ;;  %v1614_v43 = vsel %vm1358_vm11, %v1113_v19, %v1486_v34  ;;  %vm1363_vm13 = vcmp.ge.f32.partialorder %v2871_v36, 0.0  ;;  %v1491_v44 = vmul.f32 0.2, %v2871_v36  ;;  %v2872_v46 = vpop.f32.mrb[30].mxu1 }
 0x137   : > { %2257 = vst.msk [vmem:[%s3135_s6 + $0x16c] sm:$0xf] %vm2165_vm2, %v2652_v37  ;;  %v2650_v47 = vpack.c.bf16 %v1614_v43, %v1614_v43  ;;  %v1555_v48 = vsel %vm1299_vm12, %v2807_v35, %v1427_v39  ;;  %vm1297_vm14 = vcmp.ge.f32.partialorder %v870_v40, 0.0  ;;  %v1425_v49 = vmul.f32 0.2, %v870_v40  ;;  %v873_v50 = vpop.f32.mrb[31].mxu0 }
 0x138   : > { %v1129_v51 = vpop.f32.mrb[31].mxu1  ;;  %2191 = vst.msk [vmem:[%s3135_s6 + $0x64] sm:$0xf] %vm2165_vm2, %v2586_v42  ;;  %v2591_v52 = vpack.c.bf16 %v1555_v48, %v1555_v48  ;;  %v1619_v53 = vsel %vm1363_vm13, %v2871_v36, %v1491_v44  ;;  %vm1361_vm15 = vcmp.ge.f32.partialorder %v1126_v41, 0.0  ;;  %v1489_v54 = vmul.f32 0.2, %v1126_v41 }
 0x139   : > { %2255 = vst.msk [vmem:[%s3135_s6 + $0x164] sm:$0xf] %vm2165_vm2, %v2650_v47  ;;  %v2655_v55 = vpack.c.bf16 %v1619_v53, %v1619_v53  ;;  %v1553_v56 = vsel %vm1297_vm14, %v870_v40, %v1425_v49  ;;  %vm1300_vm0 = vcmp.ge.f32.partialorder %v2808_v45, 0.0  ;;  %v1428_v57 = vmul.f32 0.2, %v2808_v45  ;;  %v2811_v3 = vpop.f32.mrb[32].mxu0 }
 0x13a   : > { %2196 = vst.msk [vmem:[%s3135_s6 + $0x78] sm:$0xf] %vm2165_vm2, %v2591_v52  ;;  %v2589_v58 = vpack.c.bf16 %v1553_v56, %v1553_v56  ;;  %v1617_v59 = vsel %vm1361_vm15, %v1126_v41, %v1489_v54  ;;  %vm1364_vm1 = vcmp.ge.f32.partialorder %v2872_v46, 0.0  ;;  %v1492_v60 = vmul.f32 0.2, %v2872_v46  ;;  %v2875_v4 = vpop.f32.mrb[32].mxu1 }
 0x13b   : > { %2260 = vst.msk [vmem:[%s3135_s6 + $0x178] sm:$0xf] %vm2165_vm2, %v2655_v55  ;;  %v2653_v61 = vpack.c.bf16 %v1617_v59, %v1617_v59  ;;  %v1556_v62 = vsel %vm1300_vm0, %v2808_v45, %v1428_v57  ;;  %vm1298_vm3 = vcmp.ge.f32.partialorder %v873_v50, 0.0  ;;  %v1426_v63 = vmul.f32 0.2, %v873_v50  ;;  %v886_v8 = vpop.f32.mrb[33].mxu0 }
 0x13c   : > { %2194 = vst.msk [vmem:[%s3135_s6 + $0x70] sm:$0xf] %vm2165_vm2, %v2589_v58  ;;  %v2592_v0 = vpack.c.bf16 %v1556_v62, %v1556_v62  ;;  %v1620_v1 = vsel %vm1364_vm1, %v2872_v46, %v1492_v60  ;;  %vm1362_vm4 = vcmp.ge.f32.partialorder %v1129_v51, 0.0  ;;  %v1490_v2 = vmul.f32 0.2, %v1129_v51  ;;  %v1142_v9 = vpop.f32.mrb[33].mxu1 }
 0x13d   : > { %2258 = vst.msk [vmem:[%s3135_s6 + $0x170] sm:$0xf] %vm2165_vm2, %v2653_v61  ;;  %v2656_v5 = vpack.c.bf16 %v1620_v1, %v1620_v1  ;;  %v1554_v6 = vsel %vm1298_vm3, %v873_v50, %v1426_v63  ;;  %vm1303_vm5 = vcmp.ge.f32.partialorder %v2811_v3, 0.0  ;;  %v1431_v7 = vmul.f32 0.2, %v2811_v3  ;;  %v2812_v13 = vpop.f32.mrb[34].mxu0 }
 0x13e   : > { %2197 = vst.msk [vmem:[%s3135_s6 + $0x7c] sm:$0xf] %vm2165_vm2, %v2592_v0  ;;  %v2590_v10 = vpack.c.bf16 %v1554_v6, %v1554_v6  ;;  %v1618_v11 = vsel %vm1362_vm4, %v1129_v51, %v1490_v2  ;;  %vm1367_vm6 = vcmp.ge.f32.partialorder %v2875_v4, 0.0  ;;  %v1495_v12 = vmul.f32 0.2, %v2875_v4  ;;  %v2876_v14 = vpop.f32.mrb[34].mxu1 }
 0x13f   : > { %2261 = vst.msk [vmem:[%s3135_s6 + $0x17c] sm:$0xf] %vm2165_vm2, %v2656_v5  ;;  %v2654_v15 = vpack.c.bf16 %v1618_v11, %v1618_v11  ;;  %v1559_v16 = vsel %vm1303_vm5, %v2811_v3, %v1431_v7  ;;  %vm1301_vm7 = vcmp.ge.f32.partialorder %v886_v8, 0.0  ;;  %v1429_v17 = vmul.f32 0.2, %v886_v8  ;;  %v889_v18 = vpop.f32.mrb[35].mxu0 }
 0x140   : > { %v1145_v19 = vpop.f32.mrb[35].mxu1  ;;  %2195 = vst.msk [vmem:[%s3135_s6 + $0x74] sm:$0xf] %vm2165_vm2, %v2590_v10  ;;  %v2595_v20 = vpack.c.bf16 %v1559_v16, %v1559_v16  ;;  %v1623_v21 = vsel %vm1367_vm6, %v2875_v4, %v1495_v12  ;;  %vm1365_vm8 = vcmp.ge.f32.partialorder %v1142_v9, 0.0  ;;  %v1493_v22 = vmul.f32 0.2, %v1142_v9 }
 0x141   : > { %2259 = vst.msk [vmem:[%s3135_s6 + $0x174] sm:$0xf] %vm2165_vm2, %v2654_v15  ;;  %v2659_v23 = vpack.c.bf16 %v1623_v21, %v1623_v21  ;;  %v1557_v24 = vsel %vm1301_vm7, %v886_v8, %v1429_v17  ;;  %vm1304_vm9 = vcmp.ge.f32.partialorder %v2812_v13, 0.0  ;;  %v1432_v25 = vmul.f32 0.2, %v2812_v13  ;;  %v2815_v35 = vpop.f32.mrb[36].mxu0 }
 0x142   : > { %2200 = vst.msk [vmem:[%s3135_s6 + $0x88] sm:$0xf] %vm2165_vm2, %v2595_v20  ;;  %v2593_v26 = vpack.c.bf16 %v1557_v24, %v1557_v24  ;;  %v1621_v27 = vsel %vm1365_vm8, %v1142_v9, %v1493_v22  ;;  %vm1368_vm10 = vcmp.ge.f32.partialorder %v2876_v14, 0.0  ;;  %v1496_v28 = vmul.f32 0.2, %v2876_v14  ;;  %v2879_v36 = vpop.f32.mrb[36].mxu1 }
 0x143   : > { %2264 = vst.msk [vmem:[%s3135_s6 + $0x188] sm:$0xf] %vm2165_vm2, %v2659_v23  ;;  %v2657_v29 = vpack.c.bf16 %v1621_v27, %v1621_v27  ;;  %v1560_v30 = vsel %vm1304_vm9, %v2812_v13, %v1432_v25  ;;  %vm1302_vm11 = vcmp.ge.f32.partialorder %v889_v18, 0.0  ;;  %v1430_v31 = vmul.f32 0.2, %v889_v18  ;;  %v902_v40 = vpop.f32.mrb[37].mxu0 }
 0x144   : > { %2198 = vst.msk [vmem:[%s3135_s6 + $0x80] sm:$0xf] %vm2165_vm2, %v2593_v26  ;;  %v2596_v32 = vpack.c.bf16 %v1560_v30, %v1560_v30  ;;  %v1624_v33 = vsel %vm1368_vm10, %v2876_v14, %v1496_v28  ;;  %vm1366_vm12 = vcmp.ge.f32.partialorder %v1145_v19, 0.0  ;;  %v1494_v34 = vmul.f32 0.2, %v1145_v19  ;;  %v1158_v41 = vpop.f32.mrb[37].mxu1 }
 0x145   : > { %2262 = vst.msk [vmem:[%s3135_s6 + $0x180] sm:$0xf] %vm2165_vm2, %v2657_v29  ;;  %v2660_v37 = vpack.c.bf16 %v1624_v33, %v1624_v33  ;;  %v1558_v38 = vsel %vm1302_vm11, %v889_v18, %v1430_v31  ;;  %vm1307_vm13 = vcmp.ge.f32.partialorder %v2815_v35, 0.0  ;;  %v1435_v39 = vmul.f32 0.2, %v2815_v35  ;;  %v2816_v45 = vpop.f32.mrb[38].mxu0 }
 0x146   : > { %2201 = vst.msk [vmem:[%s3135_s6 + $0x8c] sm:$0xf] %vm2165_vm2, %v2596_v32  ;;  %v2594_v42 = vpack.c.bf16 %v1558_v38, %v1558_v38  ;;  %v1622_v43 = vsel %vm1366_vm12, %v1145_v19, %v1494_v34  ;;  %vm1371_vm14 = vcmp.ge.f32.partialorder %v2879_v36, 0.0  ;;  %v1499_v44 = vmul.f32 0.2, %v2879_v36  ;;  %v2880_v46 = vpop.f32.mrb[38].mxu1 }
 0x147   : > { %2265 = vst.msk [vmem:[%s3135_s6 + $0x18c] sm:$0xf] %vm2165_vm2, %v2660_v37  ;;  %v2658_v47 = vpack.c.bf16 %v1622_v43, %v1622_v43  ;;  %v1563_v48 = vsel %vm1307_vm13, %v2815_v35, %v1435_v39  ;;  %vm1305_vm15 = vcmp.ge.f32.partialorder %v902_v40, 0.0  ;;  %v1433_v49 = vmul.f32 0.2, %v902_v40  ;;  %v905_v50 = vpop.f32.mrb[39].mxu0 }
 0x148   : > { %v1161_v51 = vpop.f32.mrb[39].mxu1  ;;  %2199 = vst.msk [vmem:[%s3135_s6 + $0x84] sm:$0xf] %vm2165_vm2, %v2594_v42  ;;  %v2599_v52 = vpack.c.bf16 %v1563_v48, %v1563_v48  ;;  %v1627_v53 = vsel %vm1371_vm14, %v2879_v36, %v1499_v44  ;;  %vm1369_vm0 = vcmp.ge.f32.partialorder %v1158_v41, 0.0  ;;  %v1497_v54 = vmul.f32 0.2, %v1158_v41 }
 0x149   : > { %2263 = vst.msk [vmem:[%s3135_s6 + $0x184] sm:$0xf] %vm2165_vm2, %v2658_v47  ;;  %v2663_v55 = vpack.c.bf16 %v1627_v53, %v1627_v53  ;;  %v1561_v56 = vsel %vm1305_vm15, %v902_v40, %v1433_v49  ;;  %vm1308_vm1 = vcmp.ge.f32.partialorder %v2816_v45, 0.0  ;;  %v1436_v57 = vmul.f32 0.2, %v2816_v45  ;;  %v2819_v3 = vpop.f32.mrb[40].mxu0 }
 0x14a   : > { %2204 = vst.msk [vmem:[%s3135_s6 + $0x98] sm:$0xf] %vm2165_vm2, %v2599_v52  ;;  %v2597_v58 = vpack.c.bf16 %v1561_v56, %v1561_v56  ;;  %v1625_v59 = vsel %vm1369_vm0, %v1158_v41, %v1497_v54  ;;  %vm1372_vm3 = vcmp.ge.f32.partialorder %v2880_v46, 0.0  ;;  %v1500_v60 = vmul.f32 0.2, %v2880_v46  ;;  %v2883_v4 = vpop.f32.mrb[40].mxu1 }
 0x14b   : > { %2268 = vst.msk [vmem:[%s3135_s6 + $0x198] sm:$0xf] %vm2165_vm2, %v2663_v55  ;;  %v2661_v61 = vpack.c.bf16 %v1625_v59, %v1625_v59  ;;  %v1564_v62 = vsel %vm1308_vm1, %v2816_v45, %v1436_v57  ;;  %vm1306_vm4 = vcmp.ge.f32.partialorder %v905_v50, 0.0  ;;  %v1434_v63 = vmul.f32 0.2, %v905_v50  ;;  %v918_v8 = vpop.f32.mrb[41].mxu0 }
 0x14c   : > { %2202 = vst.msk [vmem:[%s3135_s6 + $0x90] sm:$0xf] %vm2165_vm2, %v2597_v58  ;;  %v2600_v0 = vpack.c.bf16 %v1564_v62, %v1564_v62  ;;  %v1628_v1 = vsel %vm1372_vm3, %v2880_v46, %v1500_v60  ;;  %vm1370_vm5 = vcmp.ge.f32.partialorder %v1161_v51, 0.0  ;;  %v1498_v2 = vmul.f32 0.2, %v1161_v51  ;;  %v1174_v9 = vpop.f32.mrb[41].mxu1 }
 0x14d   : > { %2266 = vst.msk [vmem:[%s3135_s6 + $0x190] sm:$0xf] %vm2165_vm2, %v2661_v61  ;;  %v2664_v5 = vpack.c.bf16 %v1628_v1, %v1628_v1  ;;  %v1562_v6 = vsel %vm1306_vm4, %v905_v50, %v1434_v63  ;;  %vm1311_vm6 = vcmp.ge.f32.partialorder %v2819_v3, 0.0  ;;  %v1439_v7 = vmul.f32 0.2, %v2819_v3  ;;  %v2820_v13 = vpop.f32.mrb[42].mxu0 }
 0x14e   : > { %2205 = vst.msk [vmem:[%s3135_s6 + $0x9c] sm:$0xf] %vm2165_vm2, %v2600_v0  ;;  %v2598_v10 = vpack.c.bf16 %v1562_v6, %v1562_v6  ;;  %v1626_v11 = vsel %vm1370_vm5, %v1161_v51, %v1498_v2  ;;  %vm1375_vm7 = vcmp.ge.f32.partialorder %v2883_v4, 0.0  ;;  %v1503_v12 = vmul.f32 0.2, %v2883_v4  ;;  %v2884_v14 = vpop.f32.mrb[42].mxu1 }
 0x14f   : > { %2269 = vst.msk [vmem:[%s3135_s6 + $0x19c] sm:$0xf] %vm2165_vm2, %v2664_v5  ;;  %v2662_v15 = vpack.c.bf16 %v1626_v11, %v1626_v11  ;;  %v1567_v16 = vsel %vm1311_vm6, %v2819_v3, %v1439_v7  ;;  %vm1309_vm8 = vcmp.ge.f32.partialorder %v918_v8, 0.0  ;;  %v1437_v17 = vmul.f32 0.2, %v918_v8  ;;  %v921_v18 = vpop.f32.mrb[43].mxu0 }
 0x150   : > { %v1177_v19 = vpop.f32.mrb[43].mxu1  ;;  %2203 = vst.msk [vmem:[%s3135_s6 + $0x94] sm:$0xf] %vm2165_vm2, %v2598_v10  ;;  %v2603_v20 = vpack.c.bf16 %v1567_v16, %v1567_v16  ;;  %v1631_v21 = vsel %vm1375_vm7, %v2883_v4, %v1503_v12  ;;  %vm1373_vm9 = vcmp.ge.f32.partialorder %v1174_v9, 0.0  ;;  %v1501_v22 = vmul.f32 0.2, %v1174_v9 }
 0x151   : > { %2267 = vst.msk [vmem:[%s3135_s6 + $0x194] sm:$0xf] %vm2165_vm2, %v2662_v15  ;;  %v2667_v23 = vpack.c.bf16 %v1631_v21, %v1631_v21  ;;  %v1565_v24 = vsel %vm1309_vm8, %v918_v8, %v1437_v17  ;;  %vm1312_vm10 = vcmp.ge.f32.partialorder %v2820_v13, 0.0  ;;  %v1440_v25 = vmul.f32 0.2, %v2820_v13  ;;  %v2823_v35 = vpop.f32.mrb[44].mxu0 }
 0x152   : > { %2208 = vst.msk [vmem:[%s3135_s6 + $0xa8] sm:$0xf] %vm2165_vm2, %v2603_v20  ;;  %v2601_v26 = vpack.c.bf16 %v1565_v24, %v1565_v24  ;;  %v1629_v27 = vsel %vm1373_vm9, %v1174_v9, %v1501_v22  ;;  %vm1376_vm11 = vcmp.ge.f32.partialorder %v2884_v14, 0.0  ;;  %v1504_v28 = vmul.f32 0.2, %v2884_v14  ;;  %v2887_v36 = vpop.f32.mrb[44].mxu1 }
 0x153   : > { %2272 = vst.msk [vmem:[%s3135_s6 + $0x1a8] sm:$0xf] %vm2165_vm2, %v2667_v23  ;;  %v2665_v29 = vpack.c.bf16 %v1629_v27, %v1629_v27  ;;  %v1568_v30 = vsel %vm1312_vm10, %v2820_v13, %v1440_v25  ;;  %vm1310_vm12 = vcmp.ge.f32.partialorder %v921_v18, 0.0  ;;  %v1438_v31 = vmul.f32 0.2, %v921_v18  ;;  %v934_v40 = vpop.f32.mrb[45].mxu0 }
 0x154   : > { %2206 = vst.msk [vmem:[%s3135_s6 + $0xa0] sm:$0xf] %vm2165_vm2, %v2601_v26  ;;  %v2604_v32 = vpack.c.bf16 %v1568_v30, %v1568_v30  ;;  %v1632_v33 = vsel %vm1376_vm11, %v2884_v14, %v1504_v28  ;;  %vm1374_vm13 = vcmp.ge.f32.partialorder %v1177_v19, 0.0  ;;  %v1502_v34 = vmul.f32 0.2, %v1177_v19  ;;  %v1190_v41 = vpop.f32.mrb[45].mxu1 }
 0x155   : > { %2270 = vst.msk [vmem:[%s3135_s6 + $0x1a0] sm:$0xf] %vm2165_vm2, %v2665_v29  ;;  %v2668_v37 = vpack.c.bf16 %v1632_v33, %v1632_v33  ;;  %v1566_v38 = vsel %vm1310_vm12, %v921_v18, %v1438_v31  ;;  %vm1315_vm14 = vcmp.ge.f32.partialorder %v2823_v35, 0.0  ;;  %v1443_v39 = vmul.f32 0.2, %v2823_v35  ;;  %v2824_v45 = vpop.f32.mrb[46].mxu0 }
 0x156   : > { %2209 = vst.msk [vmem:[%s3135_s6 + $0xac] sm:$0xf] %vm2165_vm2, %v2604_v32  ;;  %v2602_v42 = vpack.c.bf16 %v1566_v38, %v1566_v38  ;;  %v1630_v43 = vsel %vm1374_vm13, %v1177_v19, %v1502_v34  ;;  %vm1379_vm15 = vcmp.ge.f32.partialorder %v2887_v36, 0.0  ;;  %v1507_v44 = vmul.f32 0.2, %v2887_v36  ;;  %v2888_v46 = vpop.f32.mrb[46].mxu1 }
 0x157   : > { %2273 = vst.msk [vmem:[%s3135_s6 + $0x1ac] sm:$0xf] %vm2165_vm2, %v2668_v37  ;;  %v2666_v47 = vpack.c.bf16 %v1630_v43, %v1630_v43  ;;  %v1571_v48 = vsel %vm1315_vm14, %v2823_v35, %v1443_v39  ;;  %vm1313_vm0 = vcmp.ge.f32.partialorder %v934_v40, 0.0  ;;  %v1441_v49 = vmul.f32 0.2, %v934_v40  ;;  %v937_v50 = vpop.f32.mrb[47].mxu0 }
 0x158   : > { %v1193_v51 = vpop.f32.mrb[47].mxu1  ;;  %2207 = vst.msk [vmem:[%s3135_s6 + $0xa4] sm:$0xf] %vm2165_vm2, %v2602_v42  ;;  %v2607_v52 = vpack.c.bf16 %v1571_v48, %v1571_v48  ;;  %v1635_v53 = vsel %vm1379_vm15, %v2887_v36, %v1507_v44  ;;  %vm1377_vm1 = vcmp.ge.f32.partialorder %v1190_v41, 0.0  ;;  %v1505_v54 = vmul.f32 0.2, %v1190_v41 }
 0x159   : > { %2271 = vst.msk [vmem:[%s3135_s6 + $0x1a4] sm:$0xf] %vm2165_vm2, %v2666_v47  ;;  %v2671_v55 = vpack.c.bf16 %v1635_v53, %v1635_v53  ;;  %v1569_v56 = vsel %vm1313_vm0, %v934_v40, %v1441_v49  ;;  %vm1316_vm3 = vcmp.ge.f32.partialorder %v2824_v45, 0.0  ;;  %v1444_v57 = vmul.f32 0.2, %v2824_v45  ;;  %v2827_v3 = vpop.f32.mrb[48].mxu0 }
 0x15a   : > { %2212 = vst.msk [vmem:[%s3135_s6 + $0xb8] sm:$0xf] %vm2165_vm2, %v2607_v52  ;;  %v2605_v58 = vpack.c.bf16 %v1569_v56, %v1569_v56  ;;  %v1633_v59 = vsel %vm1377_vm1, %v1190_v41, %v1505_v54  ;;  %vm1380_vm4 = vcmp.ge.f32.partialorder %v2888_v46, 0.0  ;;  %v1508_v60 = vmul.f32 0.2, %v2888_v46  ;;  %v2891_v4 = vpop.f32.mrb[48].mxu1 }
 0x15b   : > { %2276 = vst.msk [vmem:[%s3135_s6 + $0x1b8] sm:$0xf] %vm2165_vm2, %v2671_v55  ;;  %v2669_v61 = vpack.c.bf16 %v1633_v59, %v1633_v59  ;;  %v1572_v62 = vsel %vm1316_vm3, %v2824_v45, %v1444_v57  ;;  %vm1314_vm5 = vcmp.ge.f32.partialorder %v937_v50, 0.0  ;;  %v1442_v63 = vmul.f32 0.2, %v937_v50  ;;  %v950_v8 = vpop.f32.mrb[49].mxu0 }
 0x15c   : > { %2210 = vst.msk [vmem:[%s3135_s6 + $0xb0] sm:$0xf] %vm2165_vm2, %v2605_v58  ;;  %v2608_v0 = vpack.c.bf16 %v1572_v62, %v1572_v62  ;;  %v1636_v1 = vsel %vm1380_vm4, %v2888_v46, %v1508_v60  ;;  %vm1378_vm6 = vcmp.ge.f32.partialorder %v1193_v51, 0.0  ;;  %v1506_v2 = vmul.f32 0.2, %v1193_v51  ;;  %v1206_v9 = vpop.f32.mrb[49].mxu1 }
 0x15d   : > { %2274 = vst.msk [vmem:[%s3135_s6 + $0x1b0] sm:$0xf] %vm2165_vm2, %v2669_v61  ;;  %v2672_v5 = vpack.c.bf16 %v1636_v1, %v1636_v1  ;;  %v1570_v6 = vsel %vm1314_vm5, %v937_v50, %v1442_v63  ;;  %vm1319_vm7 = vcmp.ge.f32.partialorder %v2827_v3, 0.0  ;;  %v1447_v7 = vmul.f32 0.2, %v2827_v3  ;;  %v2828_v13 = vpop.f32.mrb[50].mxu0 }
 0x15e   : > { %2213 = vst.msk [vmem:[%s3135_s6 + $0xbc] sm:$0xf] %vm2165_vm2, %v2608_v0  ;;  %v2606_v10 = vpack.c.bf16 %v1570_v6, %v1570_v6  ;;  %v1634_v11 = vsel %vm1378_vm6, %v1193_v51, %v1506_v2  ;;  %vm1383_vm8 = vcmp.ge.f32.partialorder %v2891_v4, 0.0  ;;  %v1511_v12 = vmul.f32 0.2, %v2891_v4  ;;  %v2892_v14 = vpop.f32.mrb[50].mxu1 }
 0x15f   : > { %2277 = vst.msk [vmem:[%s3135_s6 + $0x1bc] sm:$0xf] %vm2165_vm2, %v2672_v5  ;;  %v2670_v15 = vpack.c.bf16 %v1634_v11, %v1634_v11  ;;  %v1575_v16 = vsel %vm1319_vm7, %v2827_v3, %v1447_v7  ;;  %vm1317_vm9 = vcmp.ge.f32.partialorder %v950_v8, 0.0  ;;  %v1445_v17 = vmul.f32 0.2, %v950_v8  ;;  %v953_v18 = vpop.f32.mrb[51].mxu0 }
 0x160   : > { %v1209_v19 = vpop.f32.mrb[51].mxu1  ;;  %2211 = vst.msk [vmem:[%s3135_s6 + $0xb4] sm:$0xf] %vm2165_vm2, %v2606_v10  ;;  %v2611_v20 = vpack.c.bf16 %v1575_v16, %v1575_v16  ;;  %v1639_v21 = vsel %vm1383_vm8, %v2891_v4, %v1511_v12  ;;  %vm1381_vm10 = vcmp.ge.f32.partialorder %v1206_v9, 0.0  ;;  %v1509_v22 = vmul.f32 0.2, %v1206_v9 }
 0x161   : > { %2275 = vst.msk [vmem:[%s3135_s6 + $0x1b4] sm:$0xf] %vm2165_vm2, %v2670_v15  ;;  %v2675_v23 = vpack.c.bf16 %v1639_v21, %v1639_v21  ;;  %v1573_v24 = vsel %vm1317_vm9, %v950_v8, %v1445_v17  ;;  %vm1320_vm11 = vcmp.ge.f32.partialorder %v2828_v13, 0.0  ;;  %v1448_v25 = vmul.f32 0.2, %v2828_v13  ;;  %v2831_v35 = vpop.f32.mrb[52].mxu0 }
 0x162   : > { %2216 = vst.msk [vmem:[%s3135_s6 + $0xc8] sm:$0xf] %vm2165_vm2, %v2611_v20  ;;  %v2609_v26 = vpack.c.bf16 %v1573_v24, %v1573_v24  ;;  %v1637_v27 = vsel %vm1381_vm10, %v1206_v9, %v1509_v22  ;;  %vm1384_vm12 = vcmp.ge.f32.partialorder %v2892_v14, 0.0  ;;  %v1512_v28 = vmul.f32 0.2, %v2892_v14  ;;  %v2895_v36 = vpop.f32.mrb[52].mxu1 }
 0x163   : > { %2280 = vst.msk [vmem:[%s3135_s6 + $0x1c8] sm:$0xf] %vm2165_vm2, %v2675_v23  ;;  %v2673_v29 = vpack.c.bf16 %v1637_v27, %v1637_v27  ;;  %v1576_v30 = vsel %vm1320_vm11, %v2828_v13, %v1448_v25  ;;  %vm1318_vm13 = vcmp.ge.f32.partialorder %v953_v18, 0.0  ;;  %v1446_v31 = vmul.f32 0.2, %v953_v18  ;;  %v966_v40 = vpop.f32.mrb[53].mxu0 }
 0x164   : > { %2214 = vst.msk [vmem:[%s3135_s6 + $0xc0] sm:$0xf] %vm2165_vm2, %v2609_v26  ;;  %v2612_v32 = vpack.c.bf16 %v1576_v30, %v1576_v30  ;;  %v1640_v33 = vsel %vm1384_vm12, %v2892_v14, %v1512_v28  ;;  %vm1382_vm14 = vcmp.ge.f32.partialorder %v1209_v19, 0.0  ;;  %v1510_v34 = vmul.f32 0.2, %v1209_v19  ;;  %v1222_v41 = vpop.f32.mrb[53].mxu1 }
 0x165   : > { %2278 = vst.msk [vmem:[%s3135_s6 + $0x1c0] sm:$0xf] %vm2165_vm2, %v2673_v29  ;;  %v2676_v37 = vpack.c.bf16 %v1640_v33, %v1640_v33  ;;  %v1574_v38 = vsel %vm1318_vm13, %v953_v18, %v1446_v31  ;;  %vm1323_vm15 = vcmp.ge.f32.partialorder %v2831_v35, 0.0  ;;  %v1451_v39 = vmul.f32 0.2, %v2831_v35  ;;  %v2832_v45 = vpop.f32.mrb[54].mxu0 }
 0x166   : > { %2217 = vst.msk [vmem:[%s3135_s6 + $0xcc] sm:$0xf] %vm2165_vm2, %v2612_v32  ;;  %v2610_v42 = vpack.c.bf16 %v1574_v38, %v1574_v38  ;;  %v1638_v43 = vsel %vm1382_vm14, %v1209_v19, %v1510_v34  ;;  %vm1387_vm0 = vcmp.ge.f32.partialorder %v2895_v36, 0.0  ;;  %v1515_v44 = vmul.f32 0.2, %v2895_v36  ;;  %v2896_v46 = vpop.f32.mrb[54].mxu1 }
 0x167   : > { %2281 = vst.msk [vmem:[%s3135_s6 + $0x1cc] sm:$0xf] %vm2165_vm2, %v2676_v37  ;;  %v2674_v47 = vpack.c.bf16 %v1638_v43, %v1638_v43  ;;  %v1579_v48 = vsel %vm1323_vm15, %v2831_v35, %v1451_v39  ;;  %vm1321_vm1 = vcmp.ge.f32.partialorder %v966_v40, 0.0  ;;  %v1449_v49 = vmul.f32 0.2, %v966_v40  ;;  %v969_v50 = vpop.f32.mrb[55].mxu0 }
 0x168   : > { %v1225_v51 = vpop.f32.mrb[55].mxu1  ;;  %2215 = vst.msk [vmem:[%s3135_s6 + $0xc4] sm:$0xf] %vm2165_vm2, %v2610_v42  ;;  %v2615_v52 = vpack.c.bf16 %v1579_v48, %v1579_v48  ;;  %v1643_v53 = vsel %vm1387_vm0, %v2895_v36, %v1515_v44  ;;  %vm1385_vm3 = vcmp.ge.f32.partialorder %v1222_v41, 0.0  ;;  %v1513_v54 = vmul.f32 0.2, %v1222_v41 }
 0x169   : > { %2279 = vst.msk [vmem:[%s3135_s6 + $0x1c4] sm:$0xf] %vm2165_vm2, %v2674_v47  ;;  %v2679_v55 = vpack.c.bf16 %v1643_v53, %v1643_v53  ;;  %v1577_v56 = vsel %vm1321_vm1, %v966_v40, %v1449_v49  ;;  %vm1324_vm4 = vcmp.ge.f32.partialorder %v2832_v45, 0.0  ;;  %v1452_v57 = vmul.f32 0.2, %v2832_v45  ;;  %v2835_v3 = vpop.f32.mrb[56].mxu0 }
 0x16a   : > { %2220 = vst.msk [vmem:[%s3135_s6 + $0xd8] sm:$0xf] %vm2165_vm2, %v2615_v52  ;;  %v2613_v58 = vpack.c.bf16 %v1577_v56, %v1577_v56  ;;  %v1641_v59 = vsel %vm1385_vm3, %v1222_v41, %v1513_v54  ;;  %vm1388_vm5 = vcmp.ge.f32.partialorder %v2896_v46, 0.0  ;;  %v1516_v60 = vmul.f32 0.2, %v2896_v46  ;;  %v2899_v4 = vpop.f32.mrb[56].mxu1 }
 0x16b   : > { %2284 = vst.msk [vmem:[%s3135_s6 + $0x1d8] sm:$0xf] %vm2165_vm2, %v2679_v55  ;;  %v2677_v61 = vpack.c.bf16 %v1641_v59, %v1641_v59  ;;  %v1580_v62 = vsel %vm1324_vm4, %v2832_v45, %v1452_v57  ;;  %vm1322_vm6 = vcmp.ge.f32.partialorder %v969_v50, 0.0  ;;  %v1450_v63 = vmul.f32 0.2, %v969_v50  ;;  %v982_v8 = vpop.f32.mrb[57].mxu0 }
 0x16c   : > { %2218 = vst.msk [vmem:[%s3135_s6 + $0xd0] sm:$0xf] %vm2165_vm2, %v2613_v58  ;;  %v2616_v0 = vpack.c.bf16 %v1580_v62, %v1580_v62  ;;  %v1644_v1 = vsel %vm1388_vm5, %v2896_v46, %v1516_v60  ;;  %vm1386_vm7 = vcmp.ge.f32.partialorder %v1225_v51, 0.0  ;;  %v1514_v2 = vmul.f32 0.2, %v1225_v51  ;;  %v1238_v9 = vpop.f32.mrb[57].mxu1 }
 0x16d   : > { %2282 = vst.msk [vmem:[%s3135_s6 + $0x1d0] sm:$0xf] %vm2165_vm2, %v2677_v61  ;;  %v2680_v5 = vpack.c.bf16 %v1644_v1, %v1644_v1  ;;  %v1578_v6 = vsel %vm1322_vm6, %v969_v50, %v1450_v63  ;;  %vm1327_vm8 = vcmp.ge.f32.partialorder %v2835_v3, 0.0  ;;  %v1455_v7 = vmul.f32 0.2, %v2835_v3  ;;  %v2836_v13 = vpop.f32.mrb[58].mxu0 }
 0x16e   : > { %2221 = vst.msk [vmem:[%s3135_s6 + $0xdc] sm:$0xf] %vm2165_vm2, %v2616_v0  ;;  %v2614_v10 = vpack.c.bf16 %v1578_v6, %v1578_v6  ;;  %v1642_v11 = vsel %vm1386_vm7, %v1225_v51, %v1514_v2  ;;  %vm1391_vm9 = vcmp.ge.f32.partialorder %v2899_v4, 0.0  ;;  %v1519_v12 = vmul.f32 0.2, %v2899_v4  ;;  %v2900_v14 = vpop.f32.mrb[58].mxu1 }
 0x16f   : > { %2285 = vst.msk [vmem:[%s3135_s6 + $0x1dc] sm:$0xf] %vm2165_vm2, %v2680_v5  ;;  %v2678_v15 = vpack.c.bf16 %v1642_v11, %v1642_v11  ;;  %v1583_v16 = vsel %vm1327_vm8, %v2835_v3, %v1455_v7  ;;  %vm1325_vm10 = vcmp.ge.f32.partialorder %v982_v8, 0.0  ;;  %v1453_v17 = vmul.f32 0.2, %v982_v8  ;;  %v985_v18 = vpop.f32.mrb[59].mxu0 }
 0x170   : > { %v1241_v19 = vpop.f32.mrb[59].mxu1  ;;  %2219 = vst.msk [vmem:[%s3135_s6 + $0xd4] sm:$0xf] %vm2165_vm2, %v2614_v10  ;;  %v2619_v20 = vpack.c.bf16 %v1583_v16, %v1583_v16  ;;  %v1647_v21 = vsel %vm1391_vm9, %v2899_v4, %v1519_v12  ;;  %vm1389_vm11 = vcmp.ge.f32.partialorder %v1238_v9, 0.0  ;;  %v1517_v22 = vmul.f32 0.2, %v1238_v9 }
 0x171   : > { %2283 = vst.msk [vmem:[%s3135_s6 + $0x1d4] sm:$0xf] %vm2165_vm2, %v2678_v15  ;;  %v2683_v23 = vpack.c.bf16 %v1647_v21, %v1647_v21  ;;  %v1581_v24 = vsel %vm1325_vm10, %v982_v8, %v1453_v17  ;;  %vm1328_vm12 = vcmp.ge.f32.partialorder %v2836_v13, 0.0  ;;  %v1456_v25 = vmul.f32 0.2, %v2836_v13  ;;  %v2839_v35 = vpop.f32.mrb[60].mxu0 }
 0x172   : > { %2224 = vst.msk [vmem:[%s3135_s6 + $0xe8] sm:$0xf] %vm2165_vm2, %v2619_v20  ;;  %v2617_v26 = vpack.c.bf16 %v1581_v24, %v1581_v24  ;;  %v1645_v27 = vsel %vm1389_vm11, %v1238_v9, %v1517_v22  ;;  %vm1392_vm13 = vcmp.ge.f32.partialorder %v2900_v14, 0.0  ;;  %v1520_v28 = vmul.f32 0.2, %v2900_v14  ;;  %v2903_v36 = vpop.f32.mrb[60].mxu1 }
 0x173   : > { %2288 = vst.msk [vmem:[%s3135_s6 + $0x1e8] sm:$0xf] %vm2165_vm2, %v2683_v23  ;;  %v2681_v29 = vpack.c.bf16 %v1645_v27, %v1645_v27  ;;  %v1584_v30 = vsel %vm1328_vm12, %v2836_v13, %v1456_v25  ;;  %vm1326_vm14 = vcmp.ge.f32.partialorder %v985_v18, 0.0  ;;  %v1454_v31 = vmul.f32 0.2, %v985_v18  ;;  %v998_v40 = vpop.f32.mrb[61].mxu0 }
 0x174   : > { %2222 = vst.msk [vmem:[%s3135_s6 + $0xe0] sm:$0xf] %vm2165_vm2, %v2617_v26  ;;  %v2620_v32 = vpack.c.bf16 %v1584_v30, %v1584_v30  ;;  %v1648_v33 = vsel %vm1392_vm13, %v2900_v14, %v1520_v28  ;;  %vm1390_vm15 = vcmp.ge.f32.partialorder %v1241_v19, 0.0  ;;  %v1518_v34 = vmul.f32 0.2, %v1241_v19  ;;  %v1254_v41 = vpop.f32.mrb[61].mxu1 }
 0x175   : > { %2286 = vst.msk [vmem:[%s3135_s6 + $0x1e0] sm:$0xf] %vm2165_vm2, %v2681_v29  ;;  %v2684_v37 = vpack.c.bf16 %v1648_v33, %v1648_v33  ;;  %v1582_v38 = vsel %vm1326_vm14, %v985_v18, %v1454_v31  ;;  %vm1331_vm0 = vcmp.ge.f32.partialorder %v2839_v35, 0.0  ;;  %v1459_v39 = vmul.f32 0.2, %v2839_v35  ;;  %v2840_v45 = vpop.f32.mrb[62].mxu0 }
 0x176   : > { %2225 = vst.msk [vmem:[%s3135_s6 + $0xec] sm:$0xf] %vm2165_vm2, %v2620_v32  ;;  %v2618_v42 = vpack.c.bf16 %v1582_v38, %v1582_v38  ;;  %v1646_v43 = vsel %vm1390_vm15, %v1241_v19, %v1518_v34  ;;  %vm1395_vm1 = vcmp.ge.f32.partialorder %v2903_v36, 0.0  ;;  %v1523_v44 = vmul.f32 0.2, %v2903_v36  ;;  %v2904_v46 = vpop.f32.mrb[62].mxu1 }
 0x177   : > { %2289 = vst.msk [vmem:[%s3135_s6 + $0x1ec] sm:$0xf] %vm2165_vm2, %v2684_v37  ;;  %v2682_v47 = vpack.c.bf16 %v1646_v43, %v1646_v43  ;;  %v1587_v48 = vsel %vm1331_vm0, %v2839_v35, %v1459_v39  ;;  %vm1329_vm3 = vcmp.ge.f32.partialorder %v998_v40, 0.0  ;;  %v1457_v49 = vmul.f32 0.2, %v998_v40  ;;  %v1001_v50 = vpop.f32.mrb[63].mxu0 }
 0x178   : > { %v1257_v51 = vpop.f32.mrb[63].mxu1  ;;  %2223 = vst.msk [vmem:[%s3135_s6 + $0xe4] sm:$0xf] %vm2165_vm2, %v2618_v42  ;;  %v2623_v52 = vpack.c.bf16 %v1587_v48, %v1587_v48  ;;  %v1651_v53 = vsel %vm1395_vm1, %v2903_v36, %v1523_v44  ;;  %vm1393_vm4 = vcmp.ge.f32.partialorder %v1254_v41, 0.0  ;;  %v1521_v54 = vmul.f32 0.2, %v1254_v41 }
 0x179   : > { %2287 = vst.msk [vmem:[%s3135_s6 + $0x1e4] sm:$0xf] %vm2165_vm2, %v2682_v47  ;;  %v2687_v55 = vpack.c.bf16 %v1651_v53, %v1651_v53  ;;  %v1585_v56 = vsel %vm1329_vm3, %v998_v40, %v1457_v49  ;;  %vm1332_vm5 = vcmp.ge.f32.partialorder %v2840_v45, 0.0  ;;  %v1460_v57 = vmul.f32 0.2, %v2840_v45 }
 0x17a   : > { %2228 = vst.msk [vmem:[%s3135_s6 + $0xf8] sm:$0xf] %vm2165_vm2, %v2623_v52  ;;  %v2621_v58 = vpack.c.bf16 %v1585_v56, %v1585_v56  ;;  %v1649_v59 = vsel %vm1393_vm4, %v1254_v41, %v1521_v54  ;;  %vm1396_vm6 = vcmp.ge.f32.partialorder %v2904_v46, 0.0  ;;  %v1524_v60 = vmul.f32 0.2, %v2904_v46 }
 0x17b   : > { %2292 = vst.msk [vmem:[%s3135_s6 + $0x1f8] sm:$0xf] %vm2165_vm2, %v2687_v55  ;;  %v2685_v61 = vpack.c.bf16 %v1649_v59, %v1649_v59  ;;  %v1588_v62 = vsel %vm1332_vm5, %v2840_v45, %v1460_v57  ;;  %vm1330_vm7 = vcmp.ge.f32.partialorder %v1001_v50, 0.0  ;;  %v1458_v63 = vmul.f32 0.2, %v1001_v50 }
 0x17c   : > { %2226 = vst.msk [vmem:[%s3135_s6 + $0xf0] sm:$0xf] %vm2165_vm2, %v2621_v58  ;;  %v2624_v0 = vpack.c.bf16 %v1588_v62, %v1588_v62  ;;  %v1652_v1 = vsel %vm1396_vm6, %v2904_v46, %v1524_v60  ;;  %vm1394_vm8 = vcmp.ge.f32.partialorder %v1257_v51, 0.0  ;;  %v1522_v2 = vmul.f32 0.2, %v1257_v51 }
 0x17d   : > { %2290 = vst.msk [vmem:[%s3135_s6 + $0x1f0] sm:$0xf] %vm2165_vm2, %v2685_v61  ;;  %v2688_v3 = vpack.c.bf16 %v1652_v1, %v1652_v1  ;;  %v1586_v4 = vsel %vm1330_vm7, %v1001_v50, %v1458_v63 }
 0x17e   : > { %2229 = vst.msk [vmem:[%s3135_s6 + $0xfc] sm:$0xf] %vm2165_vm2, %v2624_v0  ;;  %v2622_v5 = vpack.c.bf16 %v1586_v4, %v1586_v4  ;;  %v1650_v6 = vsel %vm1394_vm8, %v1257_v51, %v1522_v2 }
 0x17f   : > { %2293 = vst.msk [vmem:[%s3135_s6 + $0x1fc] sm:$0xf] %vm2165_vm2, %v2688_v3  ;;  %v2686_v7 = vpack.c.bf16 %v1650_v6, %v1650_v6 }
 0x180   : > { %2227 = vst.msk [vmem:[%s3135_s6 + $0xf4] sm:$0xf] %vm2165_vm2, %v2622_v5 }
 0x181   : > { %2291 = vst.msk [vmem:[%s3135_s6 + $0x1f4] sm:$0xf] %vm2165_vm2, %v2686_v7 }
 0x182 PF: > { %s12_s9 = sadd.s32 1, %s3007_s9  }
 0x183   : > { %p9_p4 = scmp.ge.s32.totalorder %s12_s9, 4  }
 0x185   :  { %11 = sbr.rel (!%p9_p4) target bundleno = 1 (0x1), region = 58 }

// kernel: discriminator_forward.6
= control target key start
LH: loop header
LB: loop body
LE: loop exit
PB: predicated region body
PF: predicated region fallthrough
CT: control target
= control target key end

     0   :  { %vm22_vm0 = vcmask 122880   ;;  %vm635_vm1 = vcmask 130048   ;;  %v2122_v40 = vmov 0.0   ;;  %s4091_s1 = inlined_call_operand.vmem [shape: bf16[128,16], index: 1, kind: input, shape index: {}]   ;;  %s4092_s0 = inlined_call_operand.vmem [shape: bf16[512,128], index: 0, kind: input, shape index: {}]   ;;  %s4093_s2 = inlined_call_operand.vmem [shape: f32[1,16], index: 2, kind: input, shape index: {}]   ;;  %s4094_s3 = inlined_call_operand.vmem [shape: f32[1,16], index: 3, kind: input, shape index: {}]   ;;  %s4095_s4 = inlined_call_operand.vmem [shape: bf16[512,16], index: 4, kind: output, shape index: {}]  }
   0x1   :  { %v2080_v0 = vld [vmem:[%s4091_s1] sm:$0xff]   ;;  %v2081_v1 = vld [vmem:[%s4091_s1 + $0x8] sm:$0xff]   ;;  %v2082_v2 = vld [vmem:[%s4091_s1 + $0x10] sm:$0xff]   ;;  %23 = vst.msk [vmem:[#allocation3] sm:$0x1] %vm22_vm0, %v2122_v40 }
   0x2   :  { %1983 = vmatprep.subr.bf16.mxu0 %v2080_v0  ;;  %2063 = vmatprep.subr.bf16.mxu1 %v2080_v0  ;;  %v2083_v3 = vld [vmem:[%s4091_s1 + $0x18] sm:$0xff]   ;;  %v2088_v4 = vld [vmem:[%s4092_s0] sm:$0xff]   ;;  %v2085_v6 = vld [vmem:[%s4091_s1 + $0x28] sm:$0xff]   ;;  %24 = vst.msk [vmem:[#allocation4] sm:$0x1] %vm22_vm0, %v2122_v40 }
   0x3   :  { %1984 = vmatpush3.bf16.msra.mxu0 %v2080_v0  ;;  %2071 = vmatpush3.bf16.msra.mxu1 %v2080_v0  ;;  %v2084_v5 = vld [vmem:[%s4091_s1 + $0x20] sm:$0xff]   ;;  %v2086_v7 = vld [vmem:[%s4091_s1 + $0x30] sm:$0xff]   ;;  %v2087_v8 = vld [vmem:[%s4091_s1 + $0x38] sm:$0xff]  }
   0x4   :  { %1985 = vmatprep.subr.bf16.mxu0 %v2081_v1  ;;  %2064 = vmatprep.subr.bf16.mxu1 %v2081_v1  ;;  %v2104_v9 = vld [vmem:[%s4092_s0 + $0x80] sm:$0xff]   ;;  %v2089_v10 = vld [vmem:[%s4092_s0 + $0x8] sm:$0xff]   ;;  %v2090_v11 = vld [vmem:[%s4092_s0 + $0x10] sm:$0xff]  }
   0x5   :  { %1999 = vmatprep.mubr.bf16.mxu0 %v2088_v4  ;;  %2031 = vmatprep.mubr.bf16.mxu1 %v2104_v9  ;;  %v2105_v12 = vld [vmem:[%s4092_s0 + $0x88] sm:$0xff]   ;;  %v2106_v13 = vld [vmem:[%s4092_s0 + $0x90] sm:$0xff]   ;;  %v2091_v14 = vld [vmem:[%s4092_s0 + $0x18] sm:$0xff]  }
   0x6   :  { %v2092_v15 = vld [vmem:[%s4092_s0 + $0x20] sm:$0xff]   ;;  %v2107_v16 = vld [vmem:[%s4092_s0 + $0x98] sm:$0xff]   ;;  %v2093_v18 = vld [vmem:[%s4092_s0 + $0x28] sm:$0xff]  }
   0x7   :  { %1986 = vmatpush3.bf16.msra.mxu0 %v2081_v1  ;;  %2072 = vmatpush3.bf16.msra.mxu1 %v2081_v1  ;;  %v2108_v17 = vld [vmem:[%s4092_s0 + $0xa0] sm:$0xff]   ;;  %v2109_v19 = vld [vmem:[%s4092_s0 + $0xa8] sm:$0xff]   ;;  %v2094_v20 = vld [vmem:[%s4092_s0 + $0x30] sm:$0xff]  }
   0x8   :  { %1987 = vmatprep.subr.bf16.mxu0 %v2082_v2  ;;  %2065 = vmatprep.subr.bf16.mxu1 %v2082_v2  ;;  %v2110_v21 = vld [vmem:[%s4092_s0 + $0xb0] sm:$0xff]   ;;  %v2095_v22 = vld [vmem:[%s4092_s0 + $0x38] sm:$0xff]   ;;  %v2096_v24 = vld [vmem:[%s4092_s0 + $0x40] sm:$0xff]  }
   0x9   :  { %v2111_v23 = vld [vmem:[%s4092_s0 + $0xb8] sm:$0xff]   ;;  %v2112_v25 = vld [vmem:[%s4092_s0 + $0xc0] sm:$0xff]   ;;  %v2097_v26 = vld [vmem:[%s4092_s0 + $0x48] sm:$0xff]  }
   0xa   :  { %v2113_v27 = vld [vmem:[%s4092_s0 + $0xc8] sm:$0xff]   ;;  %v2098_v28 = vld [vmem:[%s4092_s0 + $0x50] sm:$0xff]   ;;  %v2099_v30 = vld [vmem:[%s4092_s0 + $0x58] sm:$0xff]  }
   0xb   :  { %1988 = vmatpush3.bf16.msra.mxu0 %v2082_v2  ;;  %2073 = vmatpush3.bf16.msra.mxu1 %v2082_v2  ;;  %v2114_v29 = vld [vmem:[%s4092_s0 + $0xd0] sm:$0xff]   ;;  %v2115_v31 = vld [vmem:[%s4092_s0 + $0xd8] sm:$0xff]   ;;  %v2100_v32 = vld [vmem:[%s4092_s0 + $0x60] sm:$0xff]  }
   0xc   :  { %1989 = vmatprep.subr.bf16.mxu0 %v2083_v3  ;;  %2066 = vmatprep.subr.bf16.mxu1 %v2083_v3  ;;  %v2116_v33 = vld [vmem:[%s4092_s0 + $0xe0] sm:$0xff]   ;;  %v2101_v34 = vld [vmem:[%s4092_s0 + $0x68] sm:$0xff]   ;;  %v2102_v36 = vld [vmem:[%s4092_s0 + $0x70] sm:$0xff]  }
   0xd   :  { %v2117_v35 = vld [vmem:[%s4092_s0 + $0xe8] sm:$0xff]   ;;  %v2118_v37 = vld [vmem:[%s4092_s0 + $0xf0] sm:$0xff]   ;;  %v2103_v38 = vld [vmem:[%s4092_s0 + $0x78] sm:$0xff]  }
   0xe   :  { %v2119_v39 = vld [vmem:[%s4092_s0 + $0xf8] sm:$0xff]  }
   0xf   :  { %1990 = vmatpush3.bf16.msra.mxu0 %v2083_v3  ;;  %2074 = vmatpush3.bf16.msra.mxu1 %v2083_v3 }
  0x10   :  { %1991 = vmatprep.subr.bf16.mxu0 %v2084_v5  ;;  %2067 = vmatprep.subr.bf16.mxu1 %v2084_v5 }
  0x13   :  { %1992 = vmatpush3.bf16.msra.mxu0 %v2084_v5  ;;  %2075 = vmatpush3.bf16.msra.mxu1 %v2084_v5 }
  0x14   :  { %1993 = vmatprep.subr.bf16.mxu0 %v2085_v6  ;;  %2068 = vmatprep.subr.bf16.mxu1 %v2085_v6 }
  0x17   :  { %1994 = vmatpush3.bf16.msra.mxu0 %v2085_v6  ;;  %2076 = vmatpush3.bf16.msra.mxu1 %v2085_v6 }
  0x18   :  { %1995 = vmatprep.subr.bf16.mxu0 %v2086_v7  ;;  %2069 = vmatprep.subr.bf16.mxu1 %v2086_v7 }
  0x1b   :  { %1996 = vmatpush3.bf16.msra.mxu0 %v2086_v7  ;;  %2077 = vmatpush3.bf16.msra.mxu1 %v2086_v7 }
  0x1c   :  { %1997 = vmatprep.subr.bf16.mxu0 %v2087_v8  ;;  %2070 = vmatprep.subr.bf16.mxu1 %v2087_v8 }
  0x1f   :  { %1998 = vmatpush3.bf16.msra.mxu0 %v2087_v8  ;;  %2078 = vmatpush3.bf16.msra.mxu1 %v2087_v8 }
  0x22   :  { %2000 = vmatmul.mubr.bf16.vlgmr.msra.gmra.mrb[0].mxu0 %v2089_v10  ;;  %2032 = vmatmul.mubr.bf16.vlgmr.msra.gmra.mrb[0].mxu1 %v2105_v12 }
  0x23   :  { %2003 = vmatprep.mubr.bf16.mxu0 %v2090_v11  ;;  %2035 = vmatprep.mubr.bf16.mxu1 %v2106_v13 }
  0x2a   :  { %2004 = vmatmul.mubr.bf16.gmra.mrb[4].mxu0 %v2091_v14  ;;  %2036 = vmatmul.mubr.bf16.gmra.mrb[4].mxu1 %v2107_v16 }
  0x2b   :  { %2007 = vmatprep.mubr.bf16.mxu0 %v2092_v15  ;;  %2039 = vmatprep.mubr.bf16.mxu1 %v2108_v17 }
  0x32   :  { %2008 = vmatmul.mubr.bf16.gmra.mrb[8].mxu0 %v2093_v18  ;;  %2040 = vmatmul.mubr.bf16.gmra.mrb[8].mxu1 %v2109_v19 }
  0x33   :  { %2011 = vmatprep.mubr.bf16.mxu0 %v2094_v20  ;;  %2043 = vmatprep.mubr.bf16.mxu1 %v2110_v21 }
  0x3a   :  { %2012 = vmatmul.mubr.bf16.gmra.mrb[12].mxu0 %v2095_v22  ;;  %2044 = vmatmul.mubr.bf16.gmra.mrb[12].mxu1 %v2111_v23 }
  0x3b   :  { %2015 = vmatprep.mubr.bf16.mxu0 %v2096_v24  ;;  %2047 = vmatprep.mubr.bf16.mxu1 %v2112_v25 }
  0x42   :  { %2016 = vmatmul.mubr.bf16.gmra.mrb[16].mxu0 %v2097_v26  ;;  %2048 = vmatmul.mubr.bf16.gmra.mrb[16].mxu1 %v2113_v27 }
  0x43   :  { %2019 = vmatprep.mubr.bf16.mxu0 %v2098_v28  ;;  %2051 = vmatprep.mubr.bf16.mxu1 %v2114_v29 }
  0x4a   :  { %2020 = vmatmul.mubr.bf16.gmra.mrb[20].mxu0 %v2099_v30  ;;  %2052 = vmatmul.mubr.bf16.gmra.mrb[20].mxu1 %v2115_v31 }
  0x4b   :  { %2023 = vmatprep.mubr.bf16.mxu0 %v2100_v32  ;;  %2055 = vmatprep.mubr.bf16.mxu1 %v2116_v33 }
  0x52   :  { %2024 = vmatmul.mubr.bf16.gmra.mrb[24].mxu0 %v2101_v34  ;;  %2056 = vmatmul.mubr.bf16.gmra.mrb[24].mxu1 %v2117_v35 }
  0x53   :  { %2027 = vmatprep.mubr.bf16.mxu0 %v2102_v36  ;;  %2059 = vmatprep.mubr.bf16.mxu1 %v2118_v37 }
  0x5a   :  { %2028 = vmatmul.mubr.bf16.gmra.mrb[28].mxu0 %v2103_v38  ;;  %2060 = vmatmul.mubr.bf16.gmra.mrb[28].mxu1 %v2119_v39 }
  0xf5   :  { %v2001_v41 = vpop.f32.mrb[0].mxu0  ;;  %v2270_v42 = vpop.f32.mrb[0].mxu1 }
  0xf6   :  { %976 = vst.msk [vmem:[#allocation2 + $0x10] sm:$0xff] %vm635_vm1, %v2001_v41  ;;  %v379_v43 = vpop.f32.mrb[1].mxu0  ;;  %1008 = vst.msk [vmem:[#allocation2 + $0x110] sm:$0xff] %vm635_vm1, %v2270_v42  ;;  %v2275_v44 = vpop.f32.mrb[1].mxu1  ;;  %v775_v50 = vmul.f32 %v2001_v41, %v2001_v41  ;;  %v639_v55 = vsel %vm635_vm1, %v2001_v41, 0.0 }
  0xf7   :  { %v773_v45 = vmul.f32 %v379_v43, %v379_v43  ;;  %974 = vst.msk [vmem:[#allocation2] sm:$0xff] %vm635_vm1, %v379_v43  ;;  %v2002_v46 = vpop.f32.mrb[2].mxu0  ;;  %1006 = vst.msk [vmem:[#allocation2 + $0x100] sm:$0xff] %vm635_vm1, %v2275_v44  ;;  %v2280_v47 = vpop.f32.mrb[2].mxu1  ;;  %v636_v51 = vsel %vm635_vm1, %v379_v43, 0.0 }
  0xf8   :  { %977 = vst.msk [vmem:[#allocation2 + $0x18] sm:$0xff] %vm635_vm1, %v2002_v46  ;;  %v382_v48 = vpop.f32.mrb[3].mxu0  ;;  %1009 = vst.msk [vmem:[#allocation2 + $0x118] sm:$0xff] %vm635_vm1, %v2280_v47  ;;  %v2285_v49 = vpop.f32.mrb[3].mxu1  ;;  %v776_v57 = vmul.f32 %v2002_v46, %v2002_v46  ;;  %v840_v61 = vsel %vm635_vm1, %v775_v50, 0.0  ;;  %v641_v62 = vsel %vm635_vm1, %v2002_v46, 0.0 }
  0xf9   :  { %v637_v52 = vsel %vm635_vm1, %v382_v48, 0.0  ;;  %v774_v53 = vmul.f32 %v382_v48, %v382_v48  ;;  %975 = vst.msk [vmem:[#allocation2 + $0x8] sm:$0xff] %vm635_vm1, %v382_v48  ;;  %1007 = vst.msk [vmem:[#allocation2 + $0x108] sm:$0xff] %vm635_vm1, %v2285_v49  ;;  %v837_v56 = vsel %vm635_vm1, %v773_v45, 0.0 }
  0xfa   :  { %v638_v54 = vadd.f32 %v637_v52, %v636_v51  ;;  %v842_v5 = vsel %vm635_vm1, %v776_v57, 0.0 }
  0xfb   :  { %v838_v58 = vsel %vm635_vm1, %v774_v53, 0.0 }
  0xfc   :  { %v640_v59 = vadd.f32 %v639_v55, %v638_v54  ;;  %v839_v60 = vadd.f32 %v838_v58, %v837_v56 }
  0xfd   :  { %v2005_v63 = vpop.f32.mrb[4].mxu0  ;;  %v2297_v0 = vpop.f32.mrb[4].mxu1 }
  0xfe   :  { %v841_v1 = vadd.f32 %v840_v61, %v839_v60  ;;  %980 = vst.msk [vmem:[#allocation2 + $0x30] sm:$0xff] %vm635_vm1, %v2005_v63  ;;  %v395_v2 = vpop.f32.mrb[5].mxu0  ;;  %v642_v3 = vadd.f32 %v641_v62, %v640_v59  ;;  %1012 = vst.msk [vmem:[#allocation2 + $0x130] sm:$0xff] %vm635_vm1, %v2297_v0  ;;  %v2302_v4 = vpop.f32.mrb[5].mxu1  ;;  %v779_v14 = vmul.f32 %v2005_v63, %v2005_v63  ;;  %v647_v20 = vsel %vm635_vm1, %v2005_v63, 0.0 }
  0xff   :  { %v643_v6 = vsel %vm635_vm1, %v395_v2, 0.0  ;;  %v777_v7 = vmul.f32 %v395_v2, %v395_v2  ;;  %978 = vst.msk [vmem:[#allocation2 + $0x20] sm:$0xff] %vm635_vm1, %v395_v2  ;;  %v2006_v8 = vpop.f32.mrb[6].mxu0  ;;  %1010 = vst.msk [vmem:[#allocation2 + $0x120] sm:$0xff] %vm635_vm1, %v2302_v4  ;;  %v2309_v9 = vpop.f32.mrb[6].mxu1 }
 0x100   :  { %v644_v10 = vadd.f32 %v643_v6, %v642_v3  ;;  %v843_v11 = vadd.f32 %v842_v5, %v841_v1  ;;  %981 = vst.msk [vmem:[#allocation2 + $0x38] sm:$0xff] %vm635_vm1, %v2006_v8  ;;  %v398_v12 = vpop.f32.mrb[7].mxu0  ;;  %1013 = vst.msk [vmem:[#allocation2 + $0x138] sm:$0xff] %vm635_vm1, %v2309_v9  ;;  %v2314_v13 = vpop.f32.mrb[7].mxu1  ;;  %v780_v21 = vmul.f32 %v2006_v8, %v2006_v8  ;;  %v848_v25 = vsel %vm635_vm1, %v779_v14, 0.0 }
 0x101   :  { %v844_v15 = vsel %vm635_vm1, %v777_v7, 0.0  ;;  %v645_v16 = vsel %vm635_vm1, %v398_v12, 0.0  ;;  %v778_v17 = vmul.f32 %v398_v12, %v398_v12  ;;  %979 = vst.msk [vmem:[#allocation2 + $0x28] sm:$0xff] %vm635_vm1, %v398_v12  ;;  %1011 = vst.msk [vmem:[#allocation2 + $0x128] sm:$0xff] %vm635_vm1, %v2314_v13  ;;  %v649_v26 = vsel %vm635_vm1, %v2006_v8, 0.0 }
 0x102   :  { %v845_v18 = vadd.f32 %v844_v15, %v843_v11  ;;  %v646_v19 = vadd.f32 %v645_v16, %v644_v10  ;;  %v850_v33 = vsel %vm635_vm1, %v780_v21, 0.0 }
 0x103   :  { %v846_v22 = vsel %vm635_vm1, %v778_v17, 0.0 }
 0x104   :  { %v648_v23 = vadd.f32 %v647_v20, %v646_v19  ;;  %v847_v24 = vadd.f32 %v846_v22, %v845_v18 }
 0x105   :  { %v2009_v27 = vpop.f32.mrb[8].mxu0  ;;  %v2325_v28 = vpop.f32.mrb[8].mxu1 }
 0x106   :  { %v849_v29 = vadd.f32 %v848_v25, %v847_v24  ;;  %984 = vst.msk [vmem:[#allocation2 + $0x50] sm:$0xff] %vm635_vm1, %v2009_v27  ;;  %v411_v30 = vpop.f32.mrb[9].mxu0  ;;  %v650_v31 = vadd.f32 %v649_v26, %v648_v23  ;;  %1016 = vst.msk [vmem:[#allocation2 + $0x150] sm:$0xff] %vm635_vm1, %v2325_v28  ;;  %v2330_v32 = vpop.f32.mrb[9].mxu1  ;;  %v783_v41 = vmul.f32 %v2009_v27, %v2009_v27  ;;  %v655_v52 = vsel %vm635_vm1, %v2009_v27, 0.0 }
 0x107   :  { %v651_v34 = vsel %vm635_vm1, %v411_v30, 0.0  ;;  %v781_v35 = vmul.f32 %v411_v30, %v411_v30  ;;  %982 = vst.msk [vmem:[#allocation2 + $0x40] sm:$0xff] %vm635_vm1, %v411_v30  ;;  %v2010_v36 = vpop.f32.mrb[10].mxu0  ;;  %1014 = vst.msk [vmem:[#allocation2 + $0x140] sm:$0xff] %vm635_vm1, %v2330_v32  ;;  %v2338_v40 = vpop.f32.mrb[10].mxu1 }
 0x108   :  { %v652_v37 = vadd.f32 %v651_v34, %v650_v31  ;;  %v851_v38 = vadd.f32 %v850_v33, %v849_v29  ;;  %985 = vst.msk [vmem:[#allocation2 + $0x58] sm:$0xff] %vm635_vm1, %v2010_v36  ;;  %v414_v39 = vpop.f32.mrb[11].mxu0  ;;  %1017 = vst.msk [vmem:[#allocation2 + $0x158] sm:$0xff] %vm635_vm1, %v2338_v40  ;;  %v2345_v48 = vpop.f32.mrb[11].mxu1  ;;  %v784_v53 = vmul.f32 %v2010_v36, %v2010_v36  ;;  %v856_v57 = vsel %vm635_vm1, %v783_v41, 0.0 }
 0x109   :  { %v852_v43 = vsel %vm635_vm1, %v781_v35, 0.0  ;;  %v653_v45 = vsel %vm635_vm1, %v414_v39, 0.0  ;;  %v782_v46 = vmul.f32 %v414_v39, %v414_v39  ;;  %983 = vst.msk [vmem:[#allocation2 + $0x48] sm:$0xff] %vm635_vm1, %v414_v39  ;;  %1015 = vst.msk [vmem:[#allocation2 + $0x148] sm:$0xff] %vm635_vm1, %v2345_v48  ;;  %v657_v58 = vsel %vm635_vm1, %v2010_v36, 0.0 }
 0x10a   :  { %v853_v50 = vadd.f32 %v852_v43, %v851_v38  ;;  %v654_v51 = vadd.f32 %v653_v45, %v652_v37  ;;  %v858_v2 = vsel %vm635_vm1, %v784_v53, 0.0 }
 0x10b   :  { %v854_v54 = vsel %vm635_vm1, %v782_v46, 0.0 }
 0x10c   :  { %v656_v55 = vadd.f32 %v655_v52, %v654_v51  ;;  %v855_v56 = vadd.f32 %v854_v54, %v853_v50 }
 0x10d   :  { %v2013_v59 = vpop.f32.mrb[12].mxu0  ;;  %v2353_v60 = vpop.f32.mrb[12].mxu1 }
 0x10e   :  { %v857_v61 = vadd.f32 %v856_v57, %v855_v56  ;;  %988 = vst.msk [vmem:[#allocation2 + $0x70] sm:$0xff] %vm635_vm1, %v2013_v59  ;;  %v427_v62 = vpop.f32.mrb[13].mxu0  ;;  %v658_v63 = vadd.f32 %v657_v58, %v656_v55  ;;  %1020 = vst.msk [vmem:[#allocation2 + $0x170] sm:$0xff] %vm635_vm1, %v2353_v60  ;;  %v2358_v1 = vpop.f32.mrb[13].mxu1  ;;  %v787_v14 = vmul.f32 %v2013_v59, %v2013_v59  ;;  %v663_v20 = vsel %vm635_vm1, %v2013_v59, 0.0 }
 0x10f   :  { %v659_v3 = vsel %vm635_vm1, %v427_v62, 0.0  ;;  %v785_v5 = vmul.f32 %v427_v62, %v427_v62  ;;  %986 = vst.msk [vmem:[#allocation2 + $0x60] sm:$0xff] %vm635_vm1, %v427_v62  ;;  %v2014_v6 = vpop.f32.mrb[14].mxu0  ;;  %1018 = vst.msk [vmem:[#allocation2 + $0x160] sm:$0xff] %vm635_vm1, %v2358_v1  ;;  %v2365_v7 = vpop.f32.mrb[14].mxu1 }
 0x110   :  { %v660_v8 = vadd.f32 %v659_v3, %v658_v63  ;;  %v859_v10 = vadd.f32 %v858_v2, %v857_v61  ;;  %989 = vst.msk [vmem:[#allocation2 + $0x78] sm:$0xff] %vm635_vm1, %v2014_v6  ;;  %v430_v11 = vpop.f32.mrb[15].mxu0  ;;  %1021 = vst.msk [vmem:[#allocation2 + $0x178] sm:$0xff] %vm635_vm1, %v2365_v7  ;;  %v2370_v12 = vpop.f32.mrb[15].mxu1  ;;  %v788_v21 = vmul.f32 %v2014_v6, %v2014_v6  ;;  %v864_v25 = vsel %vm635_vm1, %v787_v14, 0.0 }
 0x111   :  { %v860_v15 = vsel %vm635_vm1, %v785_v5, 0.0  ;;  %v661_v16 = vsel %vm635_vm1, %v430_v11, 0.0  ;;  %v786_v17 = vmul.f32 %v430_v11, %v430_v11  ;;  %987 = vst.msk [vmem:[#allocation2 + $0x68] sm:$0xff] %vm635_vm1, %v430_v11  ;;  %1019 = vst.msk [vmem:[#allocation2 + $0x168] sm:$0xff] %vm635_vm1, %v2370_v12  ;;  %v665_v26 = vsel %vm635_vm1, %v2014_v6, 0.0 }
 0x112   :  { %v861_v18 = vadd.f32 %v860_v15, %v859_v10  ;;  %v662_v19 = vadd.f32 %v661_v16, %v660_v8  ;;  %v866_v35 = vsel %vm635_vm1, %v788_v21, 0.0 }
 0x113   :  { %v862_v22 = vsel %vm635_vm1, %v786_v17, 0.0 }
 0x114   :  { %v664_v23 = vadd.f32 %v663_v20, %v662_v19  ;;  %v863_v24 = vadd.f32 %v862_v22, %v861_v18 }
 0x115   :  { %v2017_v27 = vpop.f32.mrb[16].mxu0  ;;  %v2381_v29 = vpop.f32.mrb[16].mxu1 }
 0x116   :  { %v865_v30 = vadd.f32 %v864_v25, %v863_v24  ;;  %992 = vst.msk [vmem:[#allocation2 + $0x90] sm:$0xff] %vm635_vm1, %v2017_v27  ;;  %v443_v31 = vpop.f32.mrb[17].mxu0  ;;  %v666_v33 = vadd.f32 %v665_v26, %v664_v23  ;;  %1024 = vst.msk [vmem:[#allocation2 + $0x190] sm:$0xff] %vm635_vm1, %v2381_v29  ;;  %v2386_v34 = vpop.f32.mrb[17].mxu1  ;;  %v791_v46 = vmul.f32 %v2017_v27, %v2017_v27  ;;  %v671_v56 = vsel %vm635_vm1, %v2017_v27, 0.0 }
 0x117   :  { %v667_v36 = vsel %vm635_vm1, %v443_v31, 0.0  ;;  %v789_v37 = vmul.f32 %v443_v31, %v443_v31  ;;  %990 = vst.msk [vmem:[#allocation2 + $0x80] sm:$0xff] %vm635_vm1, %v443_v31  ;;  %v2018_v38 = vpop.f32.mrb[18].mxu0  ;;  %1022 = vst.msk [vmem:[#allocation2 + $0x180] sm:$0xff] %vm635_vm1, %v2386_v34  ;;  %v2394_v45 = vpop.f32.mrb[18].mxu1 }
 0x118   :  { %v668_v39 = vadd.f32 %v667_v36, %v666_v33  ;;  %v867_v41 = vadd.f32 %v866_v35, %v865_v30  ;;  %993 = vst.msk [vmem:[#allocation2 + $0x98] sm:$0xff] %vm635_vm1, %v2018_v38  ;;  %v446_v43 = vpop.f32.mrb[19].mxu0  ;;  %1025 = vst.msk [vmem:[#allocation2 + $0x198] sm:$0xff] %vm635_vm1, %v2394_v45  ;;  %v2401_v53 = vpop.f32.mrb[19].mxu1  ;;  %v792_v57 = vmul.f32 %v2018_v38, %v2018_v38  ;;  %v872_v62 = vsel %vm635_vm1, %v791_v46, 0.0 }
 0x119   :  { %v868_v50 = vsel %vm635_vm1, %v789_v37, 0.0  ;;  %v669_v51 = vsel %vm635_vm1, %v446_v43, 0.0  ;;  %v790_v52 = vmul.f32 %v446_v43, %v446_v43  ;;  %991 = vst.msk [vmem:[#allocation2 + $0x88] sm:$0xff] %vm635_vm1, %v446_v43  ;;  %1023 = vst.msk [vmem:[#allocation2 + $0x188] sm:$0xff] %vm635_vm1, %v2401_v53  ;;  %v673_v63 = vsel %vm635_vm1, %v2018_v38, 0.0 }
 0x11a   :  { %v869_v54 = vadd.f32 %v868_v50, %v867_v41  ;;  %v670_v55 = vadd.f32 %v669_v51, %v668_v39  ;;  %v874_v11 = vsel %vm635_vm1, %v792_v57, 0.0 }
 0x11b   :  { %v870_v58 = vsel %vm635_vm1, %v790_v52, 0.0 }
 0x11c   :  { %v672_v59 = vadd.f32 %v671_v56, %v670_v55  ;;  %v871_v61 = vadd.f32 %v870_v58, %v869_v54 }
 0x11d   :  { %v2021_v2 = vpop.f32.mrb[20].mxu0  ;;  %v2409_v3 = vpop.f32.mrb[20].mxu1 }
 0x11e   :  { %v873_v5 = vadd.f32 %v872_v62, %v871_v61  ;;  %996 = vst.msk [vmem:[#allocation2 + $0xb0] sm:$0xff] %vm635_vm1, %v2021_v2  ;;  %v459_v6 = vpop.f32.mrb[21].mxu0  ;;  %v674_v8 = vadd.f32 %v673_v63, %v672_v59  ;;  %1028 = vst.msk [vmem:[#allocation2 + $0x1b0] sm:$0xff] %vm635_vm1, %v2409_v3  ;;  %v2414_v10 = vpop.f32.mrb[21].mxu1  ;;  %v795_v22 = vmul.f32 %v2021_v2, %v2021_v2  ;;  %v679_v30 = vsel %vm635_vm1, %v2021_v2, 0.0 }
 0x11f   :  { %v675_v14 = vsel %vm635_vm1, %v459_v6, 0.0  ;;  %v793_v15 = vmul.f32 %v459_v6, %v459_v6  ;;  %994 = vst.msk [vmem:[#allocation2 + $0xa0] sm:$0xff] %vm635_vm1, %v459_v6  ;;  %v2022_v16 = vpop.f32.mrb[22].mxu0  ;;  %1026 = vst.msk [vmem:[#allocation2 + $0x1a0] sm:$0xff] %vm635_vm1, %v2414_v10  ;;  %v2421_v17 = vpop.f32.mrb[22].mxu1 }
 0x120   :  { %v676_v18 = vadd.f32 %v675_v14, %v674_v8  ;;  %v875_v19 = vadd.f32 %v874_v11, %v873_v5  ;;  %997 = vst.msk [vmem:[#allocation2 + $0xb8] sm:$0xff] %vm635_vm1, %v2022_v16  ;;  %v462_v20 = vpop.f32.mrb[23].mxu0  ;;  %1029 = vst.msk [vmem:[#allocation2 + $0x1b8] sm:$0xff] %vm635_vm1, %v2421_v17  ;;  %v2426_v21 = vpop.f32.mrb[23].mxu1  ;;  %v796_v31 = vmul.f32 %v2022_v16, %v2022_v16  ;;  %v880_v37 = vsel %vm635_vm1, %v795_v22, 0.0 }
 0x121   :  { %v876_v23 = vsel %vm635_vm1, %v793_v15, 0.0  ;;  %v677_v24 = vsel %vm635_vm1, %v462_v20, 0.0  ;;  %v794_v25 = vmul.f32 %v462_v20, %v462_v20  ;;  %995 = vst.msk [vmem:[#allocation2 + $0xa8] sm:$0xff] %vm635_vm1, %v462_v20  ;;  %1027 = vst.msk [vmem:[#allocation2 + $0x1a8] sm:$0xff] %vm635_vm1, %v2426_v21  ;;  %v681_v38 = vsel %vm635_vm1, %v2022_v16, 0.0 }
 0x122   :  { %v877_v26 = vadd.f32 %v876_v23, %v875_v19  ;;  %v678_v27 = vadd.f32 %v677_v24, %v676_v18  ;;  %v882_v52 = vsel %vm635_vm1, %v796_v31, 0.0 }
 0x123   :  { %v878_v33 = vsel %vm635_vm1, %v794_v25, 0.0 }
 0x124   :  { %v680_v35 = vadd.f32 %v679_v30, %v678_v27  ;;  %v879_v36 = vadd.f32 %v878_v33, %v877_v26 }
 0x125   :  { %v2025_v39 = vpop.f32.mrb[24].mxu0  ;;  %v2437_v41 = vpop.f32.mrb[24].mxu1 }
 0x126   :  { %v881_v43 = vadd.f32 %v880_v37, %v879_v36  ;;  %1000 = vst.msk [vmem:[#allocation2 + $0xd0] sm:$0xff] %vm635_vm1, %v2025_v39  ;;  %v475_v46 = vpop.f32.mrb[25].mxu0  ;;  %v682_v50 = vadd.f32 %v681_v38, %v680_v35  ;;  %1032 = vst.msk [vmem:[#allocation2 + $0x1d0] sm:$0xff] %vm635_vm1, %v2437_v41  ;;  %v2442_v51 = vpop.f32.mrb[25].mxu1  ;;  %v799_v62 = vmul.f32 %v2025_v39, %v2025_v39  ;;  %v687_v14 = vsel %vm635_vm1, %v2025_v39, 0.0 }
 0x127   :  { %v683_v54 = vsel %vm635_vm1, %v475_v46, 0.0  ;;  %v797_v55 = vmul.f32 %v475_v46, %v475_v46  ;;  %998 = vst.msk [vmem:[#allocation2 + $0xc0] sm:$0xff] %vm635_vm1, %v475_v46  ;;  %v2026_v56 = vpop.f32.mrb[26].mxu0  ;;  %1030 = vst.msk [vmem:[#allocation2 + $0x1c0] sm:$0xff] %vm635_vm1, %v2442_v51  ;;  %v2450_v61 = vpop.f32.mrb[26].mxu1 }
 0x128   :  { %v684_v57 = vadd.f32 %v683_v54, %v682_v50  ;;  %v883_v58 = vadd.f32 %v882_v52, %v881_v43  ;;  %1001 = vst.msk [vmem:[#allocation2 + $0xd8] sm:$0xff] %vm635_vm1, %v2026_v56  ;;  %v478_v59 = vpop.f32.mrb[27].mxu0  ;;  %1033 = vst.msk [vmem:[#allocation2 + $0x1d8] sm:$0xff] %vm635_vm1, %v2450_v61  ;;  %v2457_v6 = vpop.f32.mrb[27].mxu1  ;;  %v800_v15 = vmul.f32 %v2026_v56, %v2026_v56  ;;  %v888_v20 = vsel %vm635_vm1, %v799_v62, 0.0 }
 0x129   :  { %v884_v63 = vsel %vm635_vm1, %v797_v55, 0.0  ;;  %v685_v2 = vsel %vm635_vm1, %v478_v59, 0.0  ;;  %v798_v5 = vmul.f32 %v478_v59, %v478_v59  ;;  %999 = vst.msk [vmem:[#allocation2 + $0xc8] sm:$0xff] %vm635_vm1, %v478_v59  ;;  %1031 = vst.msk [vmem:[#allocation2 + $0x1c8] sm:$0xff] %vm635_vm1, %v2457_v6  ;;  %v689_v22 = vsel %vm635_vm1, %v2026_v56, 0.0 }
 0x12a   :  { %v885_v8 = vadd.f32 %v884_v63, %v883_v58  ;;  %v686_v11 = vadd.f32 %v685_v2, %v684_v57  ;;  %v890_v31 = vsel %vm635_vm1, %v800_v15, 0.0  ;;  %v805_v63 = vmul.f32 %v2275_v44, %v2275_v44 }
 0x12b   :  { %v886_v16 = vsel %vm635_vm1, %v798_v5, 0.0 }
 0x12c   :  { %v688_v18 = vadd.f32 %v687_v14, %v686_v11  ;;  %v887_v19 = vadd.f32 %v886_v16, %v885_v8  ;;  %v699_v14 = vsel %vm635_vm1, %v2275_v44, 0.0  ;;  %v703_v44 = vsel %vm635_vm1, %v2270_v42, 0.0 }
 0x12d   :  { %v2029_v23 = vpop.f32.mrb[28].mxu0  ;;  %v2465_v24 = vpop.f32.mrb[28].mxu1 }
 0x12e   :  { %v889_v25 = vadd.f32 %v888_v20, %v887_v19  ;;  %1004 = vst.msk [vmem:[#allocation2 + $0xf0] sm:$0xff] %vm635_vm1, %v2029_v23  ;;  %v491_v26 = vpop.f32.mrb[29].mxu0  ;;  %v690_v27 = vadd.f32 %v689_v22, %v688_v18  ;;  %1036 = vst.msk [vmem:[#allocation2 + $0x1f0] sm:$0xff] %vm635_vm1, %v2465_v24  ;;  %v2470_v30 = vpop.f32.mrb[29].mxu1  ;;  %v803_v50 = vmul.f32 %v2029_v23, %v2029_v23  ;;  %v695_v58 = vsel %vm635_vm1, %v2029_v23, 0.0 }
 0x12f   :  { %v691_v33 = vsel %vm635_vm1, %v491_v26, 0.0  ;;  %v801_v35 = vmul.f32 %v491_v26, %v491_v26  ;;  %1002 = vst.msk [vmem:[#allocation2 + $0xe0] sm:$0xff] %vm635_vm1, %v491_v26  ;;  %v2030_v36 = vpop.f32.mrb[30].mxu0  ;;  %1034 = vst.msk [vmem:[#allocation2 + $0x1e0] sm:$0xff] %vm635_vm1, %v2470_v30  ;;  %v2477_v37 = vpop.f32.mrb[30].mxu1  ;;  %v900_v19 = vsel %vm635_vm1, %v805_v63, 0.0  ;;  %v806_v20 = vmul.f32 %v2285_v49, %v2285_v49 }
 0x130   :  { %v692_v38 = vadd.f32 %v691_v33, %v690_v27  ;;  %v891_v39 = vadd.f32 %v890_v31, %v889_v25  ;;  %1005 = vst.msk [vmem:[#allocation2 + $0xf8] sm:$0xff] %vm635_vm1, %v2030_v36  ;;  %v494_v43 = vpop.f32.mrb[31].mxu0  ;;  %1037 = vst.msk [vmem:[#allocation2 + $0x1f8] sm:$0xff] %vm635_vm1, %v2477_v37  ;;  %v2482_v46 = vpop.f32.mrb[31].mxu1  ;;  %v804_v59 = vmul.f32 %v2030_v36, %v2030_v36  ;;  %v896_v8 = vsel %vm635_vm1, %v803_v50, 0.0 }
 0x131   :  { %v892_v52 = vsel %vm635_vm1, %v801_v35, 0.0  ;;  %v693_v54 = vsel %vm635_vm1, %v494_v43, 0.0  ;;  %v802_v55 = vmul.f32 %v494_v43, %v494_v43  ;;  %1003 = vst.msk [vmem:[#allocation2 + $0xe8] sm:$0xff] %vm635_vm1, %v494_v43  ;;  %1035 = vst.msk [vmem:[#allocation2 + $0x1e8] sm:$0xff] %vm635_vm1, %v2482_v46  ;;  %v697_v11 = vsel %vm635_vm1, %v2030_v36, 0.0 }
 0x132   :  { %v893_v56 = vadd.f32 %v892_v52, %v891_v39  ;;  %v694_v57 = vadd.f32 %v693_v54, %v692_v38  ;;  %v898_v18 = vsel %vm635_vm1, %v804_v59, 0.0  ;;  %v807_v25 = vmul.f32 %v2270_v42, %v2270_v42 }
 0x133   :  { %v894_v62 = vsel %vm635_vm1, %v802_v55, 0.0  ;;  %v701_v26 = vsel %vm635_vm1, %v2285_v49, 0.0  ;;  %v808_v33 = vmul.f32 %v2280_v47, %v2280_v47  ;;  %v902_v35 = vsel %vm635_vm1, %v806_v20, 0.0 }
 0x134   :  { %v696_v2 = vadd.f32 %v695_v58, %v694_v57  ;;  %v895_v5 = vadd.f32 %v894_v62, %v893_v56  ;;  %v809_v36 = vmul.f32 %v2302_v4, %v2302_v4  ;;  %v904_v43 = vsel %vm635_vm1, %v807_v25, 0.0 }
 0x135   :  { %v705_v49 = vsel %vm635_vm1, %v2280_v47, 0.0  ;;  %v707_v50 = vsel %vm635_vm1, %v2302_v4, 0.0  ;;  %v906_v54 = vsel %vm635_vm1, %v808_v33, 0.0  ;;  %v810_v56 = vmul.f32 %v2314_v13, %v2314_v13 }
 0x136   :  { %v897_v15 = vadd.f32 %v896_v8, %v895_v5  ;;  %v698_v16 = vadd.f32 %v697_v11, %v696_v2  ;;  %v908_v55 = vsel %vm635_vm1, %v809_v36, 0.0  ;;  %v811_v59 = vmul.f32 %v2297_v0, %v2297_v0 }
 0x137   :  { %v709_v47 = vsel %vm635_vm1, %v2314_v13, 0.0  ;;  %v711_v4 = vsel %vm635_vm1, %v2297_v0, 0.0  ;;  %v812_v2 = vmul.f32 %v2309_v9, %v2309_v9  ;;  %v910_v5 = vsel %vm635_vm1, %v810_v56, 0.0 }
 0x138   :  { %v700_v22 = vadd.f32 %v699_v14, %v698_v16  ;;  %v899_v23 = vadd.f32 %v898_v18, %v897_v15  ;;  %v813_v8 = vmul.f32 %v2330_v32, %v2330_v32  ;;  %v912_v15 = vsel %vm635_vm1, %v811_v59, 0.0 }
 0x139   :  { %v713_v13 = vsel %vm635_vm1, %v2309_v9, 0.0  ;;  %v715_v16 = vsel %vm635_vm1, %v2330_v32, 0.0  ;;  %v717_v9 = vsel %vm635_vm1, %v2345_v48, 0.0  ;;  %v719_v32 = vsel %vm635_vm1, %v2325_v28, 0.0 }
 0x13a   :  { %v901_v27 = vadd.f32 %v900_v19, %v899_v23  ;;  %v702_v31 = vadd.f32 %v701_v26, %v700_v22  ;;  %v914_v19 = vsel %vm635_vm1, %v812_v2, 0.0  ;;  %v916_v20 = vsel %vm635_vm1, %v813_v8, 0.0 }
 0x13b   :  { %v814_v22 = vmul.f32 %v2345_v48, %v2345_v48  ;;  %v815_v26 = vmul.f32 %v2325_v28, %v2325_v28  ;;  %v721_v48 = vsel %vm635_vm1, %v2338_v40, 0.0  ;;  %v819_v56 = vmul.f32 %v2353_v60, %v2353_v60 }
 0x13c   :  { %v704_v38 = vadd.f32 %v703_v44, %v702_v31  ;;  %v903_v39 = vadd.f32 %v902_v35, %v901_v27  ;;  %v816_v44 = vmul.f32 %v2338_v40, %v2338_v40  ;;  %v817_v35 = vmul.f32 %v2358_v1, %v2358_v1 }
 0x13d   :  { %v918_v33 = vsel %vm635_vm1, %v814_v22, 0.0  ;;  %v725_v40 = vsel %vm635_vm1, %v2370_v12, 0.0  ;;  %v820_v59 = vmul.f32 %v2365_v7, %v2365_v7  ;;  %v928_v2 = vsel %vm635_vm1, %v819_v56, 0.0 }
 0x13e   :  { %v905_v52 = vadd.f32 %v904_v43, %v903_v39  ;;  %v706_v42 = vadd.f32 %v705_v49, %v704_v38  ;;  %v920_v39 = vsel %vm635_vm1, %v815_v26, 0.0  ;;  %v723_v43 = vsel %vm635_vm1, %v2358_v1, 0.0 }
 0x13f   :  { %v727_v1 = vsel %vm635_vm1, %v2353_v60, 0.0 }
 0x140   :  { %v708_v57 = vadd.f32 %v707_v50, %v706_v42  ;;  %v907_v58 = vadd.f32 %v906_v54, %v905_v52  ;;  %v922_v50 = vsel %vm635_vm1, %v816_v44, 0.0  ;;  %v924_v52 = vsel %vm635_vm1, %v817_v35, 0.0 }
 0x141   :  { %v818_v42 = vmul.f32 %v2370_v12, %v2370_v12  ;;  %v729_v12 = vsel %vm635_vm1, %v2365_v7, 0.0  ;;  %v733_v7 = vsel %vm635_vm1, %v2401_v53, 0.0 }
 0x142   :  { %v909_v62 = vadd.f32 %v908_v55, %v907_v58  ;;  %v710_v63 = vadd.f32 %v709_v47, %v708_v57 }
 0x143   :  { %v926_v47 = vsel %vm635_vm1, %v818_v42, 0.0 }
 0x144   :  { %v712_v11 = vadd.f32 %v711_v4, %v710_v63  ;;  %v911_v14 = vadd.f32 %v910_v5, %v909_v62  ;;  %v821_v62 = vmul.f32 %v2386_v34, %v2386_v34  ;;  %v731_v5 = vsel %vm635_vm1, %v2386_v34, 0.0 }
 0x145   :  { %v735_v34 = vsel %vm635_vm1, %v2381_v29, 0.0 }
 0x146   :  { %v913_v18 = vadd.f32 %v912_v15, %v911_v14  ;;  %v714_v0 = vadd.f32 %v713_v13, %v712_v11  ;;  %v930_v11 = vsel %vm635_vm1, %v820_v59, 0.0  ;;  %v932_v14 = vsel %vm635_vm1, %v821_v62, 0.0 }
 0x147   :  { %v822_v15 = vmul.f32 %v2401_v53, %v2401_v53  ;;  %v737_v53 = vsel %vm635_vm1, %v2394_v45, 0.0  ;;  %v831_v59 = vmul.f32 %v2437_v41, %v2437_v41 }
 0x148   :  { %v716_v23 = vadd.f32 %v715_v16, %v714_v0  ;;  %v915_v25 = vadd.f32 %v914_v19, %v913_v18  ;;  %v823_v18 = vmul.f32 %v2381_v29, %v2381_v29 }
 0x149   :  { %v934_v22 = vsel %vm635_vm1, %v822_v15, 0.0 }
 0x14a   :  { %v917_v27 = vadd.f32 %v916_v20, %v915_v25  ;;  %v718_v31 = vadd.f32 %v717_v9, %v716_v23  ;;  %v824_v20 = vmul.f32 %v2394_v45, %v2394_v45  ;;  %v825_v23 = vmul.f32 %v2414_v10, %v2414_v10 }
 0x14b   :  { %v936_v9 = vsel %vm635_vm1, %v823_v18, 0.0  ;;  %v741_v45 = vsel %vm635_vm1, %v2426_v21, 0.0 }
 0x14c   :  { %v720_v36 = vadd.f32 %v719_v32, %v718_v31  ;;  %v919_v38 = vadd.f32 %v918_v33, %v917_v27  ;;  %v739_v27 = vsel %vm635_vm1, %v2414_v10, 0.0  ;;  %v938_v32 = vsel %vm635_vm1, %v824_v20, 0.0 }
 0x14d   :  { %v940_v44 = vsel %vm635_vm1, %v825_v23, 0.0  ;;  %v826_v33 = vmul.f32 %v2426_v21, %v2426_v21  ;;  %v743_v10 = vsel %vm635_vm1, %v2409_v3, 0.0  ;;  %v745_v21 = vsel %vm635_vm1, %v2421_v17, 0.0 }
 0x14e   :  { %v921_v49 = vadd.f32 %v920_v39, %v919_v38  ;;  %v722_v28 = vadd.f32 %v721_v48, %v720_v36  ;;  %v827_v38 = vmul.f32 %v2409_v3, %v2409_v3 }
 0x150   :  { %v724_v54 = vadd.f32 %v723_v43, %v722_v28  ;;  %v923_v55 = vadd.f32 %v922_v50, %v921_v49  ;;  %v828_v43 = vmul.f32 %v2421_v17, %v2421_v17  ;;  %v942_v49 = vsel %vm635_vm1, %v826_v33, 0.0 }
 0x151   :  { %v829_v28 = vmul.f32 %v2442_v51, %v2442_v51  ;;  %v944_v42 = vsel %vm635_vm1, %v827_v38, 0.0  ;;  %v749_v17 = vsel %vm635_vm1, %v2457_v6, 0.0 }
 0x152   :  { %v925_v57 = vadd.f32 %v924_v52, %v923_v55  ;;  %v726_v58 = vadd.f32 %v725_v40, %v724_v54  ;;  %v747_v54 = vsel %vm635_vm1, %v2442_v51, 0.0  ;;  %v946_v56 = vsel %vm635_vm1, %v828_v43, 0.0 }
 0x153   :  { %v948_v40 = vsel %vm635_vm1, %v829_v28, 0.0  ;;  %v751_v51 = vsel %vm635_vm1, %v2437_v41, 0.0 }
 0x154   :  { %v728_v63 = vadd.f32 %v727_v1, %v726_v58  ;;  %v927_v4 = vadd.f32 %v926_v47, %v925_v57  ;;  %v830_v57 = vmul.f32 %v2457_v6, %v2457_v6  ;;  %v753_v6 = vsel %vm635_vm1, %v2450_v61, 0.0 }
 0x156   :  { %v929_v8 = vadd.f32 %v928_v2, %v927_v4  ;;  %v730_v60 = vadd.f32 %v729_v12, %v728_v63  ;;  %v832_v63 = vmul.f32 %v2450_v61, %v2450_v61  ;;  %v950_v4 = vsel %vm635_vm1, %v830_v57, 0.0 }
 0x157   :  { %v833_v2 = vmul.f32 %v2470_v30, %v2470_v30  ;;  %v757_v61 = vsel %vm635_vm1, %v2482_v46, 0.0 }
 0x158   :  { %v732_v13 = vadd.f32 %v731_v5, %v730_v60  ;;  %v931_v16 = vadd.f32 %v930_v11, %v929_v8  ;;  %v952_v8 = vsel %vm635_vm1, %v831_v59, 0.0  ;;  %v755_v60 = vsel %vm635_vm1, %v2470_v30, 0.0 }
 0x159   :  { %v956_v15 = vsel %vm635_vm1, %v833_v2, 0.0  ;;  %v759_v30 = vsel %vm635_vm1, %v2465_v24, 0.0  ;;  %v1060_v2 = vld [vmem:[#allocation2 + $0x30] sm:$0xff] }
 0x15a   :  { %v933_v0 = vadd.f32 %v932_v14, %v931_v16  ;;  %v734_v19 = vadd.f32 %v733_v7, %v732_v13  ;;  %v954_v14 = vsel %vm635_vm1, %v832_v63, 0.0  ;;  %v834_v13 = vmul.f32 %v2482_v46, %v2482_v46  ;;  %v1057_v63 = vld [vmem:[#allocation2 + $0x18] sm:$0xff] }
 0x15b   :  { %v835_v7 = vmul.f32 %v2465_v24, %v2465_v24 }
 0x15c   :  { %v736_v25 = vadd.f32 %v735_v34, %v734_v19  ;;  %v935_v26 = vadd.f32 %v934_v22, %v933_v0  ;;  %v836_v34 = vmul.f32 %v2477_v37, %v2477_v37  ;;  %v958_v20 = vsel %vm635_vm1, %v834_v13, 0.0  ;;  %v1066_v13 = vld [vmem:[#allocation2 + $0x60] sm:$0xff] }
 0x15e   :  { %v937_v31 = vadd.f32 %v936_v9, %v935_v26  ;;  %v738_v29 = vadd.f32 %v737_v53, %v736_v25  ;;  %v960_v25 = vsel %vm635_vm1, %v835_v7, 0.0  ;;  %v761_v26 = vsel %vm635_vm1, %v2477_v37, 0.0 }
 0x15f   :  { %v962_v46 = vsel %vm635_vm1, %v836_v34, 0.0 }
 0x160   :  { %v740_v35 = vadd.f32 %v739_v27, %v738_v29  ;;  %v939_v36 = vadd.f32 %v938_v32, %v937_v31 }
 0x162   :  { %v941_v39 = vadd.f32 %v940_v44, %v939_v36  ;;  %v742_v48 = vadd.f32 %v741_v45, %v740_v35  ;;  %v634_v45 = vld [vmem:[#allocation3] sm:$0x1] }
 0x164   :  { %v744_v50 = vadd.f32 %v743_v10, %v742_v48  ;;  %v943_v52 = vadd.f32 %v942_v49, %v941_v39  ;;  %v772_v10 = vld [vmem:[#allocation4] sm:$0x1] }
 0x166   :  { %v945_v55 = vadd.f32 %v944_v42, %v943_v52  ;;  %v746_v3 = vadd.f32 %v745_v21, %v744_v50 }
 0x168   :  { %v748_v58 = vadd.f32 %v747_v54, %v746_v3  ;;  %v947_v1 = vadd.f32 %v946_v56, %v945_v55  ;;  %v1119_v3 = vlaneseq }
 0x16a   :  { %v949_v47 = vadd.f32 %v948_v40, %v947_v1  ;;  %v750_v62 = vadd.f32 %v749_v17, %v748_v58  ;;  %v1047_v40 = vld [vmem:[%s4093_s2] sm:$0x1]  ;;  %v2659_v57 = vshrl.u32 %v1119_v3, 7 }
 0x16b   :  { %v2667_v17 = vld [vmem:[%s4094_s3] sm:$0x1] }
 0x16c   :  { %v752_v12 = vadd.f32 %v751_v51, %v750_v62  ;;  %v951_v5 = vadd.f32 %v950_v4, %v949_v47  ;;  %v4096_v1 = vsub.s32 0, %v2659_v57  ;;  %v1056_v62 = vld [vmem:[#allocation2 + $0x10] sm:$0xff]  ;;  %v1054_v51 = vld [vmem:[#allocation2] sm:$0xff]  ;;  %v1055_v4 = vld [vmem:[#allocation2 + $0x8] sm:$0xff] }
 0x16e   :  { %v953_v11 = vadd.f32 %v952_v8, %v951_v5  ;;  %v754_v41 = vadd.f32 %v753_v6, %v752_v12  ;;  %v1058_v12 = vld [vmem:[#allocation2 + $0x20] sm:$0xff]  ;;  %v1061_v5 = vld [vmem:[#allocation2 + $0x38] sm:$0xff]  ;;  %v1059_v8 = vld [vmem:[#allocation2 + $0x28] sm:$0xff] }
 0x16f   :  { %v1064_v6 = vld [vmem:[#allocation2 + $0x50] sm:$0xff] }
 0x170   :  { %v756_v16 = vadd.f32 %v755_v60, %v754_v41  ;;  %v955_v18 = vadd.f32 %v954_v14, %v953_v11  ;;  %v1062_v60 = vld [vmem:[#allocation2 + $0x40] sm:$0xff]  ;;  %v1065_v11 = vld [vmem:[#allocation2 + $0x58] sm:$0xff]  ;;  %v1063_v14 = vld [vmem:[#allocation2 + $0x48] sm:$0xff] }
 0x171   :  { %v1106_v41 = vld [vmem:[#allocation2 + $0x1a0] sm:$0xff] }
 0x172   :  { %v957_v0 = vadd.f32 %v956_v15, %v955_v18  ;;  %v758_v19 = vadd.f32 %v757_v61, %v756_v16  ;;  %v1068_v15 = vld [vmem:[#allocation2 + $0x70] sm:$0xff] }
 0x174   :  { %v760_v22 = vadd.f32 %v759_v30, %v758_v19  ;;  %v959_v23 = vadd.f32 %v958_v20, %v957_v0  ;;  %v1069_v0 = vld [vmem:[#allocation2 + $0x78] sm:$0xff]  ;;  %v1067_v19 = vld [vmem:[#allocation2 + $0x68] sm:$0xff]  ;;  %v1072_v30 = vld [vmem:[#allocation2 + $0x90] sm:$0xff] }
 0x176   :  { %v762_v9 = vadd.f32 %v761_v26, %v760_v22  ;;  %v961_v53 = vadd.f32 %v960_v25, %v959_v23  ;;  %v1070_v25 = vld [vmem:[#allocation2 + $0x80] sm:$0xff]  ;;  %v1073_v26 = vld [vmem:[#allocation2 + $0x98] sm:$0xff] }
 0x178   :  { %v763_v27 = vrot.slane %v762_v9, 4  ;;  %v963_v31 = vadd.f32 %v962_v46, %v961_v53 }
 0x17a   :  { %v764_v29 = vadd.f32 %v763_v27, %v762_v9  ;;  %v964_v24 = vrot.slane %v963_v31, 4  ;;  %v1071_v9 = vld [vmem:[#allocation2 + $0x88] sm:$0xff] }
 0x17c   :  { %v765_v32 = vrot.slane %v764_v29, 2  ;;  %v965_v44 = vadd.f32 %v964_v24, %v963_v31  ;;  %v1074_v24 = vld [vmem:[#allocation2 + $0xa0] sm:$0xff] }
 0x17e   :  { %v766_v33 = vadd.f32 %v765_v32, %v764_v29  ;;  %v966_v35 = vrot.slane %v965_v44, 2  ;;  %v1076_v29 = vld [vmem:[#allocation2 + $0xb0] sm:$0xff]  ;;  %v1077_v32 = vld [vmem:[#allocation2 + $0xb8] sm:$0xff] }
 0x180   :  { %v767_v36 = vrot.slane %v766_v33, 1  ;;  %v967_v38 = vadd.f32 %v966_v35, %v965_v44 }
 0x182   :  { %v768_v39 = vadd.f32 %v767_v36, %v766_v33  ;;  %v968_v48 = vrot.slane %v967_v38, 1 }
 0x184   :  { %v769_v43 = vadd.f32 %v768_v39, %v634_v45  ;;  %v969_v37 = vadd.f32 %v968_v48, %v967_v38  ;;  %v1075_v38 = vld [vmem:[#allocation2 + $0xa8] sm:$0xff]  ;;  %v1080_v45 = vld [vmem:[#allocation2 + $0xd0] sm:$0xff]  ;;  %v1078_v39 = vld [vmem:[#allocation2 + $0xc0] sm:$0xff] }
 0x186   :  { %771 = vst.msk [vmem:[#allocation3] sm:$0x1] %vm22_vm0, %v769_v43  ;;  %v970_v49 = vadd.f32 %v969_v37, %v772_v10 }
 0x188   :  { %971 = vst.msk [vmem:[#allocation4] sm:$0x1] %vm22_vm0, %v970_v49  ;;  %v1081_v49 = vld [vmem:[#allocation2 + $0xd8] sm:$0xff] }
 0x18d   :  { %v1041_v28 = vld [vmem:[#allocation3] sm:$0x1] }
 0x18e   :  { %v1042_v50 = vmul.f32 0.001953125, %v1041_v28  ;;  %v1079_v28 = vld [vmem:[#allocation2 + $0xc8] sm:$0xff] }
 0x18f   :  { %v1043_v52 = vld [vmem:[#allocation4] sm:$0x1] }
 0x190   :  { %v1044_v42 = vmul.f32 0.001953125, %v1043_v52  ;;  %v1045_v21 = vmul.f32 %v1042_v50, %v1042_v50  ;;  %v1088_v52 = vld [vmem:[#allocation2 + $0x110] sm:$0xff] }
 0x192   :  { %v1046_v54 = vsub.f32 %v1044_v42, %v1045_v21  ;;  %v1086_v42 = vld [vmem:[#allocation2 + $0x100] sm:$0xff]  ;;  %v1089_v21 = vld [vmem:[#allocation2 + $0x118] sm:$0xff] }
 0x194   :  { %v1048_v55 = vadd.f32 1e-05, %v1046_v54  ;;  %v1087_v54 = vld [vmem:[#allocation2 + $0x108] sm:$0xff] }
 0x196   :  { %2120 = vrsqrt.f32 %v1048_v55 }
 0x1a0   :  { %v2121_v56 = vpop.eup %2120 }
 0x1a1   :  { %v1050_v58 = vmul.f32 %v2121_v56, %v1047_v40 }
 0x1a3   :  { %v2662_v59 = vmul.f32 %v1050_v58, %v1042_v50  ;;  %v2671_v47 = vrot.slane %v1050_v58, %v4096_v1  ;;  %v1084_v50 = vld [vmem:[#allocation2 + $0xf0] sm:$0xff]  ;;  %v1082_v58 = vld [vmem:[#allocation2 + $0xe0] sm:$0xff] }
 0x1a5   :  { %v2676_v16 = vmul.f32 %v2671_v47, %v1054_v51  ;;  %v2679_v18 = vmul.f32 %v2671_v47, %v1055_v4  ;;  %v2682_v7 = vmul.f32 %v2671_v47, %v1056_v62  ;;  %v2685_v61 = vmul.f32 %v2671_v47, %v1057_v63  ;;  %v1085_v62 = vld [vmem:[#allocation2 + $0xf8] sm:$0xff]  ;;  %v1083_v51 = vld [vmem:[#allocation2 + $0xe8] sm:$0xff]  ;;  %v1092_v63 = vld [vmem:[#allocation2 + $0x130] sm:$0xff] }
 0x1a6   :  { %v2688_v34 = vmul.f32 %v2671_v47, %v1058_v12  ;;  %v2691_v20 = vmul.f32 %v2671_v47, %v1059_v8  ;;  %v2694_v22 = vmul.f32 %v2671_v47, %v1060_v2  ;;  %v2697_v23 = vmul.f32 %v2671_v47, %v1061_v5  ;;  %v1090_v4 = vld [vmem:[#allocation2 + $0x120] sm:$0xff]  ;;  %v1093_v2 = vld [vmem:[#allocation2 + $0x138] sm:$0xff] }
 0x1a7   :  { %v2700_v53 = vmul.f32 %v2671_v47, %v1062_v60  ;;  %v2703_v46 = vmul.f32 %v2671_v47, %v1063_v14  ;;  %v2706_v27 = vmul.f32 %v2671_v47, %v1064_v6  ;;  %v2709_v31 = vmul.f32 %v2671_v47, %v1065_v11  ;;  %v1091_v60 = vld [vmem:[#allocation2 + $0x128] sm:$0xff]  ;;  %v1096_v11 = vld [vmem:[#allocation2 + $0x150] sm:$0xff]  ;;  %v1094_v14 = vld [vmem:[#allocation2 + $0x140] sm:$0xff] }
 0x1a8   :  { %v2712_v44 = vmul.f32 %v2671_v47, %v1066_v13  ;;  %v2715_v33 = vmul.f32 %v2671_v47, %v1067_v19  ;;  %v2718_v35 = vmul.f32 %v2671_v47, %v1068_v15  ;;  %v2721_v36 = vmul.f32 %v2671_v47, %v1069_v0 }
 0x1a9   :  { %v2724_v48 = vmul.f32 %v2671_v47, %v1070_v25  ;;  %v2727_v10 = vmul.f32 %v2671_v47, %v1071_v9  ;;  %v2730_v43 = vmul.f32 %v2671_v47, %v1072_v30  ;;  %v2733_v37 = vmul.f32 %v2671_v47, %v1073_v26  ;;  %v1097_v30 = vld [vmem:[#allocation2 + $0x158] sm:$0xff]  ;;  %v1095_v25 = vld [vmem:[#allocation2 + $0x148] sm:$0xff]  ;;  %v1100_v26 = vld [vmem:[#allocation2 + $0x170] sm:$0xff] }
 0x1aa   :  { %v2736_v55 = vmul.f32 %v2671_v47, %v1074_v24  ;;  %v2739_v3 = vmul.f32 %v2671_v47, %v1075_v38  ;;  %v2742_v56 = vmul.f32 %v2671_v47, %v1076_v29  ;;  %v2745_v40 = vmul.f32 %v2671_v47, %v1077_v32  ;;  %v1098_v38 = vld [vmem:[#allocation2 + $0x160] sm:$0xff] }
 0x1ab   :  { %v2748_v12 = vmul.f32 %v2671_v47, %v1078_v39  ;;  %v2751_v5 = vmul.f32 %v2671_v47, %v1079_v28  ;;  %v2754_v8 = vmul.f32 %v2671_v47, %v1080_v45  ;;  %v2757_v6 = vmul.f32 %v2671_v47, %v1081_v49  ;;  %v1101_v45 = vld [vmem:[#allocation2 + $0x178] sm:$0xff]  ;;  %v1099_v39 = vld [vmem:[#allocation2 + $0x168] sm:$0xff] }
 0x1ac   :  { %v2760_v15 = vmul.f32 %v2671_v47, %v1082_v58  ;;  %v2763_v13 = vmul.f32 %v2671_v47, %v1083_v51  ;;  %v2766_v0 = vmul.f32 %v2671_v47, %v1084_v50  ;;  %v2769_v19 = vmul.f32 %v2671_v47, %v1085_v62  ;;  %v1105_v58 = vld [vmem:[#allocation2 + $0x198] sm:$0xff] }
 0x1ad   :  { %v2772_v9 = vmul.f32 %v2671_v47, %v1086_v42  ;;  %v2775_v29 = vmul.f32 %v2671_v47, %v1087_v54  ;;  %v2778_v24 = vmul.f32 %v2671_v47, %v1088_v52  ;;  %v2781_v32 = vmul.f32 %v2671_v47, %v1089_v21  ;;  %v1104_v52 = vld [vmem:[#allocation2 + $0x190] sm:$0xff]  ;;  %v1102_v54 = vld [vmem:[#allocation2 + $0x180] sm:$0xff] }
 0x1ae   :  { %v2784_v49 = vmul.f32 %v2671_v47, %v1090_v4  ;;  %v2787_v28 = vmul.f32 %v2671_v47, %v1091_v60  ;;  %v2790_v50 = vmul.f32 %v2671_v47, %v1092_v63  ;;  %v2793_v42 = vmul.f32 %v2671_v47, %v1093_v2  ;;  %v1103_v63 = vld [vmem:[#allocation2 + $0x188] sm:$0xff]  ;;  %v1108_v60 = vld [vmem:[#allocation2 + $0x1b0] sm:$0xff] }
 0x1af   :  { %v2796_v21 = vmul.f32 %v2671_v47, %v1094_v14  ;;  %v2799_v62 = vmul.f32 %v2671_v47, %v1095_v25  ;;  %v2802_v51 = vmul.f32 %v2671_v47, %v1096_v11  ;;  %v2805_v4 = vmul.f32 %v2671_v47, %v1097_v30  ;;  %v1109_v11 = vld [vmem:[#allocation2 + $0x1b8] sm:$0xff] }
 0x1b0   :  { %v2808_v2 = vmul.f32 %v2671_v47, %v1098_v38  ;;  %v2811_v1 = vmul.f32 %v2671_v47, %v1099_v39  ;;  %v2814_v14 = vmul.f32 %v2671_v47, %v1100_v26  ;;  %v2817_v25 = vmul.f32 %v2671_v47, %v1101_v45  ;;  %v1110_v45 = vld [vmem:[#allocation2 + $0x1c0] sm:$0xff] }
 0x1b1   :  { %4130 = vst [vmem:[#allocation5_spill] sm:$0xff] %v2799_v62  ;;  %4131 = vst [vmem:[#allocation6_spill] sm:$0xff] %v2802_v51  ;;  %v1107_v51 = vld [vmem:[#allocation2 + $0x1a8] sm:$0xff]  ;;  %v1112_v62 = vld [vmem:[#allocation2 + $0x1d0] sm:$0xff]  ;;  %v2820_v30 = vmul.f32 %v2671_v47, %v1102_v54  ;;  %v2826_v38 = vmul.f32 %v2671_v47, %v1104_v52  ;;  %v4138_v39 = vsub.s32 0, %v2659_v57  ;;  %v4139_v26 = vsub.f32 %v2667_v17, %v2662_v59 }
 0x1b2   :  { %4132 = vst [vmem:[#allocation7_spill] sm:$0xff] %v2805_v4  ;;  %4133 = vst [vmem:[#allocation8_spill] sm:$0xff] %v2808_v2  ;;  %v2823_v4 = vmul.f32 %v2671_v47, %v1103_v63  ;;  %v2836_v2 = vmul.f32 %v2671_v47, %v1105_v58  ;;  %v2839_v54 = vmul.f32 %v2671_v47, %v1106_v41  ;;  %v1116_v57 = vld [vmem:[#allocation2 + $0x1f0] sm:$0xff]  ;;  %v1115_v59 = vld [vmem:[#allocation2 + $0x1e8] sm:$0xff] }
 0x1b3   :  { %4134 = vst [vmem:[#allocation9_spill] sm:$0xff] %v2811_v1  ;;  %4135 = vst [vmem:[#allocation10_spill] sm:$0xff] %v2814_v14  ;;  %v2833_v14 = vrot.slane %v4139_v26, %v4138_v39  ;;  %v1111_v1 = vld [vmem:[#allocation2 + $0x1c8] sm:$0xff]  ;;  %v2842_v63 = vmul.f32 %v2671_v47, %v1107_v51  ;;  %v2845_v52 = vmul.f32 %v2671_v47, %v1108_v60  ;;  %v1117_v51 = vld [vmem:[#allocation2 + $0x1f8] sm:$0xff] }
 0x1b4   :  { %4136 = vst [vmem:[#allocation11_spill] sm:$0xff] %v2817_v25  ;;  %4137 = vst [vmem:[#allocation12_spill] sm:$0xff] %v2826_v38  ;;  %v1113_v25 = vld [vmem:[#allocation2 + $0x1d8] sm:$0xff]  ;;  %v1114_v38 = vld [vmem:[#allocation2 + $0x1e0] sm:$0xff]  ;;  %v2848_v17 = vmul.f32 %v2671_v47, %v1109_v11  ;;  %v2851_v39 = vmul.f32 %v2671_v47, %v1110_v45  ;;  %v2854_v58 = vmul.f32 %v2671_v47, %v1111_v1 }
 0x1b5   :  { %4140 = vst [vmem:[#allocation13_spill] sm:$0xff] %v2845_v52  ;;  %v2857_v41 = vmul.f32 %v2671_v47, %v1112_v62  ;;  %v2860_v26 = vmul.f32 %v2671_v47, %v1113_v25  ;;  %v2863_v60 = vmul.f32 %v2671_v47, %v1114_v38  ;;  %v2866_v52 = vmul.f32 %v2671_v47, %v1115_v59 }
 0x1b6   :  { %v2869_v11 = vmul.f32 %v2671_v47, %v1116_v57  ;;  %v2872_v45 = vmul.f32 %v2671_v47, %v1117_v51  ;;  %v2876_v1 = vadd.f32 %v2833_v14, %v2676_v16  ;;  %v2880_v62 = vadd.f32 %v2833_v14, %v2679_v18 }
 0x1b7   :  { %v2884_v25 = vadd.f32 %v2833_v14, %v2682_v7  ;;  %v2888_v38 = vadd.f32 %v2833_v14, %v2685_v61  ;;  %v2892_v47 = vadd.f32 %v2833_v14, %v2688_v34  ;;  %v2896_v16 = vadd.f32 %v2833_v14, %v2691_v20 }
 0x1b8   :  { %v2900_v18 = vadd.f32 %v2833_v14, %v2694_v22  ;;  %v2904_v7 = vadd.f32 %v2833_v14, %v2697_v23  ;;  %v2908_v61 = vadd.f32 %v2833_v14, %v2700_v53  ;;  %v2912_v34 = vadd.f32 %v2833_v14, %v2703_v46  ;;  %v4144_v57 = vld [vmem:[#allocation5_spill] sm:$0xff]  ;;  %v4146_v59 = vld [vmem:[#allocation6_spill] sm:$0xff] }
 0x1b9   :  { %v2916_v20 = vadd.f32 %v2833_v14, %v2706_v27  ;;  %v2920_v22 = vadd.f32 %v2833_v14, %v2709_v31  ;;  %v2924_v23 = vadd.f32 %v2833_v14, %v2712_v44  ;;  %v2928_v53 = vadd.f32 %v2833_v14, %v2715_v33  ;;  %v4147_v51 = vld [vmem:[#allocation7_spill] sm:$0xff] }
 0x1ba   :  { %v2932_v46 = vadd.f32 %v2833_v14, %v2718_v35  ;;  %v2936_v27 = vadd.f32 %v2833_v14, %v2721_v36  ;;  %v2940_v31 = vadd.f32 %v2833_v14, %v2724_v48  ;;  %v2944_v44 = vadd.f32 %v2833_v14, %v2727_v10 }
 0x1bb   :  { %v2948_v33 = vadd.f32 %v2833_v14, %v2730_v43  ;;  %v2952_v35 = vadd.f32 %v2833_v14, %v2733_v37  ;;  %v2956_v36 = vadd.f32 %v2833_v14, %v2736_v55  ;;  %v2960_v48 = vadd.f32 %v2833_v14, %v2739_v3 }
 0x1bc   :  { %v2964_v10 = vadd.f32 %v2833_v14, %v2742_v56  ;;  %v2968_v43 = vadd.f32 %v2833_v14, %v2745_v40  ;;  %v2972_v37 = vadd.f32 %v2833_v14, %v2748_v12  ;;  %v2976_v55 = vadd.f32 %v2833_v14, %v2751_v5 }
 0x1bd   :  { %v2980_v3 = vadd.f32 %v2833_v14, %v2754_v8  ;;  %v2984_v56 = vadd.f32 %v2833_v14, %v2757_v6  ;;  %v2988_v40 = vadd.f32 %v2833_v14, %v2760_v15  ;;  %v2992_v12 = vadd.f32 %v2833_v14, %v2763_v13 }
 0x1be   :  { %v2996_v5 = vadd.f32 %v2833_v14, %v2766_v0  ;;  %v3000_v8 = vadd.f32 %v2833_v14, %v2769_v19  ;;  %v3004_v6 = vadd.f32 %v2833_v14, %v2772_v9  ;;  %v3008_v15 = vadd.f32 %v2833_v14, %v2775_v29 }
 0x1bf   :  { %v3012_v13 = vadd.f32 %v2833_v14, %v2778_v24  ;;  %v3016_v0 = vadd.f32 %v2833_v14, %v2781_v32  ;;  %v3020_v19 = vadd.f32 %v2833_v14, %v2784_v49  ;;  %v3024_v9 = vadd.f32 %v2833_v14, %v2787_v28 }
 0x1c0   :  { %v3028_v29 = vadd.f32 %v2833_v14, %v2790_v50  ;;  %v3032_v24 = vadd.f32 %v2833_v14, %v2793_v42  ;;  %v3036_v32 = vadd.f32 %v2833_v14, %v2796_v21  ;;  %v3040_v49 = vadd.f32 %v2833_v14, %v4144_v57 }
 0x1c1   :  { %v3044_v28 = vadd.f32 %v2833_v14, %v4146_v59  ;;  %v3048_v50 = vadd.f32 %v2833_v14, %v4147_v51  ;;  %v3068_v51 = vadd.f32 %v2833_v14, %v2820_v30  ;;  %v3088_v30 = vadd.f32 %v2833_v14, %v2842_v63 }
 0x1c2   :  { %4141 = vst [vmem:[#allocation14_spill] sm:$0xff] %v3028_v29  ;;  %4142 = vst [vmem:[#allocation15_spill] sm:$0xff] %v3032_v24  ;;  %v4148_v29 = vld [vmem:[#allocation8_spill] sm:$0xff]  ;;  %v4150_v24 = vld [vmem:[#allocation9_spill] sm:$0xff]  ;;  %v3108_v63 = vadd.f32 %v2833_v14, %v2857_v41  ;;  %vm1258_vm2 = vcmp.ge.f32.partialorder %v2876_v1, 0.0  ;;  %vm1259_vm3 = vcmp.ge.f32.partialorder %v2880_v62, 0.0 }
 0x1c3   :  { %4143 = vst [vmem:[#allocation16_spill] sm:$0xff] %v3036_v32  ;;  %4145 = vst [vmem:[#allocation5_spill] sm:$0xff] %v3040_v49  ;;  %v3052_v42 = vadd.f32 %v2833_v14, %v4148_v29  ;;  %v3056_v21 = vadd.f32 %v2833_v14, %v4150_v24  ;;  %v4151_v32 = vld [vmem:[#allocation10_spill] sm:$0xff]  ;;  %v4152_v49 = vld [vmem:[#allocation11_spill] sm:$0xff]  ;;  %v3072_v29 = vadd.f32 %v2833_v14, %v2823_v4  ;;  %vm1260_vm4 = vcmp.ge.f32.partialorder %v2884_v25, 0.0 }
 0x1c4   :  { %v3060_v57 = vadd.f32 %v2833_v14, %v4151_v32  ;;  %v3064_v59 = vadd.f32 %v2833_v14, %v4152_v49  ;;  %4153 = vst [vmem:[#allocation7_spill] sm:$0xff] %v3068_v51  ;;  %v3080_v32 = vadd.f32 %v2833_v14, %v2836_v2  ;;  %v3084_v49 = vadd.f32 %v2833_v14, %v2839_v54  ;;  %v4160_v51 = vld [vmem:[#allocation13_spill] sm:$0xff] }
 0x1c5   :  { %4149 = vst [vmem:[#allocation6_spill] sm:$0xff] %v3052_v42  ;;  %4154 = vst [vmem:[#allocation8_spill] sm:$0xff] %v3072_v29  ;;  %v4155_v42 = vld [vmem:[#allocation12_spill] sm:$0xff]  ;;  %v3092_v4 = vadd.f32 %v2833_v14, %v4160_v51  ;;  %v3100_v2 = vadd.f32 %v2833_v14, %v2851_v39  ;;  %v3104_v54 = vadd.f32 %v2833_v14, %v2854_v58  ;;  %vm1261_vm5 = vcmp.ge.f32.partialorder %v2888_v38, 0.0 }
 0x1c6   :  { %v3076_v24 = vadd.f32 %v2833_v14, %v4155_v42  ;;  %4157 = vst [vmem:[#allocation10_spill] sm:$0xff] %v3080_v32  ;;  %4158 = vst [vmem:[#allocation11_spill] sm:$0xff] %v3084_v49  ;;  %v3096_v42 = vadd.f32 %v2833_v14, %v2848_v17  ;;  %v3112_v51 = vadd.f32 %v2833_v14, %v2860_v26  ;;  %vm1262_vm6 = vcmp.ge.f32.partialorder %v2892_v47, 0.0 }
 0x1c7   :  { %4159 = vst [vmem:[#allocation12_spill] sm:$0xff] %v3088_v30  ;;  %4161 = vst [vmem:[#allocation13_spill] sm:$0xff] %v3092_v4  ;;  %v3116_v17 = vadd.f32 %v2833_v14, %v2863_v60  ;;  %v3120_v39 = vadd.f32 %v2833_v14, %v2866_v52  ;;  %vm1263_vm7 = vcmp.ge.f32.partialorder %v2896_v16, 0.0  ;;  %vm1264_vm8 = vcmp.ge.f32.partialorder %v2900_v18, 0.0 }
 0x1c8   :  { %4156 = vst [vmem:[#allocation9_spill] sm:$0xff] %v3076_v24  ;;  %4162 = vst [vmem:[#allocation17_spill] sm:$0xff] %v3096_v42  ;;  %vm1265_vm9 = vcmp.ge.f32.partialorder %v2904_v7, 0.0  ;;  %vm1266_vm10 = vcmp.ge.f32.partialorder %v2908_v61, 0.0  ;;  %v3133_v52 = vadd.f32 %v2833_v14, %v2869_v11  ;;  %vm1267_vm11 = vcmp.ge.f32.partialorder %v2912_v34, 0.0 }
 0x1c9   :  { %4163 = vst [vmem:[#allocation18_spill] sm:$0xff] %v3100_v2  ;;  %4164 = vst [vmem:[#allocation19_spill] sm:$0xff] %v3104_v54  ;;  %v1322_v58 = vmul.f32 0.2, %v2876_v1  ;;  %v1323_v41 = vmul.f32 0.2, %v2880_v62  ;;  %v3141_v60 = vadd.f32 %v2833_v14, %v2872_v45 }
 0x1ca   :  { %4165 = vst [vmem:[#allocation20_spill] sm:$0xff] %v3108_v63  ;;  %4166 = vst [vmem:[#allocation21_spill] sm:$0xff] %v3112_v51  ;;  %v1324_v26 = vmul.f32 0.2, %v2884_v25  ;;  %vm1268_vm12 = vcmp.ge.f32.partialorder %v2916_v20, 0.0  ;;  %vm1269_vm13 = vcmp.ge.f32.partialorder %v2920_v22, 0.0 }
 0x1cb   :  { %4167 = vst [vmem:[#allocation22_spill] sm:$0xff] %v3116_v17  ;;  %4168 = vst [vmem:[#allocation23_spill] sm:$0xff] %v3120_v39  ;;  %v1325_v39 = vmul.f32 0.2, %v2888_v38  ;;  %v1326_v17 = vmul.f32 0.2, %v2892_v47  ;;  %v3154_v14 = vsel %vm1258_vm2, %v2876_v1, %v1322_v58  ;;  %v3165_v2 = vsel %vm1259_vm3, %v2880_v62, %v1323_v41 }
 0x1cc   :  { %4169 = vst [vmem:[#allocation24_spill] sm:$0xff] %v3133_v52  ;;  %4170 = vst [vmem:[#allocation25_spill] sm:$0xff] %v3141_v60  ;;  %v1327_v11 = vmul.f32 0.2, %v2896_v16  ;;  %v1328_v52 = vmul.f32 0.2, %v2900_v18 }
 0x1cd   :  { %v1329_v51 = vmul.f32 0.2, %v2904_v7  ;;  %v1330_v63 = vmul.f32 0.2, %v2908_v61  ;;  %4171 = vst [vmem:[#allocation26_spill] sm:$0xff] %v3154_v14  ;;  %vm1270_vm14 = vcmp.ge.f32.partialorder %v2924_v23, 0.0  ;;  %v3180_v14 = vsel %vm1260_vm4, %v2884_v25, %v1324_v26 }
 0x1ce   :  { %v1331_v45 = vmul.f32 0.2, %v2912_v34  ;;  %v1332_v60 = vmul.f32 0.2, %v2916_v20  ;;  %v3160_v54 = vmul.f32 0.2, %v2920_v22  ;;  %v3195_v4 = vsel %vm1261_vm5, %v2888_v38, %v1325_v39 }
 0x1cf   :  { %4172 = vst [vmem:[#allocation27_spill] sm:$0xff] %v3165_v2  ;;  %vm1271_vm15 = vcmp.ge.f32.partialorder %v2928_v53, 0.0  ;;  %v3169_v42 = vmul.f32 0.2, %v2924_v23  ;;  %v3172_v1 = vmul.f32 0.2, %v2928_v53 }
 0x1d0   :  { %v3175_v58 = vmul.f32 0.2, %v2932_v46  ;;  %4173 = vst [vmem:[#allocation28_spill] sm:$0xff] %v3180_v14  ;;  %vm1272_vm0 = vcmp.ge.f32.partialorder %v2932_v46, 0.0  ;;  %v3184_v62 = vmul.f32 0.2, %v2936_v27 }
 0x1d1   :  { %v3187_v41 = vmul.f32 0.2, %v2940_v31  ;;  %v3190_v2 = vmul.f32 0.2, %v2944_v44  ;;  %4175 = vst [vmem:[#allocation30_spill] sm:$0xff] %v3195_v4  ;;  %vm1273_vm1 = vcmp.ge.f32.partialorder %v2936_v27, 0.0 }
 0x1d2   :  { %v3199_v25 = vmul.f32 0.2, %v2948_v33  ;;  %v3202_v26 = vmul.f32 0.2, %v2952_v35  ;;  %v3205_v14 = vmul.f32 0.2, %v2956_v36 }
 0x1d3   :  { %4174 = vst [vmem:[#allocation29_spill] sm:$0xff] %v3190_v2  ;;  %v3210_v2 = vsel %vm1262_vm6, %v2892_v47, %v1326_v17  ;;  %vm1274_vm2 = vcmp.ge.f32.partialorder %v2940_v31, 0.0  ;;  %v3214_v38 = vmul.f32 0.2, %v2960_v48  ;;  %v3217_v39 = vmul.f32 0.2, %v2964_v10 }
 0x1d4   :  { %4176 = vst [vmem:[#allocation31_spill] sm:$0xff] %v3205_v14  ;;  %4177 = vst [vmem:[#allocation32_spill] sm:$0xff] %v3210_v2  ;;  %v3220_v4 = vmul.f32 0.2, %v2968_v43  ;;  %v3225_v14 = vsel %vm1263_vm7, %v2896_v16, %v1327_v11  ;;  %vm1275_vm3 = vcmp.ge.f32.partialorder %v2944_v44, 0.0  ;;  %vm1276_vm4 = vcmp.ge.f32.partialorder %v2948_v33, 0.0 }
 0x1d5   :  { %4179 = vst [vmem:[#allocation34_spill] sm:$0xff] %v3225_v14  ;;  %v3229_v47 = vmul.f32 0.2, %v2972_v37  ;;  %v3232_v17 = vmul.f32 0.2, %v2976_v55  ;;  %vm1277_vm5 = vcmp.ge.f32.partialorder %v2952_v35, 0.0 }
 0x1d6   :  { %4178 = vst [vmem:[#allocation33_spill] sm:$0xff] %v3220_v4  ;;  %v3235_v2 = vmul.f32 0.2, %v2980_v3  ;;  %v3240_v4 = vsel %vm1264_vm8, %v2900_v18, %v1328_v52  ;;  %v3244_v16 = vmul.f32 0.2, %v2984_v56  ;;  %vm1280_vm8 = vcmp.ge.f32.partialorder %v2964_v10, 0.0 }
 0x1d7   :  { %4181 = vst [vmem:[#allocation36_spill] sm:$0xff] %v3240_v4  ;;  %v3247_v11 = vmul.f32 0.2, %v2988_v40  ;;  %v3250_v14 = vmul.f32 0.2, %v2992_v12 }
 0x1d8   :  { %4180 = vst [vmem:[#allocation35_spill] sm:$0xff] %v3235_v2  ;;  %v3255_v2 = vsel %vm1265_vm9, %v2904_v7, %v1329_v51  ;;  %v3261_v18 = vmul.f32 0.2, %v2996_v5  ;;  %v3264_v52 = vmul.f32 0.2, %v3000_v8  ;;  %v3272_v7 = vsel %vm1266_vm10, %v2908_v61, %v1330_v63 }
 0x1d9   :  { %4182 = vst [vmem:[#allocation37_spill] sm:$0xff] %v3255_v2  ;;  %v3267_v4 = vmul.f32 0.2, %v3004_v6  ;;  %4184 = vst [vmem:[#allocation39_spill] sm:$0xff] %v3272_v7  ;;  %v3279_v51 = vmul.f32 0.2, %v3008_v15  ;;  %v3290_v61 = vsel %vm1267_vm11, %v2912_v34, %v1331_v45  ;;  %v3308_v34 = vsel %vm1268_vm12, %v2916_v20, %v1332_v60 }
 0x1da   :  { %v3282_v2 = vmul.f32 0.2, %v3012_v13  ;;  %4188 = vst [vmem:[#allocation43_spill] sm:$0xff] %v3290_v61  ;;  %vm1284_vm10 = vcmp.ge.f32.partialorder %v2980_v3, 0.0  ;;  %v3297_v63 = vmul.f32 0.2, %v3020_v19  ;;  %v3327_v20 = vsel %vm1269_vm13, %v2920_v22, %v3160_v54 }
 0x1db   :  { %4183 = vst [vmem:[#allocation38_spill] sm:$0xff] %v3267_v4  ;;  %4185 = vst [vmem:[#allocation40_spill] sm:$0xff] %v3279_v51  ;;  %v3285_v4 = vmul.f32 0.2, %v3016_v0  ;;  %v3300_v7 = vmul.f32 0.2, %v3024_v9  ;;  %v3346_v22 = vsel %vm1270_vm14, %v2924_v23, %v3169_v42  ;;  %v3365_v23 = vsel %vm1271_vm15, %v2928_v53, %v3172_v1 }
 0x1dc   :  { %4186 = vst [vmem:[#allocation41_spill] sm:$0xff] %v3282_v2  ;;  %4189 = vst [vmem:[#allocation44_spill] sm:$0xff] %v3297_v63  ;;  %vm1288_vm11 = vcmp.ge.f32.partialorder %v2996_v5, 0.0  ;;  %v4194_v45 = vld [vmem:[#allocation15_spill] sm:$0xff]  ;;  %vm1292_vm12 = vcmp.ge.f32.partialorder %v3012_v13, 0.0  ;;  %vm1300_vm14 = vcmp.ge.f32.partialorder %v3044_v28, 0.0  ;;  %v3384_v53 = vsel %vm1272_vm0, %v2932_v46, %v3175_v58 }
 0x1dd   :  { %4187 = vst [vmem:[#allocation42_spill] sm:$0xff] %v3285_v4  ;;  %4190 = vst [vmem:[#allocation45_spill] sm:$0xff] %v3300_v7  ;;  %v4191_v4 = vld [vmem:[#allocation14_spill] sm:$0xff]  ;;  %v3315_v61 = vmul.f32 0.2, %v4194_v45  ;;  %v4195_v7 = vld [vmem:[#allocation16_spill] sm:$0xff]  ;;  %v3403_v46 = vsel %vm1273_vm1, %v2936_v27, %v3184_v62  ;;  %v3416_v27 = vsel %vm1274_vm2, %v2940_v31, %v3187_v41 }
 0x1de   :  { %v3303_v2 = vmul.f32 0.2, %v4191_v4  ;;  %4193 = vst [vmem:[#allocation46_spill] sm:$0xff] %v3308_v34  ;;  %v3318_v63 = vmul.f32 0.2, %v4195_v7  ;;  %4202 = vst [vmem:[#allocation47_spill] sm:$0xff] %v3346_v22 }
 0x1df   :  { %v3334_v60 = vmul.f32 0.2, %v3044_v28  ;;  %v3337_v34 = vmul.f32 0.2, %v3048_v50  ;;  %vm1296_vm13 = vcmp.ge.f32.partialorder %v4191_v4, 0.0  ;;  %4205 = vst [vmem:[#allocation50_spill] sm:$0xff] %v3365_v23 }
 0x1e0   :  { %4192 = vst [vmem:[#allocation14_spill] sm:$0xff] %v3303_v2  ;;  %4196 = vst [vmem:[#allocation15_spill] sm:$0xff] %v3318_v63  ;;  %v4197_v2 = vld [vmem:[#allocation5_spill] sm:$0xff]  ;;  %v3353_v54 = vmul.f32 0.2, %v3056_v21  ;;  %v4206_v42 = vld [vmem:[#allocation7_spill] sm:$0xff] }
 0x1e1   :  { %v3321_v51 = vmul.f32 0.2, %v4197_v2  ;;  %4199 = vst [vmem:[#allocation5_spill] sm:$0xff] %v3327_v20  ;;  %v3356_v20 = vmul.f32 0.2, %v3060_v57  ;;  %4209 = vst [vmem:[#allocation52_spill] sm:$0xff] %v3384_v53 }
 0x1e2   :  { %v3372_v22 = vmul.f32 0.2, %v4206_v42  ;;  %vm1304_vm15 = vcmp.ge.f32.partialorder %v3060_v57, 0.0  ;;  %v3391_v1 = vmul.f32 0.2, %v3080_v32  ;;  %4213 = vst [vmem:[#allocation56_spill] sm:$0xff] %v3403_v46 }
 0x1e3   :  { %4198 = vst [vmem:[#allocation16_spill] sm:$0xff] %v3321_v51  ;;  %v4200_v51 = vld [vmem:[#allocation6_spill] sm:$0xff]  ;;  %4203 = vst [vmem:[#allocation48_spill] sm:$0xff] %v3356_v20  ;;  %v3375_v20 = vmul.f32 0.2, %v3072_v29  ;;  %vm1308_vm0 = vcmp.ge.f32.partialorder %v3076_v24, 0.0 }
 0x1e4   :  { %v3340_v63 = vmul.f32 0.2, %v4200_v51  ;;  %4210 = vst [vmem:[#allocation53_spill] sm:$0xff] %v3391_v1  ;;  %v3394_v23 = vmul.f32 0.2, %v3084_v49  ;;  %v4214_v58 = vld [vmem:[#allocation13_spill] sm:$0xff] }
 0x1e5   :  { %4207 = vst [vmem:[#allocation7_spill] sm:$0xff] %v3375_v20  ;;  %v1376_v53 = vmul.f32 0.2, %v4214_v58  ;;  %v4216_v29 = vld [vmem:[#allocation18_spill] sm:$0xff]  ;;  %4217 = vst [vmem:[#allocation57_spill] sm:$0xff] %v3416_v27  ;;  %vm1312_vm1 = vcmp.ge.f32.partialorder %v4214_v58, 0.0 }
 0x1e6   :  { %4201 = vst [vmem:[#allocation6_spill] sm:$0xff] %v3340_v63  ;;  %v3359_v63 = vmul.f32 0.2, %v3064_v59  ;;  %4211 = vst [vmem:[#allocation54_spill] sm:$0xff] %v3394_v23  ;;  %v4215_v23 = vld [vmem:[#allocation17_spill] sm:$0xff]  ;;  %v4218_v62 = vld [vmem:[#allocation19_spill] sm:$0xff] }
 0x1e7   :  { %v1377_v1 = vmul.f32 0.2, %v4215_v23  ;;  %v1379_v46 = vmul.f32 0.2, %v4218_v62  ;;  %v4220_v32 = vld [vmem:[#allocation21_spill] sm:$0xff]  ;;  %v4223_v41 = vld [vmem:[#allocation22_spill] sm:$0xff] }
 0x1e8   :  { %4204 = vst [vmem:[#allocation49_spill] sm:$0xff] %v3359_v63  ;;  %v3378_v63 = vmul.f32 0.2, %v3076_v24  ;;  %v1381_v24 = vmul.f32 0.2, %v4220_v32  ;;  %v4221_v20 = vld [vmem:[#allocation29_spill] sm:$0xff] }
 0x1e9   :  { %v3429_v31 = vsel %vm1275_vm3, %v2944_v44, %v4221_v20  ;;  %vm1318_vm6 = vcmp.ge.f32.partialorder %v4223_v41, 0.0  ;;  %v4224_v27 = vld [vmem:[#allocation23_spill] sm:$0xff]  ;;  %v1382_v62 = vmul.f32 0.2, %v4223_v41  ;;  %v4225_v23 = vld [vmem:[#allocation24_spill] sm:$0xff]  ;;  %v3442_v44 = vsel %vm1276_vm4, %v2948_v33, %v3199_v25  ;;  %v4226_v20 = vld [vmem:[#allocation25_spill] sm:$0xff] }
 0x1ea   :  { %4208 = vst [vmem:[#allocation51_spill] sm:$0xff] %v3378_v63  ;;  %v3397_v63 = vmul.f32 0.2, %v3088_v30  ;;  %v4219_v30 = vld [vmem:[#allocation20_spill] sm:$0xff]  ;;  %v1384_v58 = vmul.f32 0.2, %v4225_v23  ;;  %v3451_v41 = vsel %vm1277_vm5, %v2952_v35, %v3202_v26  ;;  %v3469_v25 = vsel %vm1280_vm8, %v2964_v10, %v3217_v39 }
 0x1eb   :  { %v1380_v49 = vmul.f32 0.2, %v4219_v30  ;;  %4222 = vst [vmem:[#allocation20_spill] sm:$0xff] %v3429_v31  ;;  %vm1316_vm2 = vcmp.ge.f32.partialorder %v4219_v30, 0.0  ;;  %vm1320_vm3 = vcmp.ge.f32.partialorder %v4225_v23, 0.0  ;;  %vm1321_vm7 = vcmp.ge.f32.partialorder %v4226_v20, 0.0 }
 0x1ec   :  { %4212 = vst [vmem:[#allocation55_spill] sm:$0xff] %v3397_v63  ;;  %v1378_v63 = vmul.f32 0.2, %v4216_v29  ;;  %v1383_v29 = vmul.f32 0.2, %v4224_v27  ;;  %v4227_v27 = vld [vmem:[#allocation31_spill] sm:$0xff] }
 0x1ed   :  { %v1385_v31 = vmul.f32 0.2, %v4226_v20  ;;  %vm4228_vm9 = vcmp.ge.f32.partialorder %v2956_v36, 0.0  ;;  %vm4229_vm4 = vcmp.ge.f32.partialorder %v2960_v48, 0.0  ;;  %v4230_v35 = vld [vmem:[#allocation33_spill] sm:$0xff]  ;;  %vm4231_vm5 = vcmp.ge.f32.partialorder %v2968_v43, 0.0 }
 0x1ee   :  { %v3457_v32 = vsel %vm4228_vm9, %v2956_v36, %v4227_v27  ;;  %v3463_v33 = vsel %vm4229_vm4, %v2960_v48, %v3214_v38  ;;  %v3475_v26 = vsel %vm4231_vm5, %v2968_v43, %v4230_v35  ;;  %vm4232_vm9 = vcmp.ge.f32.partialorder %v2972_v37, 0.0  ;;  %v4234_v10 = vld [vmem:[#allocation35_spill] sm:$0xff] }
 0x1ef   :  { %v3481_v36 = vsel %vm4232_vm9, %v2972_v37, %v3229_v47  ;;  %vm4233_vm4 = vcmp.ge.f32.partialorder %v2976_v55, 0.0  ;;  %v3493_v38 = vsel %vm1284_vm10, %v2980_v3, %v4234_v10  ;;  %vm4235_vm8 = vcmp.ge.f32.partialorder %v2984_v56, 0.0  ;;  %v4268_v10 = vld [vmem:[#allocation9_spill] sm:$0xff] }
 0x1f0   :  { %v3487_v48 = vsel %vm4233_vm4, %v2976_v55, %v3232_v17  ;;  %v3499_v43 = vsel %vm4235_vm8, %v2984_v56, %v3244_v16  ;;  %vm4236_vm5 = vcmp.ge.f32.partialorder %v2988_v40, 0.0  ;;  %vm4237_vm9 = vcmp.ge.f32.partialorder %v2992_v12, 0.0 }
 0x1f1   :  { %v3505_v37 = vsel %vm4236_vm5, %v2988_v40, %v3247_v11  ;;  %v3511_v55 = vsel %vm4237_vm9, %v2992_v12, %v3250_v14  ;;  %vm1706_vm10 = vcmask 125952   ;;  %v3517_v3 = vsel %vm1288_vm11, %v2996_v5, %v3261_v18  ;;  %v4239_v40 = vld [vmem:[#allocation38_spill] sm:$0xff]  ;;  %v4241_v12 = vld [vmem:[#allocation40_spill] sm:$0xff]  ;;  %v4243_v5 = vld [vmem:[#allocation41_spill] sm:$0xff] }
 0x1f2   :  { %vm4238_vm4 = vcmp.ge.f32.partialorder %v3000_v8, 0.0  ;;  %vm4240_vm8 = vcmp.ge.f32.partialorder %v3004_v6, 0.0  ;;  %vm4242_vm5 = vcmp.ge.f32.partialorder %v3008_v15, 0.0  ;;  %v3541_v47 = vsel %vm1292_vm12, %v3012_v13, %v4243_v5  ;;  %v4250_v13 = vld [vmem:[#allocation14_spill] sm:$0xff] }
 0x1f3   :  { %v3523_v56 = vsel %vm4238_vm4, %v3000_v8, %v3264_v52  ;;  %v3529_v39 = vsel %vm4240_vm8, %v3004_v6, %v4239_v40  ;;  %v3535_v14 = vsel %vm4242_vm5, %v3008_v15, %v4241_v12  ;;  %v4244_v8 = vld [vmem:[#allocation42_spill] sm:$0xff]  ;;  %vm4245_vm11 = vcmp.ge.f32.partialorder %v3016_v0, 0.0  ;;  %v4246_v6 = vld [vmem:[#allocation44_spill] sm:$0xff]  ;;  %v4248_v15 = vld [vmem:[#allocation45_spill] sm:$0xff] }
 0x1f4   :  { %v3547_v17 = vsel %vm4245_vm11, %v3016_v0, %v4244_v8  ;;  %vm4247_vm9 = vcmp.ge.f32.partialorder %v3020_v19, 0.0  ;;  %vm4249_vm4 = vcmp.ge.f32.partialorder %v3024_v9, 0.0  ;;  %v3565_v18 = vsel %vm1296_vm13, %v4191_v4, %v4250_v13  ;;  %v4270_v12 = vld [vmem:[#allocation10_spill] sm:$0xff] }
 0x1f5   :  { %v3553_v16 = vsel %vm4247_vm9, %v3020_v19, %v4246_v6  ;;  %v3559_v11 = vsel %vm4249_vm4, %v3024_v9, %v4248_v15  ;;  %vm4251_vm12 = vcmp.ge.f32.partialorder %v4194_v45, 0.0  ;;  %v4252_v19 = vld [vmem:[#allocation15_spill] sm:$0xff]  ;;  %vm4253_vm8 = vcmp.ge.f32.partialorder %v4195_v7, 0.0  ;;  %v4254_v9 = vld [vmem:[#allocation16_spill] sm:$0xff] }
 0x1f6   :  { %v3571_v0 = vsel %vm4251_vm12, %v4194_v45, %v3315_v61  ;;  %v3577_v52 = vsel %vm4253_vm8, %v4195_v7, %v4252_v19  ;;  %vm4255_vm5 = vcmp.ge.f32.partialorder %v4197_v2, 0.0  ;;  %v3589_v4 = vsel %vm1300_vm14, %v3044_v28, %v3334_v60  ;;  %v4257_v7 = vld [vmem:[#allocation6_spill] sm:$0xff]  ;;  %v4260_v28 = vld [vmem:[#allocation48_spill] sm:$0xff]  ;;  %v4275_v6 = vld [vmem:[#allocation55_spill] sm:$0xff] }
 0x1f7   :  { %v3583_v27 = vsel %vm4255_vm5, %v4197_v2, %v4254_v9  ;;  %vm4256_vm13 = vcmp.ge.f32.partialorder %v3048_v50, 0.0  ;;  %vm4258_vm11 = vcmp.ge.f32.partialorder %v4200_v51, 0.0  ;;  %vm4259_vm9 = vcmp.ge.f32.partialorder %v3056_v21, 0.0  ;;  %v4276_v15 = vld [vmem:[#allocation12_spill] sm:$0xff]  ;;  %v4278_v19 = vld [vmem:[#allocation13_spill] sm:$0xff] }
 0x1f8   :  { %v3595_v61 = vsel %vm4256_vm13, %v3048_v50, %v3337_v34  ;;  %v3601_v45 = vsel %vm4258_vm11, %v4200_v51, %v4257_v7  ;;  %v3607_v2 = vsel %vm4259_vm9, %v3056_v21, %v3353_v54  ;;  %v3613_v60 = vsel %vm1304_vm15, %v3060_v57, %v4260_v28  ;;  %v4261_v50 = vld [vmem:[#allocation49_spill] sm:$0xff]  ;;  %v4264_v21 = vld [vmem:[#allocation7_spill] sm:$0xff]  ;;  %v4265_v54 = vld [vmem:[#allocation8_spill] sm:$0xff] }
 0x1f9   :  { %vm4262_vm14 = vcmp.ge.f32.partialorder %v3064_v59, 0.0  ;;  %vm4263_vm4 = vcmp.ge.f32.partialorder %v4206_v42, 0.0  ;;  %vm4266_vm12 = vcmp.ge.f32.partialorder %v4265_v54, 0.0  ;;  %v4267_v57 = vld [vmem:[#allocation51_spill] sm:$0xff]  ;;  %vm4271_vm15 = vcmp.ge.f32.partialorder %v4270_v12, 0.0  ;;  %v4279_v7 = vld [vmem:[#allocation17_spill] sm:$0xff] }
 0x1fa   :  { %v3619_v34 = vsel %vm4262_vm14, %v3064_v59, %v4261_v50  ;;  %v3625_v51 = vsel %vm4263_vm4, %v4206_v42, %v3372_v22  ;;  %v3631_v35 = vsel %vm4266_vm12, %v4265_v54, %v4264_v21  ;;  %v3637_v40 = vsel %vm1308_vm0, %v4268_v10, %v4267_v57  ;;  %v4269_v59 = vld [vmem:[#allocation53_spill] sm:$0xff]  ;;  %v4272_v22 = vld [vmem:[#allocation54_spill] sm:$0xff]  ;;  %v4273_v42 = vld [vmem:[#allocation11_spill] sm:$0xff] }
 0x1fb   :  { %v3643_v5 = vsel %vm4271_vm15, %v4270_v12, %v4269_v59  ;;  %vm4274_vm8 = vcmp.ge.f32.partialorder %v4273_v42, 0.0  ;;  %vm4277_vm5 = vcmp.ge.f32.partialorder %v4276_v15, 0.0  ;;  %v3660_v9 = vsel %vm1312_vm1, %v4278_v19, %v1376_v53  ;;  %v4281_v50 = vld [vmem:[#allocation18_spill] sm:$0xff]  ;;  %v4283_v54 = vld [vmem:[#allocation19_spill] sm:$0xff]  ;;  %v4285_v10 = vld [vmem:[#allocation21_spill] sm:$0xff] }
 0x1fc   :  { %v3649_v8 = vsel %vm4274_vm8, %v4273_v42, %v4272_v22  ;;  %v3655_v13 = vsel %vm4277_vm5, %v4276_v15, %v4275_v6  ;;  %vm4280_vm0 = vcmp.ge.f32.partialorder %v4279_v7, 0.0  ;;  %vm4282_vm13 = vcmp.ge.f32.partialorder %v4281_v50, 0.0  ;;  %v4287_v59 = vld [vmem:[#allocation22_spill] sm:$0xff]  ;;  %v4288_v12 = vld [vmem:[#allocation23_spill] sm:$0xff]  ;;  %v4292_v6 = vld [vmem:[#allocation28_spill] sm:$0xff] }
 0x1fd   :  { %v3665_v28 = vsel %vm4280_vm0, %v4279_v7, %v1377_v1  ;;  %v3670_v21 = vsel %vm4282_vm13, %v4281_v50, %v1378_v63  ;;  %vm4284_vm11 = vcmp.ge.f32.partialorder %v4283_v54, 0.0  ;;  %v3680_v53 = vsel %vm1316_vm2, %v4219_v30, %v1380_v49  ;;  %v4290_v30 = vld [vmem:[#allocation26_spill] sm:$0xff]  ;;  %v4294_v7 = vld [vmem:[#allocation32_spill] sm:$0xff] }
 0x1fe   :  { %v3675_v57 = vsel %vm4284_vm11, %v4283_v54, %v1379_v46  ;;  %vm4286_vm1 = vcmp.ge.f32.partialorder %v4285_v10, 0.0  ;;  %v3690_v63 = vsel %vm1318_vm6, %v4287_v59, %v1382_v62  ;;  %vm4289_vm9 = vcmp.ge.f32.partialorder %v4288_v12, 0.0  ;;  %v4291_v62 = vld [vmem:[#allocation27_spill] sm:$0xff]  ;;  %v4293_v15 = vld [vmem:[#allocation30_spill] sm:$0xff]  ;;  %v4297_v54 = vld [vmem:[#allocation37_spill] sm:$0xff] }
 0x1ff   :  { %v3685_v1 = vsel %vm4286_vm1, %v4285_v10, %v1381_v24  ;;  %v3695_v46 = vsel %vm4289_vm9, %v4288_v12, %v1383_v29  ;;  %v3700_v49 = vsel %vm1320_vm3, %v4225_v23, %v1384_v58  ;;  %v3705_v24 = vsel %vm1321_vm7, %v4226_v20, %v1385_v31  ;;  %v4295_v58 = vld [vmem:[#allocation34_spill] sm:$0xff]  ;;  %v4296_v31 = vld [vmem:[#allocation36_spill] sm:$0xff]  ;;  %v4298_v59 = vld [vmem:[#allocation39_spill] sm:$0xff] }
 0x200   :  { %v1879_v22 = vpack.c.bf16 %v4290_v30, %v4290_v30  ;;  %v1880_v42 = vpack.c.bf16 %v4291_v62, %v4291_v62  ;;  %v1881_v29 = vpack.c.bf16 %v4292_v6, %v4292_v6  ;;  %v1882_v19 = vpack.c.bf16 %v4293_v15, %v4293_v15  ;;  %v4299_v30 = vld [vmem:[#allocation43_spill] sm:$0xff]  ;;  %v4300_v6 = vld [vmem:[#allocation46_spill] sm:$0xff] }
 0x201   :  { %v1883_v23 = vpack.c.bf16 %v4294_v7, %v4294_v7  ;;  %v1884_v50 = vpack.c.bf16 %v4295_v58, %v4295_v58  ;;  %v1885_v20 = vpack.c.bf16 %v4296_v31, %v4296_v31  ;;  %v1886_v10 = vpack.c.bf16 %v4297_v54, %v4297_v54  ;;  %v4301_v7 = vld [vmem:[#allocation5_spill] sm:$0xff]  ;;  %v4302_v31 = vld [vmem:[#allocation47_spill] sm:$0xff] }
 0x202   :  { %v1887_v12 = vpack.c.bf16 %v4298_v59, %v4298_v59  ;;  %v1888_v62 = vpack.c.bf16 %v4299_v30, %v4299_v30  ;;  %1707 = vst.msk [vmem:[%s4095_s4] sm:$0xf] %vm1706_vm10, %v1879_v22  ;;  %1708 = vst.msk [vmem:[%s4095_s4 + $0x4] sm:$0xf] %vm1706_vm10, %v1880_v42  ;;  %v1889_v15 = vpack.c.bf16 %v4300_v6, %v4300_v6  ;;  %v4303_v59 = vld [vmem:[#allocation50_spill] sm:$0xff]  ;;  %v4304_v22 = vld [vmem:[#allocation52_spill] sm:$0xff] }
 0x203   :  { %v1890_v58 = vpack.c.bf16 %v4301_v7, %v4301_v7  ;;  %v1891_v54 = vpack.c.bf16 %v4302_v31, %v4302_v31  ;;  %v1892_v30 = vpack.c.bf16 %v4303_v59, %v4303_v59  ;;  %1709 = vst.msk [vmem:[%s4095_s4 + $0x8] sm:$0xf] %vm1706_vm10, %v1881_v29  ;;  %1710 = vst.msk [vmem:[%s4095_s4 + $0xc] sm:$0xf] %vm1706_vm10, %v1882_v19  ;;  %v4305_v6 = vld [vmem:[#allocation56_spill] sm:$0xff]  ;;  %v4306_v7 = vld [vmem:[#allocation57_spill] sm:$0xff] }
 0x204   :  { %1711 = vst.msk [vmem:[%s4095_s4 + $0x10] sm:$0xf] %vm1706_vm10, %v1883_v23  ;;  %1712 = vst.msk [vmem:[%s4095_s4 + $0x14] sm:$0xf] %vm1706_vm10, %v1884_v50  ;;  %v1893_v42 = vpack.c.bf16 %v4304_v22, %v4304_v22  ;;  %v1894_v29 = vpack.c.bf16 %v4305_v6, %v4305_v6  ;;  %v1895_v31 = vpack.c.bf16 %v4306_v7, %v4306_v7  ;;  %v4307_v19 = vld [vmem:[#allocation20_spill] sm:$0xff] }
 0x205   :  { %v1896_v59 = vpack.c.bf16 %v4307_v19, %v4307_v19  ;;  %1713 = vst.msk [vmem:[%s4095_s4 + $0x18] sm:$0xf] %vm1706_vm10, %v1885_v20  ;;  %1714 = vst.msk [vmem:[%s4095_s4 + $0x1c] sm:$0xf] %vm1706_vm10, %v1886_v10  ;;  %v1897_v23 = vpack.c.bf16 %v3442_v44, %v3442_v44  ;;  %v1898_v50 = vpack.c.bf16 %v3451_v41, %v3451_v41 }
 0x206   :  { %1715 = vst.msk [vmem:[%s4095_s4 + $0x20] sm:$0xf] %vm1706_vm10, %v1887_v12  ;;  %1716 = vst.msk [vmem:[%s4095_s4 + $0x24] sm:$0xf] %vm1706_vm10, %v1888_v62  ;;  %v1899_v20 = vpack.c.bf16 %v3457_v32, %v3457_v32  ;;  %v1900_v10 = vpack.c.bf16 %v3463_v33, %v3463_v33  ;;  %v1901_v32 = vpack.c.bf16 %v3469_v25, %v3469_v25 }
 0x207   :  { %1717 = vst.msk [vmem:[%s4095_s4 + $0x28] sm:$0xf] %vm1706_vm10, %v1889_v15  ;;  %1718 = vst.msk [vmem:[%s4095_s4 + $0x2c] sm:$0xf] %vm1706_vm10, %v1890_v58  ;;  %v1902_v41 = vpack.c.bf16 %v3475_v26, %v3475_v26  ;;  %v1903_v44 = vpack.c.bf16 %v3481_v36, %v3481_v36  ;;  %v1904_v33 = vpack.c.bf16 %v3487_v48, %v3487_v48 }
 0x208   :  { %1719 = vst.msk [vmem:[%s4095_s4 + $0x30] sm:$0xf] %vm1706_vm10, %v1891_v54  ;;  %1720 = vst.msk [vmem:[%s4095_s4 + $0x34] sm:$0xf] %vm1706_vm10, %v1892_v30  ;;  %v1905_v25 = vpack.c.bf16 %v3493_v38, %v3493_v38  ;;  %v1906_v26 = vpack.c.bf16 %v3499_v43, %v3499_v43  ;;  %v1907_v36 = vpack.c.bf16 %v3505_v37, %v3505_v37 }
 0x209   :  { %1721 = vst.msk [vmem:[%s4095_s4 + $0x38] sm:$0xf] %vm1706_vm10, %v1893_v42  ;;  %1722 = vst.msk [vmem:[%s4095_s4 + $0x3c] sm:$0xf] %vm1706_vm10, %v1894_v29  ;;  %v1908_v48 = vpack.c.bf16 %v3511_v55, %v3511_v55  ;;  %v1909_v38 = vpack.c.bf16 %v3517_v3, %v3517_v3  ;;  %v1910_v43 = vpack.c.bf16 %v3523_v56, %v3523_v56 }
 0x20a   :  { %1723 = vst.msk [vmem:[%s4095_s4 + $0x40] sm:$0xf] %vm1706_vm10, %v1895_v31  ;;  %1724 = vst.msk [vmem:[%s4095_s4 + $0x44] sm:$0xf] %vm1706_vm10, %v1896_v59  ;;  %v1911_v37 = vpack.c.bf16 %v3529_v39, %v3529_v39  ;;  %v1912_v55 = vpack.c.bf16 %v3535_v14, %v3535_v14  ;;  %v1913_v3 = vpack.c.bf16 %v3541_v47, %v3541_v47 }
 0x20b   :  { %1725 = vst.msk [vmem:[%s4095_s4 + $0x48] sm:$0xf] %vm1706_vm10, %v1897_v23  ;;  %1726 = vst.msk [vmem:[%s4095_s4 + $0x4c] sm:$0xf] %vm1706_vm10, %v1898_v50  ;;  %v1914_v56 = vpack.c.bf16 %v3547_v17, %v3547_v17  ;;  %v1915_v39 = vpack.c.bf16 %v3553_v16, %v3553_v16  ;;  %v1916_v14 = vpack.c.bf16 %v3559_v11, %v3559_v11 }
 0x20c   :  { %1727 = vst.msk [vmem:[%s4095_s4 + $0x50] sm:$0xf] %vm1706_vm10, %v1899_v20  ;;  %1728 = vst.msk [vmem:[%s4095_s4 + $0x54] sm:$0xf] %vm1706_vm10, %v1900_v10  ;;  %v1917_v47 = vpack.c.bf16 %v3565_v18, %v3565_v18  ;;  %v1918_v17 = vpack.c.bf16 %v3571_v0, %v3571_v0  ;;  %v1919_v16 = vpack.c.bf16 %v3577_v52, %v3577_v52 }
 0x20d   :  { %1729 = vst.msk [vmem:[%s4095_s4 + $0x58] sm:$0xf] %vm1706_vm10, %v1901_v32  ;;  %1730 = vst.msk [vmem:[%s4095_s4 + $0x5c] sm:$0xf] %vm1706_vm10, %v1902_v41  ;;  %v1920_v11 = vpack.c.bf16 %v3583_v27, %v3583_v27  ;;  %v1921_v18 = vpack.c.bf16 %v3589_v4, %v3589_v4  ;;  %v1922_v0 = vpack.c.bf16 %v3595_v61, %v3595_v61 }
 0x20e   :  { %1731 = vst.msk [vmem:[%s4095_s4 + $0x60] sm:$0xf] %vm1706_vm10, %v1903_v44  ;;  %1732 = vst.msk [vmem:[%s4095_s4 + $0x64] sm:$0xf] %vm1706_vm10, %v1904_v33  ;;  %v1923_v52 = vpack.c.bf16 %v3601_v45, %v3601_v45  ;;  %v1924_v27 = vpack.c.bf16 %v3607_v2, %v3607_v2  ;;  %v1925_v4 = vpack.c.bf16 %v3613_v60, %v3613_v60 }
 0x20f   :  { %1733 = vst.msk [vmem:[%s4095_s4 + $0x68] sm:$0xf] %vm1706_vm10, %v1905_v25  ;;  %1734 = vst.msk [vmem:[%s4095_s4 + $0x6c] sm:$0xf] %vm1706_vm10, %v1906_v26  ;;  %v1926_v61 = vpack.c.bf16 %v3619_v34, %v3619_v34  ;;  %v1927_v45 = vpack.c.bf16 %v3625_v51, %v3625_v51  ;;  %v1928_v2 = vpack.c.bf16 %v3631_v35, %v3631_v35 }
 0x210   :  { %1735 = vst.msk [vmem:[%s4095_s4 + $0x70] sm:$0xf] %vm1706_vm10, %v1907_v36  ;;  %1736 = vst.msk [vmem:[%s4095_s4 + $0x74] sm:$0xf] %vm1706_vm10, %v1908_v48  ;;  %v1929_v60 = vpack.c.bf16 %v3637_v40, %v3637_v40  ;;  %v1930_v34 = vpack.c.bf16 %v3643_v5, %v3643_v5  ;;  %v1931_v51 = vpack.c.bf16 %v3649_v8, %v3649_v8 }
 0x211   :  { %1737 = vst.msk [vmem:[%s4095_s4 + $0x78] sm:$0xf] %vm1706_vm10, %v1909_v38  ;;  %1738 = vst.msk [vmem:[%s4095_s4 + $0x7c] sm:$0xf] %vm1706_vm10, %v1910_v43  ;;  %v1932_v35 = vpack.c.bf16 %v3655_v13, %v3655_v13  ;;  %v1933_v40 = vpack.c.bf16 %v3660_v9, %v3660_v9  ;;  %v1934_v5 = vpack.c.bf16 %v3665_v28, %v3665_v28 }
 0x212   :  { %1739 = vst.msk [vmem:[%s4095_s4 + $0x80] sm:$0xf] %vm1706_vm10, %v1911_v37  ;;  %1740 = vst.msk [vmem:[%s4095_s4 + $0x84] sm:$0xf] %vm1706_vm10, %v1912_v55  ;;  %v1935_v8 = vpack.c.bf16 %v3670_v21, %v3670_v21  ;;  %v1936_v13 = vpack.c.bf16 %v3675_v57, %v3675_v57  ;;  %v1937_v9 = vpack.c.bf16 %v3680_v53, %v3680_v53 }
 0x213   :  { %1741 = vst.msk [vmem:[%s4095_s4 + $0x88] sm:$0xf] %vm1706_vm10, %v1913_v3  ;;  %1742 = vst.msk [vmem:[%s4095_s4 + $0x8c] sm:$0xf] %vm1706_vm10, %v1914_v56  ;;  %v1938_v28 = vpack.c.bf16 %v3685_v1, %v3685_v1  ;;  %v1939_v21 = vpack.c.bf16 %v3690_v63, %v3690_v63  ;;  %v1940_v57 = vpack.c.bf16 %v3695_v46, %v3695_v46 }
 0x214   :  { %1743 = vst.msk [vmem:[%s4095_s4 + $0x90] sm:$0xf] %vm1706_vm10, %v1915_v39  ;;  %1744 = vst.msk [vmem:[%s4095_s4 + $0x94] sm:$0xf] %vm1706_vm10, %v1916_v14  ;;  %v1941_v53 = vpack.c.bf16 %v3700_v49, %v3700_v49  ;;  %v1942_v1 = vpack.c.bf16 %v3705_v24, %v3705_v24 }
 0x215   :  { %1745 = vst.msk [vmem:[%s4095_s4 + $0x98] sm:$0xf] %vm1706_vm10, %v1917_v47  ;;  %1746 = vst.msk [vmem:[%s4095_s4 + $0x9c] sm:$0xf] %vm1706_vm10, %v1918_v17 }
 0x216   :  { %1747 = vst.msk [vmem:[%s4095_s4 + $0xa0] sm:$0xf] %vm1706_vm10, %v1919_v16  ;;  %1748 = vst.msk [vmem:[%s4095_s4 + $0xa4] sm:$0xf] %vm1706_vm10, %v1920_v11 }
 0x217   :  { %1749 = vst.msk [vmem:[%s4095_s4 + $0xa8] sm:$0xf] %vm1706_vm10, %v1921_v18  ;;  %1750 = vst.msk [vmem:[%s4095_s4 + $0xac] sm:$0xf] %vm1706_vm10, %v1922_v0 }
 0x218   :  { %1751 = vst.msk [vmem:[%s4095_s4 + $0xb0] sm:$0xf] %vm1706_vm10, %v1923_v52  ;;  %1752 = vst.msk [vmem:[%s4095_s4 + $0xb4] sm:$0xf] %vm1706_vm10, %v1924_v27 }
 0x219   :  { %1753 = vst.msk [vmem:[%s4095_s4 + $0xb8] sm:$0xf] %vm1706_vm10, %v1925_v4  ;;  %1754 = vst.msk [vmem:[%s4095_s4 + $0xbc] sm:$0xf] %vm1706_vm10, %v1926_v61 }
 0x21a   :  { %1755 = vst.msk [vmem:[%s4095_s4 + $0xc0] sm:$0xf] %vm1706_vm10, %v1927_v45  ;;  %1756 = vst.msk [vmem:[%s4095_s4 + $0xc4] sm:$0xf] %vm1706_vm10, %v1928_v2 }
 0x21b   :  { %1757 = vst.msk [vmem:[%s4095_s4 + $0xc8] sm:$0xf] %vm1706_vm10, %v1929_v60  ;;  %1758 = vst.msk [vmem:[%s4095_s4 + $0xcc] sm:$0xf] %vm1706_vm10, %v1930_v34 }
 0x21c   :  { %1759 = vst.msk [vmem:[%s4095_s4 + $0xd0] sm:$0xf] %vm1706_vm10, %v1931_v51  ;;  %1760 = vst.msk [vmem:[%s4095_s4 + $0xd4] sm:$0xf] %vm1706_vm10, %v1932_v35 }
 0x21d   :  { %1761 = vst.msk [vmem:[%s4095_s4 + $0xd8] sm:$0xf] %vm1706_vm10, %v1933_v40  ;;  %1762 = vst.msk [vmem:[%s4095_s4 + $0xdc] sm:$0xf] %vm1706_vm10, %v1934_v5 }
 0x21e   :  { %1763 = vst.msk [vmem:[%s4095_s4 + $0xe0] sm:$0xf] %vm1706_vm10, %v1935_v8  ;;  %1764 = vst.msk [vmem:[%s4095_s4 + $0xe4] sm:$0xf] %vm1706_vm10, %v1936_v13 }
 0x21f   :  { %1765 = vst.msk [vmem:[%s4095_s4 + $0xe8] sm:$0xf] %vm1706_vm10, %v1937_v9  ;;  %1766 = vst.msk [vmem:[%s4095_s4 + $0xec] sm:$0xf] %vm1706_vm10, %v1938_v28 }
 0x220   :  { %1767 = vst.msk [vmem:[%s4095_s4 + $0xf0] sm:$0xf] %vm1706_vm10, %v1939_v21  ;;  %1768 = vst.msk [vmem:[%s4095_s4 + $0xf4] sm:$0xf] %vm1706_vm10, %v1940_v57 }
 0x221   :  { %1769 = vst.msk [vmem:[%s4095_s4 + $0xf8] sm:$0xf] %vm1706_vm10, %v1941_v53  ;;  %1770 = vst.msk [vmem:[%s4095_s4 + $0xfc] sm:$0xf] %vm1706_vm10, %v1942_v1 }

// kernel: discriminator_forward.7
= control target key start
LH: loop header
LB: loop body
LE: loop exit
PB: predicated region body
PF: predicated region fallthrough
CT: control target
= control target key end

     0   :  { %vm22_vm0 = vcmask 253952   ;;  %v858_v32 = vmov 0.0   ;;  %vm347_vm1 = vcmask 261120   ;;  %s1148_s1 = inlined_call_operand.vmem [shape: bf16[256,32], index: 1, kind: input, shape index: {}]   ;;  %s1149_s0 = inlined_call_operand.vmem [shape: bf16[128,256], index: 0, kind: input, shape index: {}]   ;;  %s1150_s2 = inlined_call_operand.vmem [shape: f32[1,32], index: 2, kind: input, shape index: {}]   ;;  %s1151_s3 = inlined_call_operand.vmem [shape: f32[1,32], index: 3, kind: input, shape index: {}]   ;;  %s1152_s4 = inlined_call_operand.vmem [shape: bf16[128,32], index: 4, kind: output, shape index: {}]  }
   0x1   :  { %v816_v0 = vld [vmem:[%s1148_s1 + $0x40] sm:$0xff]   ;;  %v818_v2 = vld [vmem:[%s1148_s1 + $0x48] sm:$0xff]   ;;  %v820_v4 = vld [vmem:[%s1148_s1 + $0x50] sm:$0xff]   ;;  %23 = vst.msk [vmem:[#allocation3] sm:$0x1] %vm22_vm0, %v858_v32 }
   0x2   :  { %v817_v1 = vld [vmem:[%s1148_s1] sm:$0xff]   ;;  %735 = vmatprep.subr.bf16.mxu0 %v816_v0  ;;  %799 = vmatprep.subr.bf16.mxu1 %v816_v0  ;;  %v819_v3 = vld [vmem:[%s1148_s1 + $0x8] sm:$0xff]   ;;  %v821_v5 = vld [vmem:[%s1148_s1 + $0x10] sm:$0xff]   ;;  %24 = vst.msk [vmem:[#allocation4] sm:$0x1] %vm22_vm0, %v858_v32 }
   0x3   :  { %736 = vmatpush3.bf16.msra.mxu0 %v817_v1  ;;  %807 = vmatpush3.bf16.msra.mxu1 %v817_v1  ;;  %v822_v6 = vld [vmem:[%s1148_s1 + $0x58] sm:$0xff]   ;;  %v824_v8 = vld [vmem:[%s1148_s1 + $0x60] sm:$0xff]   ;;  %v826_v10 = vld [vmem:[%s1148_s1 + $0x68] sm:$0xff]  }
   0x4   :  { %737 = vmatprep.subr.bf16.mxu0 %v818_v2  ;;  %800 = vmatprep.subr.bf16.mxu1 %v818_v2  ;;  %v823_v7 = vld [vmem:[%s1148_s1 + $0x18] sm:$0xff]   ;;  %v825_v9 = vld [vmem:[%s1148_s1 + $0x20] sm:$0xff]   ;;  %v827_v12 = vld [vmem:[%s1148_s1 + $0x28] sm:$0xff]  }
   0x5   :  { %v834_v11 = vld [vmem:[%s1149_s0 + $0x4] ss:$8 sps:$4 sm:$0xff]   ;;  %v828_v14 = vld [vmem:[%s1148_s1 + $0x70] sm:$0xff]   ;;  %v830_v16 = vld [vmem:[%s1148_s1 + $0x78] sm:$0xff]  }
   0x6   :  { %v840_v13 = vld [vmem:[%s1149_s0 + $0x44] ss:$8 sps:$4 sm:$0xff]   ;;  %281 = vmatprep.mubr.bf16.mxu0 %v834_v11  ;;  %v829_v15 = vld [vmem:[%s1148_s1 + $0x30] sm:$0xff]   ;;  %v831_v17 = vld [vmem:[%s1148_s1 + $0x38] sm:$0xff]  }
   0x7   :  { %738 = vmatpush3.bf16.msra.mxu0 %v819_v3  ;;  %808 = vmatpush3.bf16.msra.mxu1 %v819_v3  ;;  %v832_v18 = vld [vmem:[%s1149_s0] ss:$8 sps:$4 sm:$0xff]   ;;  %v835_v20 = vld [vmem:[%s1149_s0 + $0x14] ss:$8 sps:$4 sm:$0xff]   ;;  %v837_v22 = vld [vmem:[%s1149_s0 + $0x10] ss:$8 sps:$4 sm:$0xff]  }
   0x8   :  { %739 = vmatprep.subr.bf16.mxu0 %v820_v4  ;;  %801 = vmatprep.subr.bf16.mxu1 %v820_v4  ;;  %v838_v19 = vld [vmem:[%s1149_s0 + $0x40] ss:$8 sps:$4 sm:$0xff]   ;;  %v844_v21 = vld [vmem:[%s1149_s0 + $0x54] ss:$8 sps:$4 sm:$0xff]   ;;  %v846_v23 = vld [vmem:[%s1149_s0 + $0x50] ss:$8 sps:$4 sm:$0xff]  }
   0x9   :  { %313 = vmatprep.mubr.bf16.mxu1 %v840_v13  ;;  %v841_v24 = vld [vmem:[%s1149_s0 + $0x24] ss:$8 sps:$4 sm:$0xff]   ;;  %v843_v26 = vld [vmem:[%s1149_s0 + $0x20] ss:$8 sps:$4 sm:$0xff]   ;;  %v847_v28 = vld [vmem:[%s1149_s0 + $0x34] ss:$8 sps:$4 sm:$0xff]  }
   0xa   :  { %v850_v25 = vld [vmem:[%s1149_s0 + $0x64] ss:$8 sps:$4 sm:$0xff]   ;;  %v852_v27 = vld [vmem:[%s1149_s0 + $0x60] ss:$8 sps:$4 sm:$0xff]   ;;  %v853_v29 = vld [vmem:[%s1149_s0 + $0x74] ss:$8 sps:$4 sm:$0xff]  }
   0xb   :  { %740 = vmatpush3.bf16.msra.mxu0 %v821_v5  ;;  %809 = vmatpush3.bf16.msra.mxu1 %v821_v5  ;;  %v849_v30 = vld [vmem:[%s1149_s0 + $0x30] ss:$8 sps:$4 sm:$0xff]  }
   0xc   :  { %741 = vmatprep.subr.bf16.mxu0 %v822_v6  ;;  %802 = vmatprep.subr.bf16.mxu1 %v822_v6  ;;  %v855_v31 = vld [vmem:[%s1149_s0 + $0x70] ss:$8 sps:$4 sm:$0xff]  }
   0xf   :  { %742 = vmatpush3.bf16.msra.mxu0 %v823_v7  ;;  %810 = vmatpush3.bf16.msra.mxu1 %v823_v7 }
  0x10   :  { %743 = vmatprep.subr.bf16.mxu0 %v824_v8  ;;  %803 = vmatprep.subr.bf16.mxu1 %v824_v8 }
  0x13   :  { %744 = vmatpush3.bf16.msra.mxu0 %v825_v9  ;;  %811 = vmatpush3.bf16.msra.mxu1 %v825_v9 }
  0x14   :  { %745 = vmatprep.subr.bf16.mxu0 %v826_v10  ;;  %804 = vmatprep.subr.bf16.mxu1 %v826_v10 }
  0x17   :  { %746 = vmatpush3.bf16.msra.mxu0 %v827_v12  ;;  %812 = vmatpush3.bf16.msra.mxu1 %v827_v12 }
  0x18   :  { %747 = vmatprep.subr.bf16.mxu0 %v828_v14  ;;  %805 = vmatprep.subr.bf16.mxu1 %v828_v14 }
  0x1b   :  { %748 = vmatpush3.bf16.msra.mxu0 %v829_v15  ;;  %813 = vmatpush3.bf16.msra.mxu1 %v829_v15 }
  0x1c   :  { %749 = vmatprep.subr.bf16.mxu0 %v830_v16  ;;  %806 = vmatprep.subr.bf16.mxu1 %v830_v16 }
  0x1f   :  { %750 = vmatpush3.bf16.msra.mxu0 %v831_v17  ;;  %814 = vmatpush3.bf16.msra.mxu1 %v831_v17 }
  0x22   :  { %282 = vmatmul.mubr.bf16.vlgmr.msra.gmra.mrb[0].mxu0 %v832_v18  ;;  %314 = vmatmul.mubr.bf16.vlgmr.msra.gmra.mrb[0].mxu1 %v838_v19 }
  0x23   :  { %289 = vmatprep.mubr.bf16.mxu0 %v835_v20  ;;  %321 = vmatprep.mubr.bf16.mxu1 %v844_v21 }
  0x2a   :  { %290 = vmatmul.mubr.bf16.gmra.mrb[4].mxu0 %v837_v22  ;;  %322 = vmatmul.mubr.bf16.gmra.mrb[4].mxu1 %v846_v23 }
  0x2b   :  { %297 = vmatprep.mubr.bf16.mxu0 %v841_v24  ;;  %329 = vmatprep.mubr.bf16.mxu1 %v850_v25 }
  0x32   :  { %298 = vmatmul.mubr.bf16.gmra.mrb[8].mxu0 %v843_v26  ;;  %330 = vmatmul.mubr.bf16.gmra.mrb[8].mxu1 %v852_v27 }
  0x33   :  { %305 = vmatprep.mubr.bf16.mxu0 %v847_v28  ;;  %337 = vmatprep.mubr.bf16.mxu1 %v853_v29 }
  0x3a   :  { %306 = vmatmul.mubr.bf16.gmra.mrb[12].mxu0 %v849_v30  ;;  %338 = vmatmul.mubr.bf16.gmra.mrb[12].mxu1 %v855_v31 }
  0xf5   :  { %v751_v33 = vpop.f32.mrb[0].mxu0  ;;  %v775_v34 = vpop.f32.mrb[0].mxu1 }
  0xf6   :  { %v752_v35 = vpop.f32.mrb[1].mxu0  ;;  %v776_v36 = vpop.f32.mrb[1].mxu1 }
  0xf7   :  { %v753_v37 = vadd.f32 %v752_v35, %v751_v33  ;;  %v754_v38 = vpop.f32.mrb[2].mxu0  ;;  %v982_v39 = vadd.f32 %v776_v36, %v775_v34  ;;  %v778_v40 = vpop.f32.mrb[2].mxu1 }
  0xf8   :  { %v755_v41 = vpop.f32.mrb[3].mxu0  ;;  %v779_v42 = vpop.f32.mrb[3].mxu1 }
  0xf9   :  { %v389_v43 = vmul.f32 %v753_v37, %v753_v37  ;;  %446 = vst.msk [vmem:[#allocation2] sm:$0xff] %vm347_vm1, %v753_v37  ;;  %v756_v44 = vadd.f32 %v755_v41, %v754_v38  ;;  %454 = vst.msk [vmem:[#allocation2 + $0x40] sm:$0xff] %vm347_vm1, %v982_v39  ;;  %v987_v45 = vadd.f32 %v779_v42, %v778_v40  ;;  %v348_v46 = vsel %vm347_vm1, %v753_v37, 0.0 }
  0xfb   :  { %v349_v47 = vsel %vm347_vm1, %v756_v44, 0.0  ;;  %v390_v48 = vmul.f32 %v756_v44, %v756_v44  ;;  %447 = vst.msk [vmem:[#allocation2 + $0x8] sm:$0xff] %vm347_vm1, %v756_v44  ;;  %455 = vst.msk [vmem:[#allocation2 + $0x48] sm:$0xff] %vm347_vm1, %v987_v45  ;;  %v405_v50 = vsel %vm347_vm1, %v389_v43, 0.0 }
  0xfc   :  { %v350_v49 = vadd.f32 %v349_v47, %v348_v46 }
  0xfd   :  { %v406_v51 = vsel %vm347_vm1, %v390_v48, 0.0  ;;  %v757_v52 = vpop.f32.mrb[4].mxu0  ;;  %v781_v53 = vpop.f32.mrb[4].mxu1 }
  0xfe   :  { %v407_v54 = vadd.f32 %v406_v51, %v405_v50  ;;  %v758_v55 = vpop.f32.mrb[5].mxu0  ;;  %v782_v56 = vpop.f32.mrb[5].mxu1  ;;  %v397_v50 = vmul.f32 %v982_v39, %v982_v39 }
  0xff   :  { %v759_v57 = vadd.f32 %v758_v55, %v757_v52  ;;  %v760_v58 = vpop.f32.mrb[6].mxu0  ;;  %v996_v59 = vadd.f32 %v782_v56, %v781_v53  ;;  %v784_v60 = vpop.f32.mrb[6].mxu1  ;;  %v363_v56 = vsel %vm347_vm1, %v982_v39, 0.0 }
 0x100   :  { %v761_v61 = vpop.f32.mrb[7].mxu0  ;;  %v785_v62 = vpop.f32.mrb[7].mxu1 }
 0x101   :  { %v351_v63 = vsel %vm347_vm1, %v759_v57, 0.0  ;;  %v391_v0 = vmul.f32 %v759_v57, %v759_v57  ;;  %448 = vst.msk [vmem:[#allocation2 + $0x10] sm:$0xff] %vm347_vm1, %v759_v57  ;;  %v762_v1 = vadd.f32 %v761_v61, %v760_v58  ;;  %456 = vst.msk [vmem:[#allocation2 + $0x50] sm:$0xff] %vm347_vm1, %v996_v59  ;;  %v1002_v3 = vadd.f32 %v785_v62, %v784_v60 }
 0x102   :  { %v352_v2 = vadd.f32 %v351_v63, %v350_v49  ;;  %v398_v57 = vmul.f32 %v987_v45, %v987_v45  ;;  %v420_v62 = vsel %vm347_vm1, %v397_v50, 0.0  ;;  %v365_v63 = vsel %vm347_vm1, %v987_v45, 0.0 }
 0x103   :  { %v408_v4 = vsel %vm347_vm1, %v391_v0, 0.0  ;;  %v353_v5 = vsel %vm347_vm1, %v762_v1, 0.0  ;;  %v392_v6 = vmul.f32 %v762_v1, %v762_v1  ;;  %449 = vst.msk [vmem:[#allocation2 + $0x18] sm:$0xff] %vm347_vm1, %v762_v1  ;;  %457 = vst.msk [vmem:[#allocation2 + $0x58] sm:$0xff] %vm347_vm1, %v1002_v3  ;;  %v399_v0 = vmul.f32 %v996_v59, %v996_v59 }
 0x104   :  { %v409_v7 = vadd.f32 %v408_v4, %v407_v54  ;;  %v354_v8 = vadd.f32 %v353_v5, %v352_v2  ;;  %v422_v4 = vsel %vm347_vm1, %v398_v57, 0.0  ;;  %v367_v39 = vsel %vm347_vm1, %v996_v59, 0.0 }
 0x105   :  { %v410_v9 = vsel %vm347_vm1, %v392_v6, 0.0  ;;  %v763_v10 = vpop.f32.mrb[8].mxu0  ;;  %v787_v11 = vpop.f32.mrb[8].mxu1  ;;  %v400_v5 = vmul.f32 %v1002_v3, %v1002_v3  ;;  %v369_v45 = vsel %vm347_vm1, %v1002_v3, 0.0 }
 0x106   :  { %v411_v12 = vadd.f32 %v410_v9, %v409_v7  ;;  %v764_v13 = vpop.f32.mrb[9].mxu0  ;;  %v788_v14 = vpop.f32.mrb[9].mxu1 }
 0x107   :  { %v765_v15 = vadd.f32 %v764_v13, %v763_v10  ;;  %v766_v16 = vpop.f32.mrb[10].mxu0  ;;  %v1010_v17 = vadd.f32 %v788_v14, %v787_v11  ;;  %v790_v18 = vpop.f32.mrb[10].mxu1 }
 0x108   :  { %v767_v19 = vpop.f32.mrb[11].mxu0  ;;  %v791_v20 = vpop.f32.mrb[11].mxu1 }
 0x109   :  { %v355_v21 = vsel %vm347_vm1, %v765_v15, 0.0  ;;  %v393_v22 = vmul.f32 %v765_v15, %v765_v15  ;;  %450 = vst.msk [vmem:[#allocation2 + $0x20] sm:$0xff] %vm347_vm1, %v765_v15  ;;  %v768_v23 = vadd.f32 %v767_v19, %v766_v16  ;;  %458 = vst.msk [vmem:[#allocation2 + $0x60] sm:$0xff] %vm347_vm1, %v1010_v17  ;;  %v792_v25 = vadd.f32 %v791_v20, %v790_v18 }
 0x10a   :  { %v356_v24 = vadd.f32 %v355_v21, %v354_v8  ;;  %v424_v8 = vsel %vm347_vm1, %v399_v0, 0.0  ;;  %v401_v9 = vmul.f32 %v1010_v17, %v1010_v17  ;;  %v371_v59 = vsel %vm347_vm1, %v1010_v17, 0.0 }
 0x10b   :  { %v412_v26 = vsel %vm347_vm1, %v393_v22, 0.0  ;;  %v357_v27 = vsel %vm347_vm1, %v768_v23, 0.0  ;;  %v394_v28 = vmul.f32 %v768_v23, %v768_v23  ;;  %451 = vst.msk [vmem:[#allocation2 + $0x28] sm:$0xff] %vm347_vm1, %v768_v23  ;;  %459 = vst.msk [vmem:[#allocation2 + $0x68] sm:$0xff] %vm347_vm1, %v792_v25  ;;  %v402_v13 = vmul.f32 %v792_v25, %v792_v25 }
 0x10c   :  { %v413_v29 = vadd.f32 %v412_v26, %v411_v12  ;;  %v358_v30 = vadd.f32 %v357_v27, %v356_v24  ;;  %v426_v12 = vsel %vm347_vm1, %v400_v5, 0.0  ;;  %v428_v18 = vsel %vm347_vm1, %v401_v9, 0.0 }
 0x10d   :  { %v414_v31 = vsel %vm347_vm1, %v394_v28, 0.0  ;;  %v769_v32 = vpop.f32.mrb[12].mxu0  ;;  %v793_v33 = vpop.f32.mrb[12].mxu1  ;;  %v373_v19 = vsel %vm347_vm1, %v792_v25, 0.0  ;;  %v430_v22 = vsel %vm347_vm1, %v402_v13, 0.0 }
 0x10e   :  { %v415_v34 = vadd.f32 %v414_v31, %v413_v29  ;;  %v770_v35 = vpop.f32.mrb[13].mxu0  ;;  %v794_v36 = vpop.f32.mrb[13].mxu1 }
 0x10f   :  { %v771_v37 = vadd.f32 %v770_v35, %v769_v32  ;;  %v772_v38 = vpop.f32.mrb[14].mxu0  ;;  %v795_v40 = vadd.f32 %v794_v36, %v793_v33  ;;  %v796_v41 = vpop.f32.mrb[14].mxu1 }
 0x110   :  { %v773_v42 = vpop.f32.mrb[15].mxu0  ;;  %v797_v43 = vpop.f32.mrb[15].mxu1 }
 0x111   :  { %v359_v44 = vsel %vm347_vm1, %v771_v37, 0.0  ;;  %v395_v46 = vmul.f32 %v771_v37, %v771_v37  ;;  %452 = vst.msk [vmem:[#allocation2 + $0x30] sm:$0xff] %vm347_vm1, %v771_v37  ;;  %v774_v47 = vadd.f32 %v773_v42, %v772_v38  ;;  %460 = vst.msk [vmem:[#allocation2 + $0x70] sm:$0xff] %vm347_vm1, %v795_v40  ;;  %v798_v49 = vadd.f32 %v797_v43, %v796_v41  ;;  %v346_v41 = vld [vmem:[#allocation3] sm:$0x1] }
 0x112   :  { %v360_v48 = vadd.f32 %v359_v44, %v358_v30  ;;  %v403_v14 = vmul.f32 %v795_v40, %v795_v40  ;;  %v375_v3 = vsel %vm347_vm1, %v795_v40, 0.0  ;;  %v388_v44 = vld [vmem:[#allocation4] sm:$0x1] }
 0x113   :  { %v416_v51 = vsel %vm347_vm1, %v395_v46, 0.0  ;;  %v361_v52 = vsel %vm347_vm1, %v774_v47, 0.0  ;;  %v396_v53 = vmul.f32 %v774_v47, %v774_v47  ;;  %453 = vst.msk [vmem:[#allocation2 + $0x38] sm:$0xff] %vm347_vm1, %v774_v47  ;;  %461 = vst.msk [vmem:[#allocation2 + $0x78] sm:$0xff] %vm347_vm1, %v798_v49  ;;  %v404_v24 = vmul.f32 %v798_v49, %v798_v49 }
 0x114   :  { %v417_v54 = vadd.f32 %v416_v51, %v415_v34  ;;  %v362_v55 = vadd.f32 %v361_v52, %v360_v48  ;;  %v432_v23 = vsel %vm347_vm1, %v403_v14, 0.0  ;;  %v377_v17 = vsel %vm347_vm1, %v798_v49, 0.0 }
 0x115   :  { %v418_v58 = vsel %vm347_vm1, %v396_v53, 0.0  ;;  %v434_v30 = vsel %vm347_vm1, %v404_v24, 0.0 }
 0x116   :  { %v364_v60 = vadd.f32 %v363_v56, %v362_v55  ;;  %v419_v61 = vadd.f32 %v418_v58, %v417_v54  ;;  %v495_v56 = vlaneseq  ;;  %v471_v58 = vld [vmem:[%s1150_s2] sm:$0x1] }
 0x118   :  { %v366_v1 = vadd.f32 %v365_v63, %v364_v60  ;;  %v421_v2 = vadd.f32 %v420_v62, %v419_v61  ;;  %v496_v57 = vshrl.u32 %v495_v56, 7  ;;  %v475_v63 = vld [vmem:[%s1151_s3] sm:$0x1]  ;;  %v492_v24 = vld [vmem:[#allocation2 + $0x70] sm:$0xff] }
 0x11a   :  { %v423_v6 = vadd.f32 %v422_v4, %v421_v2  ;;  %v368_v7 = vadd.f32 %v367_v39, %v366_v1  ;;  %v497_v60 = vsub.s32 0, %v496_v57  ;;  %v478_v2 = vld [vmem:[#allocation2] sm:$0xff]  ;;  %v479_v4 = vld [vmem:[#allocation2 + $0x8] sm:$0xff] }
 0x11b   :  { %v486_v39 = vld [vmem:[#allocation2 + $0x40] sm:$0xff] }
 0x11c   :  { %v370_v10 = vadd.f32 %v369_v45, %v368_v7  ;;  %v425_v11 = vadd.f32 %v424_v8, %v423_v6  ;;  %v480_v6 = vld [vmem:[#allocation2 + $0x10] sm:$0xff]  ;;  %v481_v7 = vld [vmem:[#allocation2 + $0x18] sm:$0xff]  ;;  %v487_v8 = vld [vmem:[#allocation2 + $0x48] sm:$0xff] }
 0x11d   :  { %v482_v45 = vld [vmem:[#allocation2 + $0x20] sm:$0xff] }
 0x11e   :  { %v372_v15 = vadd.f32 %v371_v59, %v370_v10  ;;  %v427_v16 = vadd.f32 %v426_v12, %v425_v11  ;;  %v483_v10 = vld [vmem:[#allocation2 + $0x28] sm:$0xff]  ;;  %v484_v11 = vld [vmem:[#allocation2 + $0x30] sm:$0xff]  ;;  %v485_v12 = vld [vmem:[#allocation2 + $0x38] sm:$0xff] }
 0x120   :  { %v429_v20 = vadd.f32 %v428_v18, %v427_v16  ;;  %v374_v21 = vadd.f32 %v373_v19, %v372_v15  ;;  %v488_v16 = vld [vmem:[#allocation2 + $0x50] sm:$0xff]  ;;  %v489_v18 = vld [vmem:[#allocation2 + $0x58] sm:$0xff]  ;;  %v490_v19 = vld [vmem:[#allocation2 + $0x60] sm:$0xff] }
 0x122   :  { %v431_v26 = vadd.f32 %v430_v22, %v429_v20  ;;  %v376_v27 = vadd.f32 %v375_v3, %v374_v21 }
 0x124   :  { %v433_v28 = vadd.f32 %v432_v23, %v431_v26  ;;  %v378_v29 = vadd.f32 %v377_v17, %v376_v27  ;;  %v491_v23 = vld [vmem:[#allocation2 + $0x68] sm:$0xff]  ;;  %v493_v26 = vld [vmem:[#allocation2 + $0x78] sm:$0xff] }
 0x126   :  { %v379_v31 = vrot.slane %v378_v29, 4  ;;  %v435_v32 = vadd.f32 %v434_v30, %v433_v28 }
 0x128   :  { %v380_v25 = vadd.f32 %v379_v31, %v378_v29  ;;  %v436_v33 = vrot.slane %v435_v32, 4 }
 0x12a   :  { %v381_v34 = vrot.slane %v380_v25, 2  ;;  %v437_v35 = vadd.f32 %v436_v33, %v435_v32 }
 0x12c   :  { %v382_v36 = vadd.f32 %v381_v34, %v380_v25  ;;  %v438_v37 = vrot.slane %v437_v35, 2 }
 0x12e   :  { %v383_v38 = vrot.slane %v382_v36, 1  ;;  %v439_v40 = vadd.f32 %v438_v37, %v437_v35 }
 0x130   :  { %v384_v42 = vadd.f32 %v383_v38, %v382_v36  ;;  %v440_v43 = vrot.slane %v439_v40, 1 }
 0x132   :  { %v385_v46 = vadd.f32 %v384_v42, %v346_v41  ;;  %v441_v47 = vadd.f32 %v440_v43, %v439_v40 }
 0x134   :  { %387 = vst.msk [vmem:[#allocation3] sm:$0x1] %vm22_vm0, %v385_v46  ;;  %v442_v48 = vadd.f32 %v441_v47, %v388_v44 }
 0x136   :  { %443 = vst.msk [vmem:[#allocation4] sm:$0x1] %vm22_vm0, %v442_v48 }
 0x13b   :  { %v465_v49 = vld [vmem:[#allocation3] sm:$0x1] }
 0x13c   :  { %v466_v50 = vmul.f32 0.0078125, %v465_v49 }
 0x13d   :  { %v467_v51 = vld [vmem:[#allocation4] sm:$0x1] }
 0x13e   :  { %v468_v52 = vmul.f32 0.0078125, %v467_v51  ;;  %v469_v53 = vmul.f32 %v466_v50, %v466_v50 }
 0x140   :  { %v470_v54 = vsub.f32 %v468_v52, %v469_v53 }
 0x142   :  { %v472_v55 = vadd.f32 1e-05, %v470_v54 }
 0x144   :  { %856 = vrsqrt.f32 %v472_v55 }
 0x14e   :  { %v857_v61 = vpop.eup %856 }
 0x14f   :  { %v474_v62 = vmul.f32 %v857_v61, %v471_v58 }
 0x151   :  { %v476_v0 = vmul.f32 %v474_v62, %v466_v50  ;;  %v498_v1 = vrot.slane %v474_v62, %v497_v60 }
 0x153   :  { %v477_v5 = vsub.f32 %v475_v63, %v476_v0  ;;  %v500_v9 = vmul.f32 %v498_v1, %v478_v2  ;;  %v501_v59 = vmul.f32 %v498_v1, %v479_v4  ;;  %v502_v13 = vmul.f32 %v498_v1, %v480_v6 }
 0x154   :  { %v503_v14 = vmul.f32 %v498_v1, %v481_v7  ;;  %v504_v15 = vmul.f32 %v498_v1, %v482_v45  ;;  %v505_v3 = vmul.f32 %v498_v1, %v483_v10  ;;  %v506_v20 = vmul.f32 %v498_v1, %v484_v11 }
 0x155   :  { %v507_v21 = vmul.f32 %v498_v1, %v485_v12  ;;  %v508_v22 = vmul.f32 %v498_v1, %v486_v39  ;;  %v509_v27 = vmul.f32 %v498_v1, %v487_v8  ;;  %v510_v17 = vmul.f32 %v498_v1, %v488_v16 }
 0x156   :  { %v511_v28 = vmul.f32 %v498_v1, %v489_v18  ;;  %v520_v29 = vrot.slane %v477_v5, %v497_v60  ;;  %v512_v30 = vmul.f32 %v498_v1, %v490_v19  ;;  %v513_v31 = vmul.f32 %v498_v1, %v491_v23 }
 0x157   :  { %v514_v32 = vmul.f32 %v498_v1, %v492_v24  ;;  %v515_v25 = vmul.f32 %v498_v1, %v493_v26 }
 0x158   :  { %v522_v33 = vadd.f32 %v520_v29, %v500_v9  ;;  %v523_v34 = vadd.f32 %v520_v29, %v501_v59  ;;  %v524_v35 = vadd.f32 %v520_v29, %v502_v13  ;;  %v525_v36 = vadd.f32 %v520_v29, %v503_v14 }
 0x159   :  { %v526_v37 = vadd.f32 %v520_v29, %v504_v15  ;;  %v527_v38 = vadd.f32 %v520_v29, %v505_v3  ;;  %v528_v40 = vadd.f32 %v520_v29, %v506_v20  ;;  %v529_v41 = vadd.f32 %v520_v29, %v507_v21 }
 0x15a   :  { %v530_v42 = vadd.f32 %v520_v29, %v508_v22  ;;  %v531_v43 = vadd.f32 %v520_v29, %v509_v27  ;;  %v532_v44 = vadd.f32 %v520_v29, %v510_v17  ;;  %v533_v46 = vadd.f32 %v520_v29, %v511_v28 }
 0x15b   :  { %v534_v47 = vadd.f32 %v520_v29, %v512_v30  ;;  %v535_v48 = vadd.f32 %v520_v29, %v513_v31  ;;  %v536_v49 = vadd.f32 %v520_v29, %v514_v32  ;;  %v537_v50 = vadd.f32 %v520_v29, %v515_v25 }
 0x15c   :  { %vm539_vm3 = vcmp.ge.f32.partialorder %v523_v34, 0.0  ;;  %vm540_vm4 = vcmp.ge.f32.partialorder %v524_v35, 0.0  ;;  %vm541_vm5 = vcmp.ge.f32.partialorder %v525_v36, 0.0  ;;  %vm542_vm6 = vcmp.ge.f32.partialorder %v526_v37, 0.0 }
 0x15d   :  { %vm543_vm7 = vcmp.ge.f32.partialorder %v527_v38, 0.0  ;;  %vm545_vm9 = vcmp.ge.f32.partialorder %v529_v41, 0.0  ;;  %vm546_vm10 = vcmp.ge.f32.partialorder %v530_v42, 0.0  ;;  %vm547_vm11 = vcmp.ge.f32.partialorder %v531_v43, 0.0 }
 0x15e   :  { %vm548_vm12 = vcmp.ge.f32.partialorder %v532_v44, 0.0  ;;  %vm549_vm13 = vcmp.ge.f32.partialorder %v533_v46, 0.0  ;;  %vm550_vm14 = vcmp.ge.f32.partialorder %v534_v47, 0.0  ;;  %vm551_vm15 = vcmp.ge.f32.partialorder %v535_v48, 0.0 }
 0x15f   :  { %vm552_vm0 = vcmp.ge.f32.partialorder %v536_v49, 0.0  ;;  %vm553_vm1 = vcmp.ge.f32.partialorder %v537_v50, 0.0  ;;  %v554_v51 = vmul.f32 0.2, %v522_v33  ;;  %v555_v52 = vmul.f32 0.2, %v523_v34 }
 0x160   :  { %v556_v53 = vmul.f32 0.2, %v524_v35  ;;  %v557_v54 = vmul.f32 0.2, %v525_v36  ;;  %v558_v55 = vmul.f32 0.2, %v526_v37 }
 0x161   :  { %v559_v56 = vmul.f32 0.2, %v527_v38  ;;  %v560_v57 = vmul.f32 0.2, %v528_v40  ;;  %v561_v58 = vmul.f32 0.2, %v529_v41  ;;  %v571_v1 = vsel %vm539_vm3, %v523_v34, %v555_v52 }
 0x162   :  { %v562_v60 = vmul.f32 0.2, %v530_v42  ;;  %vm1153_vm8 = vcmp.ge.f32.partialorder %v522_v33, 0.0  ;;  %v563_v62 = vmul.f32 0.2, %v531_v43  ;;  %v572_v5 = vsel %vm540_vm4, %v524_v35, %v556_v53 }
 0x163   :  { %v570_v61 = vsel %vm1153_vm8, %v522_v33, %v554_v51  ;;  %v564_v63 = vmul.f32 0.2, %v532_v44  ;;  %v565_v0 = vmul.f32 0.2, %v533_v46  ;;  %v566_v2 = vmul.f32 0.2, %v534_v47 }
 0x164   :  { %v567_v4 = vmul.f32 0.2, %v535_v48  ;;  %v568_v39 = vmul.f32 0.2, %v536_v49  ;;  %v569_v6 = vmul.f32 0.2, %v537_v50  ;;  %v573_v7 = vsel %vm541_vm5, %v525_v36, %v557_v54 }
 0x165   :  { %v574_v8 = vsel %vm542_vm6, %v526_v37, %v558_v55  ;;  %v575_v45 = vsel %vm543_vm7, %v527_v38, %v559_v56  ;;  %vm1154_vm2 = vcmp.ge.f32.partialorder %v528_v40, 0.0  ;;  %v577_v10 = vsel %vm545_vm9, %v529_v41, %v561_v58 }
 0x166   :  { %v576_v9 = vsel %vm1154_vm2, %v528_v40, %v560_v57  ;;  %v578_v11 = vsel %vm546_vm10, %v530_v42, %v562_v60  ;;  %v579_v12 = vsel %vm547_vm11, %v531_v43, %v563_v62  ;;  %v580_v59 = vsel %vm548_vm12, %v532_v44, %v564_v63 }
 0x167   :  { %v581_v13 = vsel %vm549_vm13, %v533_v46, %v565_v0  ;;  %v582_v14 = vsel %vm550_vm14, %v534_v47, %v566_v2  ;;  %v583_v15 = vsel %vm551_vm15, %v535_v48, %v567_v4  ;;  %v584_v16 = vsel %vm552_vm0, %v536_v49, %v568_v39 }
 0x168   :  { %v585_v18 = vsel %vm553_vm1, %v537_v50, %v569_v6  ;;  %v719_v19 = vpack.c.bf16 %v570_v61, %v570_v61  ;;  %v720_v3 = vpack.c.bf16 %v571_v1, %v571_v1  ;;  %v721_v20 = vpack.c.bf16 %v572_v5, %v572_v5 }
 0x169   :  { %v722_v21 = vpack.c.bf16 %v573_v7, %v573_v7  ;;  %v723_v22 = vpack.c.bf16 %v574_v8, %v574_v8  ;;  %v724_v23 = vpack.c.bf16 %v575_v45, %v575_v45  ;;  %v725_v24 = vpack.c.bf16 %v576_v9, %v576_v9 }
 0x16a   :  { %v726_v26 = vpack.c.bf16 %v577_v10, %v577_v10  ;;  %v727_v27 = vpack.c.bf16 %v578_v11, %v578_v11  ;;  %v728_v17 = vpack.c.bf16 %v579_v12, %v579_v12  ;;  %vm1155_vm2 = vcmask 257024  }
 0x16b   :  { %651 = vst.msk [vmem:[%s1152_s4] sm:$0xf] %vm1155_vm2, %v719_v19  ;;  %vm1156_vm3 = vmmov %vm1155_vm2  ;;  %v729_v28 = vpack.c.bf16 %v580_v59, %v580_v59  ;;  %v730_v29 = vpack.c.bf16 %v581_v13, %v581_v13  ;;  %v731_v30 = vpack.c.bf16 %v582_v14, %v582_v14  ;;  %v732_v31 = vpack.c.bf16 %v583_v15, %v583_v15 }
 0x16c   :  { %652 = vst.msk [vmem:[%s1152_s4 + $0x4] sm:$0xf] %vm1156_vm3, %v720_v3  ;;  %vm1157_vm4 = vmmov %vm1155_vm2  ;;  %v733_v32 = vpack.c.bf16 %v584_v16, %v584_v16  ;;  %v734_v25 = vpack.c.bf16 %v585_v18, %v585_v18 }
 0x16d   :  { %653 = vst.msk [vmem:[%s1152_s4 + $0x8] sm:$0xf] %vm1157_vm4, %v721_v20  ;;  %vm1158_vm5 = vmmov %vm1155_vm2 }
 0x16e   :  { %654 = vst.msk [vmem:[%s1152_s4 + $0xc] sm:$0xf] %vm1158_vm5, %v722_v21  ;;  %vm1159_vm6 = vmmov %vm1155_vm2 }
 0x16f   :  { %655 = vst.msk [vmem:[%s1152_s4 + $0x10] sm:$0xf] %vm1159_vm6, %v723_v22  ;;  %vm1160_vm7 = vmmov %vm1155_vm2 }
 0x170   :  { %656 = vst.msk [vmem:[%s1152_s4 + $0x14] sm:$0xf] %vm1160_vm7, %v724_v23  ;;  %vm1161_vm8 = vmmov %vm1155_vm2 }
 0x171   :  { %657 = vst.msk [vmem:[%s1152_s4 + $0x18] sm:$0xf] %vm1161_vm8, %v725_v24  ;;  %vm1162_vm9 = vmmov %vm1155_vm2 }
 0x172   :  { %658 = vst.msk [vmem:[%s1152_s4 + $0x1c] sm:$0xf] %vm1162_vm9, %v726_v26  ;;  %vm1163_vm10 = vmmov %vm1155_vm2 }
 0x173   :  { %659 = vst.msk [vmem:[%s1152_s4 + $0x20] sm:$0xf] %vm1163_vm10, %v727_v27  ;;  %vm1164_vm11 = vmmov %vm1155_vm2 }
 0x174   :  { %660 = vst.msk [vmem:[%s1152_s4 + $0x24] sm:$0xf] %vm1164_vm11, %v728_v17  ;;  %vm1165_vm12 = vmmov %vm1155_vm2 }
 0x175   :  { %661 = vst.msk [vmem:[%s1152_s4 + $0x28] sm:$0xf] %vm1165_vm12, %v729_v28  ;;  %vm1166_vm13 = vmmov %vm1155_vm2 }
 0x176   :  { %662 = vst.msk [vmem:[%s1152_s4 + $0x2c] sm:$0xf] %vm1166_vm13, %v730_v29  ;;  %vm1167_vm14 = vmmov %vm1155_vm2 }
 0x177   :  { %663 = vst.msk [vmem:[%s1152_s4 + $0x30] sm:$0xf] %vm1167_vm14, %v731_v30  ;;  %vm1168_vm15 = vmmov %vm1155_vm2 }
 0x178   :  { %664 = vst.msk [vmem:[%s1152_s4 + $0x34] sm:$0xf] %vm1168_vm15, %v732_v31  ;;  %vm1169_vm0 = vmmov %vm1155_vm2 }
 0x179   :  { %665 = vst.msk [vmem:[%s1152_s4 + $0x38] sm:$0xf] %vm1169_vm0, %v733_v32  ;;  %vm1170_vm1 = vmmov %vm1169_vm0 }
 0x17a   :  { %666 = vst.msk [vmem:[%s1152_s4 + $0x3c] sm:$0xf] %vm1170_vm1, %v734_v25 }

// kernel: discriminator_forward.8
= control target key start
LH: loop header
LB: loop body
LE: loop exit
PB: predicated region body
PF: predicated region fallthrough
CT: control target
= control target key end

     0   :  { %vm22_vm0 = vcmask 516096   ;;  %v699_v40 = vmov 0.0   ;;  %vm428_vm1 = vcmask 523264   ;;  %vm539_vm6 = vcmask 519168   ;;  %s879_s1 = inlined_call_operand.vmem [shape: bf16[512,64], index: 1, kind: input, shape index: {}]   ;;  %s880_s0 = inlined_call_operand.vmem [shape: bf16[32,512], index: 0, kind: input, shape index: {}]   ;;  %s881_s2 = inlined_call_operand.vmem [shape: f32[1,64], index: 2, kind: input, shape index: {}]   ;;  %s882_s3 = inlined_call_operand.vmem [shape: f32[1,64], index: 3, kind: input, shape index: {}]   ;;  %s883_s4 = inlined_call_operand.vmem [shape: bf16[32,64], index: 4, kind: output, shape index: {}]  }
   0x1   :  { %v653_v0 = vld [vmem:[%s879_s1 + $0x40] sm:$0xff]   ;;  %v657_v4 = vld [vmem:[%s879_s1 + $0x48] sm:$0xff]   ;;  %v661_v8 = vld [vmem:[%s879_s1 + $0x50] sm:$0xff]   ;;  %23 = vst.msk [vmem:[#allocation3] sm:$0x1] %vm22_vm0, %v699_v40 }
   0x2   :  { %v654_v1 = vld [vmem:[%s879_s1 + $0xc0] sm:$0xff]   ;;  %596 = vmatprep.subr.bf16.mxu0 %v653_v0  ;;  %v658_v5 = vld [vmem:[%s879_s1 + $0xc8] sm:$0xff]   ;;  %v662_v9 = vld [vmem:[%s879_s1 + $0xd0] sm:$0xff]   ;;  %24 = vst.msk [vmem:[#allocation4] sm:$0x1] %vm22_vm0, %v699_v40 }
   0x3   :  { %v655_v2 = vld [vmem:[%s879_s1] sm:$0xff]   ;;  %624 = vmatprep.subr.bf16.mxu1 %v654_v1  ;;  %v659_v6 = vld [vmem:[%s879_s1 + $0x8] sm:$0xff]   ;;  %v663_v10 = vld [vmem:[%s879_s1 + $0x10] sm:$0xff]  }
   0x4   :  { %v656_v3 = vld [vmem:[%s879_s1 + $0x80] sm:$0xff]   ;;  %597 = vmatpush3.bf16.msra.mxu0 %v655_v2  ;;  %v660_v7 = vld [vmem:[%s879_s1 + $0x88] sm:$0xff]   ;;  %v664_v11 = vld [vmem:[%s879_s1 + $0x90] sm:$0xff]  }
   0x5   :  { %625 = vmatpush3.bf16.msra.mxu1 %v656_v3  ;;  %598 = vmatprep.subr.bf16.mxu0 %v657_v4  ;;  %v665_v12 = vld [vmem:[%s879_s1 + $0x58] sm:$0xff]   ;;  %v669_v16 = vld [vmem:[%s879_s1 + $0x60] sm:$0xff]   ;;  %v673_v20 = vld [vmem:[%s879_s1 + $0x68] sm:$0xff]  }
   0x6   :  { %626 = vmatprep.subr.bf16.mxu1 %v658_v5  ;;  %v666_v13 = vld [vmem:[%s879_s1 + $0xd8] sm:$0xff]   ;;  %v670_v17 = vld [vmem:[%s879_s1 + $0xe0] sm:$0xff]   ;;  %v674_v21 = vld [vmem:[%s879_s1 + $0xe8] sm:$0xff]  }
   0x7   :  { %v667_v14 = vld [vmem:[%s879_s1 + $0x18] sm:$0xff]   ;;  %v671_v18 = vld [vmem:[%s879_s1 + $0x20] sm:$0xff]   ;;  %v675_v22 = vld [vmem:[%s879_s1 + $0x28] sm:$0xff]  }
   0x8   :  { %599 = vmatpush3.bf16.msra.mxu0 %v659_v6  ;;  %v668_v15 = vld [vmem:[%s879_s1 + $0x98] sm:$0xff]   ;;  %v672_v19 = vld [vmem:[%s879_s1 + $0xa0] sm:$0xff]   ;;  %v676_v23 = vld [vmem:[%s879_s1 + $0xa8] sm:$0xff]  }
   0x9   :  { %627 = vmatpush3.bf16.msra.mxu1 %v660_v7  ;;  %600 = vmatprep.subr.bf16.mxu0 %v661_v8  ;;  %v677_v24 = vld [vmem:[%s879_s1 + $0x70] sm:$0xff]   ;;  %v681_v28 = vld [vmem:[%s879_s1 + $0x78] sm:$0xff]  }
   0xa   :  { %628 = vmatprep.subr.bf16.mxu1 %v662_v9  ;;  %v678_v25 = vld [vmem:[%s879_s1 + $0xf0] sm:$0xff]   ;;  %v682_v29 = vld [vmem:[%s879_s1 + $0xf8] sm:$0xff]  }
   0xb   :  { %v679_v26 = vld [vmem:[%s879_s1 + $0x30] sm:$0xff]   ;;  %v683_v30 = vld [vmem:[%s879_s1 + $0x38] sm:$0xff]  }
   0xc   :  { %601 = vmatpush3.bf16.msra.mxu0 %v663_v10  ;;  %v680_v27 = vld [vmem:[%s879_s1 + $0xb0] sm:$0xff]   ;;  %v684_v31 = vld [vmem:[%s879_s1 + $0xb8] sm:$0xff]  }
   0xd   :  { %629 = vmatpush3.bf16.msra.mxu1 %v664_v11  ;;  %602 = vmatprep.subr.bf16.mxu0 %v665_v12  ;;  %v685_v32 = vld [vmem:[%s880_s0] ss:$16 sps:$4 sm:$0xff]   ;;  %v687_v33 = vld [vmem:[%s880_s0 + $0x4] ss:$16 sps:$4 sm:$0xff]   ;;  %v688_v34 = vld [vmem:[%s880_s0 + $0x8] ss:$16 sps:$4 sm:$0xff]  }
   0xe   :  { %630 = vmatprep.subr.bf16.mxu1 %v666_v13  ;;  %v690_v35 = vld [vmem:[%s880_s0 + $0xc] ss:$16 sps:$4 sm:$0xff]   ;;  %361 = vmatprep.mubr.bf16.mxu0 %v687_v33  ;;  %v691_v36 = vld [vmem:[%s880_s0 + $0x24] ss:$16 sps:$4 sm:$0xff]   ;;  %v695_v38 = vld [vmem:[%s880_s0 + $0x20] ss:$16 sps:$4 sm:$0xff]  }
   0xf   :  { %410 = vmatprep.mubr.bf16.mxu1 %v690_v35  ;;  %v693_v37 = vld [vmem:[%s880_s0 + $0x2c] ss:$16 sps:$4 sm:$0xff]   ;;  %v696_v39 = vld [vmem:[%s880_s0 + $0x28] ss:$16 sps:$4 sm:$0xff]   ;;  %v445_v35 = vld [vmem:[#allocation4] sm:$0x1] }
  0x10   :  { %603 = vmatpush3.bf16.msra.mxu0 %v667_v14 }
  0x11   :  { %631 = vmatpush3.bf16.msra.mxu1 %v668_v15  ;;  %604 = vmatprep.subr.bf16.mxu0 %v669_v16 }
  0x12   :  { %632 = vmatprep.subr.bf16.mxu1 %v670_v17 }
  0x14   :  { %605 = vmatpush3.bf16.msra.mxu0 %v671_v18 }
  0x15   :  { %633 = vmatpush3.bf16.msra.mxu1 %v672_v19  ;;  %606 = vmatprep.subr.bf16.mxu0 %v673_v20 }
  0x16   :  { %634 = vmatprep.subr.bf16.mxu1 %v674_v21 }
  0x18   :  { %607 = vmatpush3.bf16.msra.mxu0 %v675_v22 }
  0x19   :  { %635 = vmatpush3.bf16.msra.mxu1 %v676_v23  ;;  %608 = vmatprep.subr.bf16.mxu0 %v677_v24 }
  0x1a   :  { %636 = vmatprep.subr.bf16.mxu1 %v678_v25 }
  0x1c   :  { %609 = vmatpush3.bf16.msra.mxu0 %v679_v26 }
  0x1d   :  { %637 = vmatpush3.bf16.msra.mxu1 %v680_v27  ;;  %610 = vmatprep.subr.bf16.mxu0 %v681_v28 }
  0x1e   :  { %638 = vmatprep.subr.bf16.mxu1 %v682_v29 }
  0x20   :  { %611 = vmatpush3.bf16.msra.mxu0 %v683_v30 }
  0x21   :  { %639 = vmatpush3.bf16.msra.mxu1 %v684_v31 }
  0x23   :  { %362 = vmatmul.mubr.bf16.vlgmr.msra.gmra.mrb[0].mxu0 %v685_v32  ;;  %v427_v32 = vld [vmem:[#allocation3] sm:$0x1] }
  0x24   :  { %411 = vmatmul.mubr.bf16.vlgmr.msra.gmra.mrb[0].mxu1 %v688_v34  ;;  %369 = vmatprep.mubr.bf16.mxu0 %v691_v36 }
  0x25   :  { %418 = vmatprep.mubr.bf16.mxu1 %v693_v37 }
  0x2b   :  { %370 = vmatmul.mubr.bf16.gmra.mrb[4].mxu0 %v695_v38 }
  0x2c   :  { %419 = vmatmul.mubr.bf16.gmra.mrb[4].mxu1 %v696_v39 }
  0xf6   :  { %v612_v41 = vpop.f32.mrb[0].mxu0 }
  0xf7   :  { %v640_v42 = vpop.f32.mrb[0].mxu1  ;;  %v613_v43 = vpop.f32.mrb[1].mxu0 }
  0xf8   :  { %v614_v44 = vadd.f32 %v613_v43, %v612_v41  ;;  %v641_v45 = vpop.f32.mrb[1].mxu1  ;;  %v615_v46 = vpop.f32.mrb[2].mxu0 }
  0xf9   :  { %v642_v47 = vadd.f32 %v641_v45, %v640_v42  ;;  %v643_v48 = vpop.f32.mrb[2].mxu1  ;;  %v616_v49 = vpop.f32.mrb[3].mxu0 }
  0xfa   :  { %v617_v50 = vadd.f32 %v616_v49, %v615_v46  ;;  %v644_v51 = vpop.f32.mrb[3].mxu1  ;;  %v492_v46 = vlaneseq }
  0xfb   :  { %v413_v52 = vadd.f32 %v642_v47, %v614_v44  ;;  %v645_v53 = vadd.f32 %v644_v51, %v643_v48  ;;  %v480_v48 = vld [vmem:[%s881_s2] sm:$0x1] }
  0xfc   :  { %v493_v47 = vshrl.u32 %v492_v46, 7 }
  0xfd   :  { %v446_v54 = vmul.f32 %v413_v52, %v413_v52  ;;  %467 = vst.msk [vmem:[#allocation2] sm:$0xff] %vm428_vm1, %v413_v52  ;;  %v416_v55 = vadd.f32 %v645_v53, %v617_v50  ;;  %v429_v57 = vsel %vm428_vm1, %v413_v52, 0.0  ;;  %v484_v52 = vld [vmem:[%s882_s3] sm:$0x1] }
  0xfe   :  { %v618_v56 = vpop.f32.mrb[4].mxu0  ;;  %v494_v49 = vsub.s32 0, %v493_v47 }
  0xff   :  { %v430_v58 = vsel %vm428_vm1, %v416_v55, 0.0  ;;  %v447_v59 = vmul.f32 %v416_v55, %v416_v55  ;;  %468 = vst.msk [vmem:[#allocation2 + $0x8] sm:$0xff] %vm428_vm1, %v416_v55  ;;  %v646_v60 = vpop.f32.mrb[4].mxu1  ;;  %v619_v61 = vpop.f32.mrb[5].mxu0  ;;  %v450_v2 = vsel %vm428_vm1, %v446_v54, 0.0 }
 0x100   :  { %v431_v62 = vadd.f32 %v430_v58, %v429_v57  ;;  %v620_v63 = vadd.f32 %v619_v61, %v618_v56  ;;  %v647_v0 = vpop.f32.mrb[5].mxu1  ;;  %v621_v1 = vpop.f32.mrb[6].mxu0 }
 0x101   :  { %v451_v3 = vsel %vm428_vm1, %v447_v59, 0.0  ;;  %v648_v4 = vadd.f32 %v647_v0, %v646_v60  ;;  %v649_v5 = vpop.f32.mrb[6].mxu1  ;;  %v622_v6 = vpop.f32.mrb[7].mxu0 }
 0x102   :  { %v452_v7 = vadd.f32 %v451_v3, %v450_v2  ;;  %v623_v8 = vadd.f32 %v622_v6, %v621_v1  ;;  %v650_v9 = vpop.f32.mrb[7].mxu1 }
 0x103   :  { %v421_v10 = vadd.f32 %v648_v4, %v620_v63  ;;  %v651_v11 = vadd.f32 %v650_v9, %v649_v5 }
 0x104   :  { %v487_v55 = vld [vmem:[#allocation2] sm:$0xff] }
 0x105   :  { %v432_v12 = vsel %vm428_vm1, %v421_v10, 0.0  ;;  %v448_v13 = vmul.f32 %v421_v10, %v421_v10  ;;  %469 = vst.msk [vmem:[#allocation2 + $0x10] sm:$0xff] %vm428_vm1, %v421_v10  ;;  %v424_v14 = vadd.f32 %v651_v11, %v623_v8 }
 0x106   :  { %v433_v15 = vadd.f32 %v432_v12, %v431_v62  ;;  %v488_v57 = vld [vmem:[#allocation2 + $0x8] sm:$0xff] }
 0x107   :  { %v453_v16 = vsel %vm428_vm1, %v448_v13, 0.0  ;;  %v434_v17 = vsel %vm428_vm1, %v424_v14, 0.0  ;;  %v449_v18 = vmul.f32 %v424_v14, %v424_v14  ;;  %470 = vst.msk [vmem:[#allocation2 + $0x18] sm:$0xff] %vm428_vm1, %v424_v14 }
 0x108   :  { %v454_v19 = vadd.f32 %v453_v16, %v452_v7  ;;  %v435_v20 = vadd.f32 %v434_v17, %v433_v15 }
 0x109   :  { %v455_v21 = vsel %vm428_vm1, %v449_v18, 0.0 }
 0x10a   :  { %v436_v22 = vrot.slane %v435_v20, 4  ;;  %v456_v23 = vadd.f32 %v455_v21, %v454_v19 }
 0x10c   :  { %v437_v24 = vadd.f32 %v436_v22, %v435_v20  ;;  %v457_v25 = vrot.slane %v456_v23, 4  ;;  %v489_v58 = vld [vmem:[#allocation2 + $0x10] sm:$0xff] }
 0x10e   :  { %v438_v26 = vrot.slane %v437_v24, 2  ;;  %v458_v27 = vadd.f32 %v457_v25, %v456_v23  ;;  %v490_v59 = vld [vmem:[#allocation2 + $0x18] sm:$0xff] }
 0x110   :  { %v439_v28 = vadd.f32 %v438_v26, %v437_v24  ;;  %v459_v29 = vrot.slane %v458_v27, 2 }
 0x112   :  { %v440_v30 = vrot.slane %v439_v28, 1  ;;  %v460_v31 = vadd.f32 %v459_v29, %v458_v27 }
 0x114   :  { %v441_v33 = vadd.f32 %v440_v30, %v439_v28  ;;  %v461_v34 = vrot.slane %v460_v31, 1 }
 0x116   :  { %v442_v36 = vadd.f32 %v441_v33, %v427_v32  ;;  %v462_v37 = vadd.f32 %v461_v34, %v460_v31 }
 0x118   :  { %444 = vst.msk [vmem:[#allocation3] sm:$0x1] %vm22_vm0, %v442_v36  ;;  %v463_v38 = vadd.f32 %v462_v37, %v445_v35 }
 0x11a   :  { %464 = vst.msk [vmem:[#allocation4] sm:$0x1] %vm22_vm0, %v463_v38 }
 0x11f   :  { %v474_v39 = vld [vmem:[#allocation3] sm:$0x1] }
 0x120   :  { %v475_v40 = vmul.f32 0.03125, %v474_v39 }
 0x121   :  { %v476_v41 = vld [vmem:[#allocation4] sm:$0x1] }
 0x122   :  { %v477_v42 = vmul.f32 0.03125, %v476_v41  ;;  %v478_v43 = vmul.f32 %v475_v40, %v475_v40 }
 0x124   :  { %v479_v44 = vsub.f32 %v477_v42, %v478_v43 }
 0x126   :  { %v481_v45 = vadd.f32 1e-05, %v479_v44 }
 0x128   :  { %697 = vrsqrt.f32 %v481_v45 }
 0x132   :  { %v698_v50 = vpop.eup %697 }
 0x133   :  { %v483_v51 = vmul.f32 %v698_v50, %v480_v48 }
 0x135   :  { %v485_v53 = vmul.f32 %v483_v51, %v475_v40  ;;  %v495_v54 = vrot.slane %v483_v51, %v494_v49 }
 0x137   :  { %v486_v56 = vsub.f32 %v484_v52, %v485_v53  ;;  %v497_v60 = vmul.f32 %v495_v54, %v487_v55  ;;  %v498_v61 = vmul.f32 %v495_v54, %v488_v57  ;;  %v499_v62 = vmul.f32 %v495_v54, %v489_v58 }
 0x138   :  { %v500_v63 = vmul.f32 %v495_v54, %v490_v59 }
 0x139   :  { %v505_v0 = vrot.slane %v486_v56, %v494_v49 }
 0x13b   :  { %v507_v1 = vadd.f32 %v505_v0, %v497_v60  ;;  %v508_v2 = vadd.f32 %v505_v0, %v498_v61  ;;  %v509_v3 = vadd.f32 %v505_v0, %v499_v62  ;;  %v510_v4 = vadd.f32 %v505_v0, %v500_v63 }
 0x13d   :  { %vm511_vm2 = vcmp.ge.f32.partialorder %v507_v1, 0.0  ;;  %vm512_vm3 = vcmp.ge.f32.partialorder %v508_v2, 0.0  ;;  %vm513_vm4 = vcmp.ge.f32.partialorder %v509_v3, 0.0  ;;  %vm514_vm5 = vcmp.ge.f32.partialorder %v510_v4, 0.0 }
 0x13e   :  { %v515_v5 = vmul.f32 0.2, %v507_v1  ;;  %v516_v6 = vmul.f32 0.2, %v508_v2  ;;  %v517_v7 = vmul.f32 0.2, %v509_v3 }
 0x13f   :  { %v518_v8 = vmul.f32 0.2, %v510_v4 }
 0x140   :  { %v519_v9 = vsel %vm511_vm2, %v507_v1, %v515_v5  ;;  %v520_v10 = vsel %vm512_vm3, %v508_v2, %v516_v6  ;;  %v521_v11 = vsel %vm513_vm4, %v509_v3, %v517_v7 }
 0x141   :  { %v522_v12 = vsel %vm514_vm5, %v510_v4, %v518_v8  ;;  %v592_v13 = vpack.c.bf16 %v519_v9, %v519_v9  ;;  %v593_v14 = vpack.c.bf16 %v520_v10, %v520_v10  ;;  %v594_v15 = vpack.c.bf16 %v521_v11, %v521_v11 }
 0x142   :  { %v595_v16 = vpack.c.bf16 %v522_v12, %v522_v12 }
 0x143   :  { %540 = vst.msk [vmem:[%s883_s4] sm:$0xf] %vm539_vm6, %v592_v13  ;;  %541 = vst.msk [vmem:[%s883_s4 + $0x4] sm:$0xf] %vm539_vm6, %v593_v14 }
 0x144   :  { %542 = vst.msk [vmem:[%s883_s4 + $0x8] sm:$0xf] %vm539_vm6, %v594_v15  ;;  %543 = vst.msk [vmem:[%s883_s4 + $0xc] sm:$0xf] %vm539_vm6, %v595_v16 }

// kernel: discriminator_forward.9
= control target key start
LH: loop header
LB: loop body
LE: loop exit
PB: predicated region body
PF: predicated region fallthrough
CT: control target
= control target key end

     0   :  { %vm722_vm0 = vcmask 7168   ;;  %s1187_s1 = inlined_call_operand.vmem [shape: bf16[1024,1], index: 1, kind: input, shape index: {}]   ;;  %s1188_s0 = inlined_call_operand.vmem [shape: bf16[8,1024], index: 0, kind: input, shape index: {}]   ;;  %s1189_s2 = inlined_call_operand.vmem [shape: f32[8,1], index: 2, kind: output, shape index: {}]  }
   0x1   :  { %v889_v0 = vld [vmem:[%s1187_s1 + $0x40] sm:$0xff]   ;;  %v893_v4 = vld [vmem:[%s1187_s1 + $0x48] sm:$0xff]   ;;  %v897_v8 = vld [vmem:[%s1187_s1 + $0x50] sm:$0xff]  }
   0x2   :  { %v890_v1 = vld [vmem:[%s1187_s1 + $0xc0] sm:$0xff]   ;;  %801 = vmatprep.subr.bf16.mxu0 %v889_v0  ;;  %v894_v5 = vld [vmem:[%s1187_s1 + $0xc8] sm:$0xff]   ;;  %v898_v9 = vld [vmem:[%s1187_s1 + $0xd0] sm:$0xff]  }
   0x3   :  { %v891_v2 = vld [vmem:[%s1187_s1] sm:$0xff]   ;;  %823 = vmatprep.subr.bf16.mxu1 %v890_v1  ;;  %v895_v6 = vld [vmem:[%s1187_s1 + $0x8] sm:$0xff]   ;;  %v899_v10 = vld [vmem:[%s1187_s1 + $0x10] sm:$0xff]  }
   0x4   :  { %v892_v3 = vld [vmem:[%s1187_s1 + $0x80] sm:$0xff]   ;;  %802 = vmatpush3.bf16.msra.mxu0 %v891_v2  ;;  %v896_v7 = vld [vmem:[%s1187_s1 + $0x88] sm:$0xff]   ;;  %v900_v11 = vld [vmem:[%s1187_s1 + $0x90] sm:$0xff]  }
   0x5   :  { %824 = vmatpush3.bf16.msra.mxu1 %v892_v3  ;;  %803 = vmatprep.subr.bf16.mxu0 %v893_v4  ;;  %v901_v12 = vld [vmem:[%s1187_s1 + $0x58] sm:$0xff]   ;;  %v905_v16 = vld [vmem:[%s1187_s1 + $0x60] sm:$0xff]   ;;  %v909_v20 = vld [vmem:[%s1187_s1 + $0x68] sm:$0xff]  }
   0x6   :  { %825 = vmatprep.subr.bf16.mxu1 %v894_v5  ;;  %v902_v13 = vld [vmem:[%s1187_s1 + $0xd8] sm:$0xff]   ;;  %v906_v17 = vld [vmem:[%s1187_s1 + $0xe0] sm:$0xff]   ;;  %v910_v21 = vld [vmem:[%s1187_s1 + $0xe8] sm:$0xff]  }
   0x7   :  { %v903_v14 = vld [vmem:[%s1187_s1 + $0x18] sm:$0xff]   ;;  %v907_v18 = vld [vmem:[%s1187_s1 + $0x20] sm:$0xff]   ;;  %v911_v22 = vld [vmem:[%s1187_s1 + $0x28] sm:$0xff]  }
   0x8   :  { %804 = vmatpush3.bf16.msra.mxu0 %v895_v6  ;;  %v904_v15 = vld [vmem:[%s1187_s1 + $0x98] sm:$0xff]   ;;  %v908_v19 = vld [vmem:[%s1187_s1 + $0xa0] sm:$0xff]   ;;  %v912_v23 = vld [vmem:[%s1187_s1 + $0xa8] sm:$0xff]  }
   0x9   :  { %826 = vmatpush3.bf16.msra.mxu1 %v896_v7  ;;  %805 = vmatprep.subr.bf16.mxu0 %v897_v8  ;;  %v913_v24 = vld [vmem:[%s1187_s1 + $0x70] sm:$0xff]   ;;  %v917_v28 = vld [vmem:[%s1187_s1 + $0x78] sm:$0xff]   ;;  %v12_v32 = vld [vmem:[%s1188_s0] sm:$0xff] }
   0xa   :  { %827 = vmatprep.subr.bf16.mxu1 %v898_v9  ;;  %v914_v25 = vld [vmem:[%s1187_s1 + $0xf0] sm:$0xff]   ;;  %v918_v29 = vld [vmem:[%s1187_s1 + $0xf8] sm:$0xff]   ;;  %v13_v33 = vld [vmem:[%s1188_s0 + $0x8] sm:$0xff]  ;;  %v728_v34 = vcombine.low %v12_v32, %v12_v32  ;;  %v729_v35 = vcombine.high %v12_v32, %v12_v32 }
   0xb   :  { %v915_v26 = vld [vmem:[%s1187_s1 + $0x30] sm:$0xff]   ;;  %v919_v30 = vld [vmem:[%s1187_s1 + $0x38] sm:$0xff]   ;;  %v730_v36 = vcombine.low %v13_v33, %v13_v33  ;;  %v731_v37 = vcombine.high %v13_v33, %v13_v33  ;;  %v925_v38 = vld [vmem:[%s1187_s1 + $0x140] sm:$0xff]  }
   0xc   :  { %806 = vmatpush3.bf16.msra.mxu0 %v899_v10  ;;  %v916_v27 = vld [vmem:[%s1187_s1 + $0xb0] sm:$0xff]   ;;  %v920_v31 = vld [vmem:[%s1187_s1 + $0xb8] sm:$0xff]   ;;  %v926_v39 = vld [vmem:[%s1187_s1 + $0x1c0] sm:$0xff]   ;;  %588 = vmatprep.mubr.bf16.mxu0 %v729_v35 }
   0xd   :  { %828 = vmatpush3.bf16.msra.mxu1 %v900_v11  ;;  %807 = vmatprep.subr.bf16.mxu0 %v901_v12  ;;  %v927_v40 = vld [vmem:[%s1187_s1 + $0x100] sm:$0xff]   ;;  %v929_v42 = vld [vmem:[%s1187_s1 + $0x148] sm:$0xff]   ;;  %v933_v46 = vld [vmem:[%s1187_s1 + $0x150] sm:$0xff]  }
   0xe   :  { %829 = vmatprep.subr.bf16.mxu1 %v902_v13  ;;  %628 = vmatprep.mubr.bf16.mxu1 %v731_v37  ;;  %v928_v41 = vld [vmem:[%s1187_s1 + $0x180] sm:$0xff]   ;;  %v930_v43 = vld [vmem:[%s1187_s1 + $0x1c8] sm:$0xff]   ;;  %v934_v47 = vld [vmem:[%s1187_s1 + $0x1d0] sm:$0xff]  }
   0xf   :  { %v931_v44 = vld [vmem:[%s1187_s1 + $0x108] sm:$0xff]   ;;  %v935_v48 = vld [vmem:[%s1187_s1 + $0x110] sm:$0xff]   ;;  %v937_v50 = vld [vmem:[%s1187_s1 + $0x158] sm:$0xff]  }
  0x10   :  { %808 = vmatpush3.bf16.msra.mxu0 %v903_v14  ;;  %v932_v45 = vld [vmem:[%s1187_s1 + $0x188] sm:$0xff]   ;;  %v936_v49 = vld [vmem:[%s1187_s1 + $0x190] sm:$0xff]   ;;  %v938_v51 = vld [vmem:[%s1187_s1 + $0x1d8] sm:$0xff]  }
  0x11   :  { %830 = vmatpush3.bf16.msra.mxu1 %v904_v15  ;;  %809 = vmatprep.subr.bf16.mxu0 %v905_v16  ;;  %v939_v52 = vld [vmem:[%s1187_s1 + $0x118] sm:$0xff]   ;;  %v941_v54 = vld [vmem:[%s1187_s1 + $0x160] sm:$0xff]   ;;  %v945_v58 = vld [vmem:[%s1187_s1 + $0x168] sm:$0xff]  }
  0x12   :  { %831 = vmatprep.subr.bf16.mxu1 %v906_v17  ;;  %v940_v53 = vld [vmem:[%s1187_s1 + $0x198] sm:$0xff]   ;;  %v942_v55 = vld [vmem:[%s1187_s1 + $0x1e0] sm:$0xff]   ;;  %v946_v59 = vld [vmem:[%s1187_s1 + $0x1e8] sm:$0xff]  }
  0x13   :  { %v943_v56 = vld [vmem:[%s1187_s1 + $0x120] sm:$0xff]   ;;  %v947_v60 = vld [vmem:[%s1187_s1 + $0x128] sm:$0xff]   ;;  %v949_v62 = vld [vmem:[%s1187_s1 + $0x170] sm:$0xff]  }
  0x14   :  { %810 = vmatpush3.bf16.msra.mxu0 %v907_v18  ;;  %v944_v57 = vld [vmem:[%s1187_s1 + $0x1a0] sm:$0xff]   ;;  %v948_v61 = vld [vmem:[%s1187_s1 + $0x1a8] sm:$0xff]   ;;  %v950_v63 = vld [vmem:[%s1187_s1 + $0x1f0] sm:$0xff]  }
  0x15   :  { %832 = vmatpush3.bf16.msra.mxu1 %v908_v19  ;;  %811 = vmatprep.subr.bf16.mxu0 %v909_v20  ;;  %v951_v0 = vld [vmem:[%s1187_s1 + $0x130] sm:$0xff]   ;;  %v953_v2 = vld [vmem:[%s1187_s1 + $0x178] sm:$0xff]  }
  0x16   :  { %833 = vmatprep.subr.bf16.mxu1 %v910_v21  ;;  %v952_v1 = vld [vmem:[%s1187_s1 + $0x1b0] sm:$0xff]   ;;  %v954_v3 = vld [vmem:[%s1187_s1 + $0x1f8] sm:$0xff]  }
  0x17   :  { %v955_v4 = vld [vmem:[%s1187_s1 + $0x138] sm:$0xff]   ;;  %v14_v6 = vld [vmem:[%s1188_s0 + $0x10] sm:$0xff] }
  0x18   :  { %812 = vmatpush3.bf16.msra.mxu0 %v911_v22  ;;  %v956_v5 = vld [vmem:[%s1187_s1 + $0x1b8] sm:$0xff]   ;;  %v732_v7 = vcombine.low %v14_v6, %v14_v6  ;;  %v733_v8 = vcombine.high %v14_v6, %v14_v6 }
  0x19   :  { %834 = vmatpush3.bf16.msra.mxu1 %v912_v23  ;;  %813 = vmatprep.subr.bf16.mxu0 %v913_v24  ;;  %v15_v9 = vld [vmem:[%s1188_s0 + $0x18] sm:$0xff] }
  0x1a   :  { %835 = vmatprep.subr.bf16.mxu1 %v914_v25  ;;  %v734_v10 = vcombine.low %v15_v9, %v15_v9  ;;  %v735_v11 = vcombine.high %v15_v9, %v15_v9 }
  0x1c   :  { %814 = vmatpush3.bf16.msra.mxu0 %v915_v26 }
  0x1d   :  { %836 = vmatpush3.bf16.msra.mxu1 %v916_v27  ;;  %815 = vmatprep.subr.bf16.mxu0 %v917_v28 }
  0x1e   :  { %837 = vmatprep.subr.bf16.mxu1 %v918_v29 }
  0x20   :  { %816 = vmatpush3.bf16.msra.mxu0 %v919_v30 }
  0x21   :  { %838 = vmatpush3.bf16.msra.mxu1 %v920_v31  ;;  %845 = vmatprep.subr.bf16.mxu0 %v925_v38 }
  0x22   :  { %867 = vmatprep.subr.bf16.mxu1 %v926_v39 }
  0x23   :  { %589 = vmatmul.mubr.bf16.vlgmr.msra.gmra.mrb[0].mxu0 %v728_v34 }
  0x24   :  { %629 = vmatmul.mubr.bf16.vlgmr.msra.gmra.mrb[0].mxu1 %v730_v36  ;;  %846 = vmatpush3.bf16.msra.mxu0 %v927_v40 }
  0x25   :  { %868 = vmatpush3.bf16.msra.mxu1 %v928_v41  ;;  %847 = vmatprep.subr.bf16.mxu0 %v929_v42 }
  0x26   :  { %869 = vmatprep.subr.bf16.mxu1 %v930_v43  ;;  %668 = vmatprep.mubr.bf16.mxu0 %v733_v8 }
  0x27   :  { %708 = vmatprep.mubr.bf16.mxu1 %v735_v11 }
  0x28   :  { %848 = vmatpush3.bf16.msra.mxu0 %v931_v44 }
  0x29   :  { %870 = vmatpush3.bf16.msra.mxu1 %v932_v45  ;;  %849 = vmatprep.subr.bf16.mxu0 %v933_v46 }
  0x2a   :  { %871 = vmatprep.subr.bf16.mxu1 %v934_v47 }
  0x2c   :  { %850 = vmatpush3.bf16.msra.mxu0 %v935_v48 }
  0x2d   :  { %872 = vmatpush3.bf16.msra.mxu1 %v936_v49  ;;  %851 = vmatprep.subr.bf16.mxu0 %v937_v50 }
  0x2e   :  { %873 = vmatprep.subr.bf16.mxu1 %v938_v51 }
  0x30   :  { %852 = vmatpush3.bf16.msra.mxu0 %v939_v52 }
  0x31   :  { %874 = vmatpush3.bf16.msra.mxu1 %v940_v53  ;;  %853 = vmatprep.subr.bf16.mxu0 %v941_v54 }
  0x32   :  { %875 = vmatprep.subr.bf16.mxu1 %v942_v55 }
  0x34   :  { %854 = vmatpush3.bf16.msra.mxu0 %v943_v56 }
  0x35   :  { %876 = vmatpush3.bf16.msra.mxu1 %v944_v57  ;;  %855 = vmatprep.subr.bf16.mxu0 %v945_v58 }
  0x36   :  { %877 = vmatprep.subr.bf16.mxu1 %v946_v59 }
  0x38   :  { %856 = vmatpush3.bf16.msra.mxu0 %v947_v60 }
  0x39   :  { %878 = vmatpush3.bf16.msra.mxu1 %v948_v61  ;;  %857 = vmatprep.subr.bf16.mxu0 %v949_v62 }
  0x3a   :  { %879 = vmatprep.subr.bf16.mxu1 %v950_v63 }
  0x3c   :  { %858 = vmatpush3.bf16.msra.mxu0 %v951_v0 }
  0x3d   :  { %880 = vmatpush3.bf16.msra.mxu1 %v952_v1  ;;  %859 = vmatprep.subr.bf16.mxu0 %v953_v2 }
  0x3e   :  { %881 = vmatprep.subr.bf16.mxu1 %v954_v3 }
  0x40   :  { %860 = vmatpush3.bf16.msra.mxu0 %v955_v4 }
  0x41   :  { %882 = vmatpush3.bf16.msra.mxu1 %v956_v5 }
  0x43   :  { %669 = vmatmul.mubr.bf16.vlgmr.msra.gmra.mrb[4].mxu0 %v732_v7 }
  0x44   :  { %709 = vmatmul.mubr.bf16.vlgmr.msra.gmra.mrb[4].mxu1 %v734_v10 }
  0xf6   :  { %v817_v12 = vpop.f32.mrb[0].mxu0 }
  0xf7   :  { %v839_v13 = vpop.f32.mrb[0].mxu1  ;;  %v818_v14 = vpop.f32.mrb[1].mxu0 }
  0xf8   :  { %v840_v15 = vpop.f32.mrb[1].mxu1  ;;  %v819_v16 = vadd.f32 %v818_v14, %v817_v12  ;;  %v820_v18 = vpop.f32.mrb[2].mxu0 }
  0xf9   :  { %v841_v17 = vadd.f32 %v840_v15, %v839_v13  ;;  %v842_v19 = vpop.f32.mrb[2].mxu1  ;;  %v821_v20 = vpop.f32.mrb[3].mxu0 }
  0xfa   :  { %v843_v21 = vpop.f32.mrb[3].mxu1 }
  0xfb   :  { %v631_v22 = vadd.f32 %v841_v17, %v819_v16 }
 0x116   :  { %v861_v23 = vpop.f32.mrb[4].mxu0 }
 0x117   :  { %v883_v24 = vpop.f32.mrb[4].mxu1  ;;  %v862_v25 = vpop.f32.mrb[5].mxu0 }
 0x118   :  { %v884_v26 = vpop.f32.mrb[5].mxu1  ;;  %v863_v27 = vadd.f32 %v862_v25, %v861_v23  ;;  %v864_v29 = vpop.f32.mrb[6].mxu0 }
 0x119   :  { %v885_v28 = vadd.f32 %v884_v26, %v883_v24  ;;  %v886_v30 = vpop.f32.mrb[6].mxu1  ;;  %v865_v31 = vpop.f32.mrb[7].mxu0 }
 0x11a   :  { %v887_v32 = vpop.f32.mrb[7].mxu1  ;;  %v671_v33 = vadd.f32 %v863_v27, %v631_v22 }
 0x11c   :  { %v711_v34 = vadd.f32 %v885_v28, %v671_v33 }
 0x11e   :  { %v800_v35 = vmul.f32 -1.442695, %v711_v34 }
 0x120   :  { %961 = vpow2.f32 %v800_v35 }
 0x12a   :  { %v962_v36 = vpop.eup %961 }
 0x12b   :  { %v719_v37 = vadd.f32 1.0, %v962_v36 }
 0x12d   :  { %963 = vrcp.f32 %v719_v37 }
 0x137   :  { %v964_v38 = vpop.eup %963 }
 0x138   :  { %723 = vst.msk [vmem:[%s1189_s2] sm:$0xff] %vm722_vm0, %v964_v38 }

</bundles_post_ra>
